<compile_context>
chip_gen: v5e
topology: v5e:2x2
jax: 0.10.0
libtpu: 0.0.40
codegen_flags: <defaults>
</compile_context>

<pallas_src>
import functools
import math

import jax
import jax.numpy as jnp
from jax.experimental import pallas as pl
from jax.experimental.pallas import tpu as pltpu


def _akt_layer(x_in, v_in, w, aux, scr, *, n_heads, d_k,
               maskk, zero_pad, apply_pos):
    """One AKT TransformerLayer (query == key == x_in) on an (S, D) slab."""
    if apply_pos:
        (wk, bk, wv, bv, wo, bo, gam, ln1g, ln1b,
         w1, b1, w2, b2, ln2g, ln2b) = w
    else:
        wk, bk, wv, bv, wo, bo, gam, ln1g, ln1b = w
    row, col, pos_eff, tri_b = aux
    kqh_ref, vh_ref, cat_ref = scr

    f32, bf16 = jnp.float32, jnp.bfloat16
    S, D = x_in.shape
    H = n_heads

    # --- input projections (q == k: kq_same=True shares k_linear) -----------
    kq_full = jnp.dot(x_in.astype(bf16), wk[...],
                      preferred_element_type=f32) + bk[...]        # (S, D)
    v_full = jnp.dot(v_in.astype(bf16), wv[...],
                     preferred_element_type=f32) + bv[...]         # (S, D)

    # split heads into bf16 scratch: (S, D) -> (H, S, d_k)
    for h in range(H):
        kqh_ref[h] = kq_full[:, h * d_k:(h + 1) * d_k].astype(bf16)
        vh_ref[h] = v_full[:, h * d_k:(h + 1) * d_k].astype(bf16)
    kq_h = kqh_ref[...]                                    # (H, S, d_k) bf16
    v_h = vh_ref[...]                                      # (H, S, d_k) bf16

    scores = jnp.einsum('hqf,hkf->hqk', kq_h, kq_h,
                        preferred_element_type=f32)        # (H, S, S) f32
    scores = scores * jnp.float32(1.0 / math.sqrt(d_k))

    # torch: nopeek = triu(ones, k=maskk); src_mask = (nopeek == 0)
    mask_b = col < (row + maskk)           # True = attendable
    neg_big = jnp.float32(-1e32)

    # --- first ("no-grad") masked softmax -> distance statistics ------------
    s1 = jnp.where(mask_b, scores, neg_big)
    m1 = jnp.max(s1, axis=-1, keepdims=True)
    e1 = jnp.exp(s1 - m1)
    p1 = e1 * pl.reciprocal(jnp.sum(e1, axis=-1, keepdims=True), approx=True)
    sm = jnp.where(mask_b, p1, 0.0)        # == softmax * mask.float()

    # reverse-exclusive cumsum over keys in ONE batched MXU matmul:
    #   rest[h,q,j] = sum_{k>j} sm[h,q,k] = (sm @ tri)[h,q,j],
    # with tri[k,j] = 1 iff k > j (strictly lower-triangular ones).
    rest = jnp.einsum('hqk,hkj->hqj', sm.astype(bf16), tri_b,
                      preferred_element_type=f32)          # (H, S, S) f32
    dist = jnp.sqrt(jnp.maximum(rest * pos_eff, 0.0))
    # gamma = -softplus(gammas) precomputed in the wrapper, shape (H, 1, 1)
    total_effect = jnp.clip(jnp.exp(dist * gam[...]), 1e-5, 1e5)

    # --- second masked softmax with the monotonic distance effect -----------
    s2 = jnp.where(mask_b, scores * total_effect, neg_big)
    m2 = jnp.max(s2, axis=-1, keepdims=True)
    e2 = jnp.exp(s2 - m2)
    attn = e2 * pl.reciprocal(jnp.sum(e2, axis=-1, keepdims=True), approx=True)
    if zero_pad:
        # torch: cat([zeros(bs,h,1,S), scores[:,:,1:,:]], dim=2)
        attn = jnp.where(row == 0, 0.0, attn)

    oh = jnp.einsum('hqk,hkf->hqf', attn.astype(bf16), v_h,
                    preferred_element_type=f32)            # (H, S, d_k) f32

    # merge heads back to a bf16 (S, D) slab and apply out_proj in one matmul
    for h in range(H):
        cat_ref[:, h * d_k:(h + 1) * d_k] = oh[h].astype(bf16)
    attn_out = jnp.dot(cat_ref[...], wo[...],
                       preferred_element_type=f32) + bo[...]       # (S, D)

    # --- residual + LayerNorm1 (eps = 1e-5, torch default), all f32 ---------
    x = x_in + attn_out
    mu = jnp.mean(x, axis=-1, keepdims=True)
    var = jnp.mean((x - mu) ** 2, axis=-1, keepdims=True)
    x = (x - mu) * jax.lax.rsqrt(var + 1e-5) * ln1g[...] + ln1b[...]

    if apply_pos:
        # position-wise FFN: linear2(relu(linear1(x)))
        h1 = jnp.dot(x.astype(bf16), w1[...],
                     preferred_element_type=f32) + b1[...]
        h1 = jnp.maximum(h1, 0.0)
        ff = jnp.dot(h1.astype(bf16), w2[...],
                     preferred_element_type=f32) + b2[...]
        x = x + ff
        mu = jnp.mean(x, axis=-1, keepdims=True)
        var = jnp.mean((x - mu) ** 2, axis=-1, keepdims=True)
        x = (x - mu) * jax.lax.rsqrt(var + 1e-5) * ln2g[...] + ln2b[...]
    return x


def _fused_akt_kernel(q_ref, qa_ref, *refs, n_heads, d_k, na, nb, nc):
    """All three AKT layers for one batch element (blocks (1, S, D))."""
    wA = refs[:na]
    wB = refs[na:na + nb]
    wC = refs[na + nb:na + nb + nc]
    o_ref, kqh_ref, vh_ref, cat_ref = refs[na + nb + nc:]
    scr = (kqh_ref, vh_ref, cat_ref)

    S = q_ref.shape[1]
    # geometry shared by all three layers (built once per grid step)
    row = jax.lax.broadcasted_iota(jnp.int32, (S, S), 0)
    col = jax.lax.broadcasted_iota(jnp.int32, (S, S), 1)
    pos_eff = jnp.abs(col - row).astype(jnp.float32)
    tri = jnp.where(row > col, jnp.float32(1.0), jnp.float32(0.0))
    tri_b = jnp.broadcast_to(tri.astype(jnp.bfloat16), (n_heads, S, S))
    aux = (row, col, pos_eff, tri_b)

    q_in = q_ref[0]                        # (S, D) f32
    qa_in = qa_ref[0]                      # (S, D) f32

    # blocks_1[0]: self-attn on y = qa_embed, mask=1, apply_pos=True
    y = _akt_layer(qa_in, qa_in, wA, aux, scr, n_heads=n_heads, d_k=d_k,
                   maskk=1, zero_pad=False, apply_pos=True)
    # blocks_2[0]: self-attn on x = q_embed, mask=1, apply_pos=False
    x = _akt_layer(q_in, q_in, wB, aux, scr, n_heads=n_heads, d_k=d_k,
                   maskk=1, zero_pad=False, apply_pos=False)
    # blocks_2[1]: query/key = x, values = y, mask=0, zero_pad=True
    x = _akt_layer(x, y, wC, aux, scr, n_heads=n_heads, d_k=d_k,
                   maskk=0, zero_pad=True, apply_pos=True)
    o_ref[0] = x


def _layer_weight_list(p, apply_pos):
    """Weights for one TransformerLayer, MXU operands pre-cast to bf16."""
    bf16 = jnp.bfloat16
    gam = -jax.nn.softplus(p['gammas'])                    # (H, 1, 1), hoisted
    w = [p['wk'].astype(bf16), p['bk'], p['wv'].astype(bf16), p['bv'],
         p['wo'].astype(bf16), p['bo'], gam, p['ln1_g'], p['ln1_b']]
    if apply_pos:
        w += [p['w1'].astype(bf16), p['b1'], p['w2'].astype(bf16), p['b2'],
              p['ln2_g'], p['ln2_b']]
    return w


def architecture_forward(params, q_embed_data, qa_embed_data, *, n_heads):
    """Fused AKT Architecture forward: 3 TransformerLayers, one pallas_call."""
    B, S, D = q_embed_data.shape
    d_k = D // n_heads

    wA = _layer_weight_list(params['block1_0'], True)
    wB = _layer_weight_list(params['block2_0'], False)
    wC = _layer_weight_list(params['block2_1'], True)
    weights = wA + wB + wC

    kernel = functools.partial(_fused_akt_kernel, n_heads=n_heads, d_k=d_k,
                               na=len(wA), nb=len(wB), nc=len(wC))

    act_spec = pl.BlockSpec((1, S, D), lambda b: (b, 0, 0))
    w_specs = [pl.BlockSpec(w.shape, lambda b, _nd=w.ndim: (0,) * _nd)
               for w in weights]

    return pl.pallas_call(
        kernel,
        out_shape=jax.ShapeDtypeStruct((B, S, D), jnp.float32),
        grid=(B,),
        in_specs=[act_spec, act_spec] + w_specs,
        out_specs=pl.BlockSpec((1, S, D), lambda b: (b, 0, 0)),
        scratch_shapes=[
            pltpu.VMEM((n_heads, S, d_k), jnp.bfloat16),   # q/k head split
            pltpu.VMEM((n_heads, S, d_k), jnp.bfloat16),   # v head split
            pltpu.VMEM((S, D), jnp.bfloat16),              # head merge buffer
        ],
        compiler_params=pltpu.CompilerParams(dimension_semantics=("parallel",)),
    )(q_embed_data, qa_embed_data, *weights)


def _xavier_uniform(key, shape):
    fan_in, fan_out = shape
    a = math.sqrt(6.0 / (fan_in + fan_out))
    return jax.random.uniform(key, shape, jnp.float32, -a, a)


def init_layer_params(key, d_model, d_ff, n_heads):
    # kq_same=True -> no separate q_linear (q shares k_linear weights/bias).
    ks = jax.random.split(key, 6)
    wk = _xavier_uniform(ks[0], (d_model, d_model))
    wv = _xavier_uniform(ks[1], (d_model, d_model))
    wo = _xavier_uniform(ks[2], (d_model, d_model))
    gbound = math.sqrt(6.0 / (1 + n_heads))                # xavier on (H,1,1)
    gammas = jax.random.uniform(ks[3], (n_heads, 1, 1), jnp.float32,
                                -gbound, gbound)
    w1 = _xavier_uniform(ks[4], (d_model, d_ff))
    w2 = _xavier_uniform(ks[5], (d_ff, d_model))
    zD = jnp.zeros((1, d_model), jnp.float32)
    return dict(
        wk=wk, bk=zD, wv=wv, bv=zD, wo=wo, bo=zD,
        gammas=gammas,
        ln1_g=jnp.ones((1, d_model), jnp.float32), ln1_b=zD,
        w1=w1, b1=jnp.zeros((1, d_ff), jnp.float32), w2=w2, b2=zD,
        ln2_g=jnp.ones((1, d_model), jnp.float32), ln2_b=zD,
    )


if __name__ == "__main__":
    B, S, D, H, D_FF = 2, 8, 32, 4, 64   # n_heads * d_feature = d_model

    key = jax.random.PRNGKey(0)
    k_q, k_qa, k_b10, k_b20, k_b21 = jax.random.split(key, 5)

    q_embed_data = jax.random.normal(k_q, (B, S, D), jnp.float32)
    qa_embed_data = jax.random.normal(k_qa, (B, S, D), jnp.float32)

    params = {
        'block1_0': init_layer_params(k_b10, D, D_FF, H),
        'block2_0': init_layer_params(k_b20, D, D_FF, H),
        'block2_1': init_layer_params(k_b21, D, D_FF, H),
    }

    out = architecture_forward(params, q_embed_data, qa_embed_data, n_heads=H)
    jax.block_until_ready(out)
    assert out.shape == (B, S, D)
    print("KERNEL_OK")
</pallas_src>

<mosaic_0001>
module attributes {stable_mosaic.version = 11 : i64} {
  func.func @_fused_akt_kernel(%arg0: i32, %arg1: memref<1x8x32xf32, #tpu.memory_space<vmem>>, %arg2: memref<1x8x32xf32, #tpu.memory_space<vmem>>, %arg3: memref<32x32xbf16, #tpu.memory_space<vmem>>, %arg4: memref<1x32xf32, #tpu.memory_space<vmem>>, %arg5: memref<32x32xbf16, #tpu.memory_space<vmem>>, %arg6: memref<1x32xf32, #tpu.memory_space<vmem>>, %arg7: memref<32x32xbf16, #tpu.memory_space<vmem>>, %arg8: memref<1x32xf32, #tpu.memory_space<vmem>>, %arg9: memref<4x1x1xf32, #tpu.memory_space<vmem>>, %arg10: memref<1x32xf32, #tpu.memory_space<vmem>>, %arg11: memref<1x32xf32, #tpu.memory_space<vmem>>, %arg12: memref<32x64xbf16, #tpu.memory_space<vmem>>, %arg13: memref<1x64xf32, #tpu.memory_space<vmem>>, %arg14: memref<64x32xbf16, #tpu.memory_space<vmem>>, %arg15: memref<1x32xf32, #tpu.memory_space<vmem>>, %arg16: memref<1x32xf32, #tpu.memory_space<vmem>>, %arg17: memref<1x32xf32, #tpu.memory_space<vmem>>, %arg18: memref<32x32xbf16, #tpu.memory_space<vmem>>, %arg19: memref<1x32xf32, #tpu.memory_space<vmem>>, %arg20: memref<32x32xbf16, #tpu.memory_space<vmem>>, %arg21: memref<1x32xf32, #tpu.memory_space<vmem>>, %arg22: memref<32x32xbf16, #tpu.memory_space<vmem>>, %arg23: memref<1x32xf32, #tpu.memory_space<vmem>>, %arg24: memref<4x1x1xf32, #tpu.memory_space<vmem>>, %arg25: memref<1x32xf32, #tpu.memory_space<vmem>>, %arg26: memref<1x32xf32, #tpu.memory_space<vmem>>, %arg27: memref<32x32xbf16, #tpu.memory_space<vmem>>, %arg28: memref<1x32xf32, #tpu.memory_space<vmem>>, %arg29: memref<32x32xbf16, #tpu.memory_space<vmem>>, %arg30: memref<1x32xf32, #tpu.memory_space<vmem>>, %arg31: memref<32x32xbf16, #tpu.memory_space<vmem>>, %arg32: memref<1x32xf32, #tpu.memory_space<vmem>>, %arg33: memref<4x1x1xf32, #tpu.memory_space<vmem>>, %arg34: memref<1x32xf32, #tpu.memory_space<vmem>>, %arg35: memref<1x32xf32, #tpu.memory_space<vmem>>, %arg36: memref<32x64xbf16, #tpu.memory_space<vmem>>, %arg37: memref<1x64xf32, #tpu.memory_space<vmem>>, %arg38: memref<64x32xbf16, #tpu.memory_space<vmem>>, %arg39: memref<1x32xf32, #tpu.memory_space<vmem>>, %arg40: memref<1x32xf32, #tpu.memory_space<vmem>>, %arg41: memref<1x32xf32, #tpu.memory_space<vmem>>, %arg42: memref<1x8x32xf32, #tpu.memory_space<vmem>>, %arg43: memref<4x8x8xbf16, #tpu.memory_space<vmem>>, %arg44: memref<4x8x8xbf16, #tpu.memory_space<vmem>>, %arg45: memref<8x32xbf16, #tpu.memory_space<vmem>>) attributes {dimension_semantics = [#tpu.dimension_semantics<parallel>], iteration_bounds = array<i64: 2>, scalar_prefetch = 0 : i64, scratch_operands = 3 : i64, tpu.core_type = #tpu.core_type<tc>, window_params = [{transform_indices = @transform_0, window_bounds = array<i64: 1, 8, 32>}, {transform_indices = @transform_1, window_bounds = array<i64: 1, 8, 32>}, {pipeline_mode = #tpu.pipeline_mode<synchronous>, transform_indices = @transform_2, window_bounds = array<i64: 32, 32>}, {pipeline_mode = #tpu.pipeline_mode<synchronous>, transform_indices = @transform_3, window_bounds = array<i64: 1, 32>}, {pipeline_mode = #tpu.pipeline_mode<synchronous>, transform_indices = @transform_4, window_bounds = array<i64: 32, 32>}, {pipeline_mode = #tpu.pipeline_mode<synchronous>, transform_indices = @transform_5, window_bounds = array<i64: 1, 32>}, {pipeline_mode = #tpu.pipeline_mode<synchronous>, transform_indices = @transform_6, window_bounds = array<i64: 32, 32>}, {pipeline_mode = #tpu.pipeline_mode<synchronous>, transform_indices = @transform_7, window_bounds = array<i64: 1, 32>}, {pipeline_mode = #tpu.pipeline_mode<synchronous>, transform_indices = @transform_8, window_bounds = array<i64: 4, 1, 1>}, {pipeline_mode = #tpu.pipeline_mode<synchronous>, transform_indices = @transform_9, window_bounds = array<i64: 1, 32>}, {pipeline_mode = #tpu.pipeline_mode<synchronous>, transform_indices = @transform_10, window_bounds = array<i64: 1, 32>}, {pipeline_mode = #tpu.pipeline_mode<synchronous>, transform_indices = @transform_11, window_bounds = array<i64: 32, 64>}, {pipeline_mode = #tpu.pipeline_mode<synchronous>, transform_indices = @transform_12, window_bounds = array<i64: 1, 64>}, {pipeline_mode = #tpu.pipeline_mode<synchronous>, transform_indices = @transform_13, window_bounds = array<i64: 64, 32>}, {pipeline_mode = #tpu.pipeline_mode<synchronous>, transform_indices = @transform_14, window_bounds = array<i64: 1, 32>}, {pipeline_mode = #tpu.pipeline_mode<synchronous>, transform_indices = @transform_15, window_bounds = array<i64: 1, 32>}, {pipeline_mode = #tpu.pipeline_mode<synchronous>, transform_indices = @transform_16, window_bounds = array<i64: 1, 32>}, {pipeline_mode = #tpu.pipeline_mode<synchronous>, transform_indices = @transform_17, window_bounds = array<i64: 32, 32>}, {pipeline_mode = #tpu.pipeline_mode<synchronous>, transform_indices = @transform_18, window_bounds = array<i64: 1, 32>}, {pipeline_mode = #tpu.pipeline_mode<synchronous>, transform_indices = @transform_19, window_bounds = array<i64: 32, 32>}, {pipeline_mode = #tpu.pipeline_mode<synchronous>, transform_indices = @transform_20, window_bounds = array<i64: 1, 32>}, {pipeline_mode = #tpu.pipeline_mode<synchronous>, transform_indices = @transform_21, window_bounds = array<i64: 32, 32>}, {pipeline_mode = #tpu.pipeline_mode<synchronous>, transform_indices = @transform_22, window_bounds = array<i64: 1, 32>}, {pipeline_mode = #tpu.pipeline_mode<synchronous>, transform_indices = @transform_23, window_bounds = array<i64: 4, 1, 1>}, {pipeline_mode = #tpu.pipeline_mode<synchronous>, transform_indices = @transform_24, window_bounds = array<i64: 1, 32>}, {pipeline_mode = #tpu.pipeline_mode<synchronous>, transform_indices = @transform_25, window_bounds = array<i64: 1, 32>}, {pipeline_mode = #tpu.pipeline_mode<synchronous>, transform_indices = @transform_26, window_bounds = array<i64: 32, 32>}, {pipeline_mode = #tpu.pipeline_mode<synchronous>, transform_indices = @transform_27, window_bounds = array<i64: 1, 32>}, {pipeline_mode = #tpu.pipeline_mode<synchronous>, transform_indices = @transform_28, window_bounds = array<i64: 32, 32>}, {pipeline_mode = #tpu.pipeline_mode<synchronous>, transform_indices = @transform_29, window_bounds = array<i64: 1, 32>}, {pipeline_mode = #tpu.pipeline_mode<synchronous>, transform_indices = @transform_30, window_bounds = array<i64: 32, 32>}, {pipeline_mode = #tpu.pipeline_mode<synchronous>, transform_indices = @transform_31, window_bounds = array<i64: 1, 32>}, {pipeline_mode = #tpu.pipeline_mode<synchronous>, transform_indices = @transform_32, window_bounds = array<i64: 4, 1, 1>}, {pipeline_mode = #tpu.pipeline_mode<synchronous>, transform_indices = @transform_33, window_bounds = array<i64: 1, 32>}, {pipeline_mode = #tpu.pipeline_mode<synchronous>, transform_indices = @transform_34, window_bounds = array<i64: 1, 32>}, {pipeline_mode = #tpu.pipeline_mode<synchronous>, transform_indices = @transform_35, window_bounds = array<i64: 32, 64>}, {pipeline_mode = #tpu.pipeline_mode<synchronous>, transform_indices = @transform_36, window_bounds = array<i64: 1, 64>}, {pipeline_mode = #tpu.pipeline_mode<synchronous>, transform_indices = @transform_37, window_bounds = array<i64: 64, 32>}, {pipeline_mode = #tpu.pipeline_mode<synchronous>, transform_indices = @transform_38, window_bounds = array<i64: 1, 32>}, {pipeline_mode = #tpu.pipeline_mode<synchronous>, transform_indices = @transform_39, window_bounds = array<i64: 1, 32>}, {pipeline_mode = #tpu.pipeline_mode<synchronous>, transform_indices = @transform_40, window_bounds = array<i64: 1, 32>}, {transform_indices = @transform_41, window_bounds = array<i64: 1, 8, 32>}]} {
    %0 = tpu.iota {dimensions = array<i32: 0>} : vector<8x8xi32>
    %1 = tpu.iota {dimensions = array<i32: 1>} : vector<8x8xi32>
    %2 = arith.subi %1, %0 : vector<8x8xi32>
    %3 = math.absi %2 : vector<8x8xi32>
    %4 = arith.sitofp %3 : vector<8x8xi32> to vector<8x8xf32>
    %5 = arith.cmpi sgt, %0, %1 : vector<8x8xi32>
    %cst = arith.constant 1.000000e+00 : f32
    %cst_0 = arith.constant 0.000000e+00 : f32
    %6 = vector.broadcast %cst : f32 to vector<8x8xf32>
    %7 = vector.broadcast %cst_0 : f32 to vector<8x8xf32>
    %8 = arith.select %5, %6, %7 : vector<8x8xi1>, vector<8x8xf32>
    %9 = arith.truncf %8 : vector<8x8xf32> to vector<8x8xbf16>
    %10 = vector.shape_cast %9 : vector<8x8xbf16> to vector<1x8x8xbf16>
    %11 = vector.broadcast %10 : vector<1x8x8xbf16> to vector<4x8x8xbf16>
    %c0 = arith.constant 0 : index
    %c0_1 = arith.constant 0 : index
    %c0_2 = arith.constant 0 : index
    %12 = vector.load %arg1[%c0, %c0_1, %c0_2] : memref<1x8x32xf32, #tpu.memory_space<vmem>>, vector<1x8x32xf32>
    %13 = vector.shape_cast %12 : vector<1x8x32xf32> to vector<8x32xf32>
    %c0_3 = arith.constant 0 : index
    %c0_4 = arith.constant 0 : index
    %c0_5 = arith.constant 0 : index
    %14 = vector.load %arg2[%c0_3, %c0_4, %c0_5] : memref<1x8x32xf32, #tpu.memory_space<vmem>>, vector<1x8x32xf32>
    %15 = vector.shape_cast %14 : vector<1x8x32xf32> to vector<8x32xf32>
    %16 = arith.truncf %15 : vector<8x32xf32> to vector<8x32xbf16>
    %c0_6 = arith.constant 0 : index
    %c0_7 = arith.constant 0 : index
    %17 = vector.load %arg3[%c0_6, %c0_7] : memref<32x32xbf16, #tpu.memory_space<vmem>>, vector<32x32xbf16>
    %cst_8 = arith.constant dense<0.000000e+00> : vector<8x32xf32>
    %18 = tpu.matmul %16, %17, %cst_8 {dimension_numbers = #tpu.dot_dimension_numbers<[1], [0], [0], [1], [0, 0, 1, 1], [], []>} : vector<8x32xbf16>, vector<32x32xbf16>, vector<8x32xf32> -> vector<8x32xf32>
    %c0_9 = arith.constant 0 : index
    %c0_10 = arith.constant 0 : index
    %19 = vector.load %arg4[%c0_9, %c0_10] : memref<1x32xf32, #tpu.memory_space<vmem>>, vector<1x32xf32>
    %20 = vector.broadcast %19 : vector<1x32xf32> to vector<8x32xf32>
    %21 = arith.addf %18, %20 : vector<8x32xf32>
    %22 = arith.truncf %15 : vector<8x32xf32> to vector<8x32xbf16>
    %c0_11 = arith.constant 0 : index
    %c0_12 = arith.constant 0 : index
    %23 = vector.load %arg5[%c0_11, %c0_12] : memref<32x32xbf16, #tpu.memory_space<vmem>>, vector<32x32xbf16>
    %cst_13 = arith.constant dense<0.000000e+00> : vector<8x32xf32>
    %24 = tpu.matmul %22, %23, %cst_13 {dimension_numbers = #tpu.dot_dimension_numbers<[1], [0], [0], [1], [0, 0, 1, 1], [], []>} : vector<8x32xbf16>, vector<32x32xbf16>, vector<8x32xf32> -> vector<8x32xf32>
    %c0_14 = arith.constant 0 : index
    %c0_15 = arith.constant 0 : index
    %25 = vector.load %arg6[%c0_14, %c0_15] : memref<1x32xf32, #tpu.memory_space<vmem>>, vector<1x32xf32>
    %26 = vector.broadcast %25 : vector<1x32xf32> to vector<8x32xf32>
    %27 = arith.addf %24, %26 : vector<8x32xf32>
    %28 = vector.extract_strided_slice %21 {offsets = [0, 0], sizes = [8, 8], strides = [1, 1]} : vector<8x32xf32> to vector<8x8xf32>
    %29 = arith.truncf %28 : vector<8x8xf32> to vector<8x8xbf16>
    %c0_16 = arith.constant 0 : index
    %c0_17 = arith.constant 0 : index
    %c0_18 = arith.constant 0 : index
    %30 = vector.load %arg43[%c0_16, %c0_17, %c0_18] : memref<4x8x8xbf16, #tpu.memory_space<vmem>>, vector<1x8x8xbf16>
    %31 = vector.shape_cast %30 : vector<1x8x8xbf16> to vector<8x8xbf16>
    %32 = vector.shape_cast %29 : vector<8x8xbf16> to vector<1x8x8xbf16>
    tpu.vector_store %arg43[%c0_16, %c0_17, %c0_18], %32 {strides = array<i32>} : memref<4x8x8xbf16, #tpu.memory_space<vmem>>, vector<1x8x8xbf16>,
    %33 = vector.extract_strided_slice %27 {offsets = [0, 0], sizes = [8, 8], strides = [1, 1]} : vector<8x32xf32> to vector<8x8xf32>
    %34 = arith.truncf %33 : vector<8x8xf32> to vector<8x8xbf16>
    %c0_19 = arith.constant 0 : index
    %c0_20 = arith.constant 0 : index
    %c0_21 = arith.constant 0 : index
    %35 = vector.load %arg44[%c0_19, %c0_20, %c0_21] : memref<4x8x8xbf16, #tpu.memory_space<vmem>>, vector<1x8x8xbf16>
    %36 = vector.shape_cast %35 : vector<1x8x8xbf16> to vector<8x8xbf16>
    %37 = vector.shape_cast %34 : vector<8x8xbf16> to vector<1x8x8xbf16>
    tpu.vector_store %arg44[%c0_19, %c0_20, %c0_21], %37 {strides = array<i32>} : memref<4x8x8xbf16, #tpu.memory_space<vmem>>, vector<1x8x8xbf16>,
    %38 = vector.extract_strided_slice %21 {offsets = [0, 8], sizes = [8, 8], strides = [1, 1]} : vector<8x32xf32> to vector<8x8xf32>
    %39 = arith.truncf %38 : vector<8x8xf32> to vector<8x8xbf16>
    %c1 = arith.constant 1 : index
    %c0_22 = arith.constant 0 : index
    %c0_23 = arith.constant 0 : index
    %40 = vector.load %arg43[%c1, %c0_22, %c0_23] : memref<4x8x8xbf16, #tpu.memory_space<vmem>>, vector<1x8x8xbf16>
    %41 = vector.shape_cast %40 : vector<1x8x8xbf16> to vector<8x8xbf16>
    %42 = vector.shape_cast %39 : vector<8x8xbf16> to vector<1x8x8xbf16>
    tpu.vector_store %arg43[%c1, %c0_22, %c0_23], %42 {strides = array<i32>} : memref<4x8x8xbf16, #tpu.memory_space<vmem>>, vector<1x8x8xbf16>,
    %43 = vector.extract_strided_slice %27 {offsets = [0, 8], sizes = [8, 8], strides = [1, 1]} : vector<8x32xf32> to vector<8x8xf32>
    %44 = arith.truncf %43 : vector<8x8xf32> to vector<8x8xbf16>
    %c1_24 = arith.constant 1 : index
    %c0_25 = arith.constant 0 : index
    %c0_26 = arith.constant 0 : index
    %45 = vector.load %arg44[%c1_24, %c0_25, %c0_26] : memref<4x8x8xbf16, #tpu.memory_space<vmem>>, vector<1x8x8xbf16>
    %46 = vector.shape_cast %45 : vector<1x8x8xbf16> to vector<8x8xbf16>
    %47 = vector.shape_cast %44 : vector<8x8xbf16> to vector<1x8x8xbf16>
    tpu.vector_store %arg44[%c1_24, %c0_25, %c0_26], %47 {strides = array<i32>} : memref<4x8x8xbf16, #tpu.memory_space<vmem>>, vector<1x8x8xbf16>,
    %48 = vector.extract_strided_slice %21 {offsets = [0, 16], sizes = [8, 8], strides = [1, 1]} : vector<8x32xf32> to vector<8x8xf32>
    %49 = arith.truncf %48 : vector<8x8xf32> to vector<8x8xbf16>
    %c2 = arith.constant 2 : index
    %c0_27 = arith.constant 0 : index
    %c0_28 = arith.constant 0 : index
    %50 = vector.load %arg43[%c2, %c0_27, %c0_28] : memref<4x8x8xbf16, #tpu.memory_space<vmem>>, vector<1x8x8xbf16>
    %51 = vector.shape_cast %50 : vector<1x8x8xbf16> to vector<8x8xbf16>
    %52 = vector.shape_cast %49 : vector<8x8xbf16> to vector<1x8x8xbf16>
    tpu.vector_store %arg43[%c2, %c0_27, %c0_28], %52 {strides = array<i32>} : memref<4x8x8xbf16, #tpu.memory_space<vmem>>, vector<1x8x8xbf16>,
    %53 = vector.extract_strided_slice %27 {offsets = [0, 16], sizes = [8, 8], strides = [1, 1]} : vector<8x32xf32> to vector<8x8xf32>
    %54 = arith.truncf %53 : vector<8x8xf32> to vector<8x8xbf16>
    %c2_29 = arith.constant 2 : index
    %c0_30 = arith.constant 0 : index
    %c0_31 = arith.constant 0 : index
    %55 = vector.load %arg44[%c2_29, %c0_30, %c0_31] : memref<4x8x8xbf16, #tpu.memory_space<vmem>>, vector<1x8x8xbf16>
    %56 = vector.shape_cast %55 : vector<1x8x8xbf16> to vector<8x8xbf16>
    %57 = vector.shape_cast %54 : vector<8x8xbf16> to vector<1x8x8xbf16>
    tpu.vector_store %arg44[%c2_29, %c0_30, %c0_31], %57 {strides = array<i32>} : memref<4x8x8xbf16, #tpu.memory_space<vmem>>, vector<1x8x8xbf16>,
    %58 = vector.extract_strided_slice %21 {offsets = [0, 24], sizes = [8, 8], strides = [1, 1]} : vector<8x32xf32> to vector<8x8xf32>
    %59 = arith.truncf %58 : vector<8x8xf32> to vector<8x8xbf16>
    %c3 = arith.constant 3 : index
    %c0_32 = arith.constant 0 : index
    %c0_33 = arith.constant 0 : index
    %60 = vector.load %arg43[%c3, %c0_32, %c0_33] : memref<4x8x8xbf16, #tpu.memory_space<vmem>>, vector<1x8x8xbf16>
    %61 = vector.shape_cast %60 : vector<1x8x8xbf16> to vector<8x8xbf16>
    %62 = vector.shape_cast %59 : vector<8x8xbf16> to vector<1x8x8xbf16>
    tpu.vector_store %arg43[%c3, %c0_32, %c0_33], %62 {strides = array<i32>} : memref<4x8x8xbf16, #tpu.memory_space<vmem>>, vector<1x8x8xbf16>,
    %63 = vector.extract_strided_slice %27 {offsets = [0, 24], sizes = [8, 8], strides = [1, 1]} : vector<8x32xf32> to vector<8x8xf32>
    %64 = arith.truncf %63 : vector<8x8xf32> to vector<8x8xbf16>
    %c3_34 = arith.constant 3 : index
    %c0_35 = arith.constant 0 : index
    %c0_36 = arith.constant 0 : index
    %65 = vector.load %arg44[%c3_34, %c0_35, %c0_36] : memref<4x8x8xbf16, #tpu.memory_space<vmem>>, vector<1x8x8xbf16>
    %66 = vector.shape_cast %65 : vector<1x8x8xbf16> to vector<8x8xbf16>
    %67 = vector.shape_cast %64 : vector<8x8xbf16> to vector<1x8x8xbf16>
    tpu.vector_store %arg44[%c3_34, %c0_35, %c0_36], %67 {strides = array<i32>} : memref<4x8x8xbf16, #tpu.memory_space<vmem>>, vector<1x8x8xbf16>,
    %c0_37 = arith.constant 0 : index
    %c0_38 = arith.constant 0 : index
    %c0_39 = arith.constant 0 : index
    %68 = vector.load %arg43[%c0_37, %c0_38, %c0_39] : memref<4x8x8xbf16, #tpu.memory_space<vmem>>, vector<4x8x8xbf16>
    %c0_40 = arith.constant 0 : index
    %c0_41 = arith.constant 0 : index
    %c0_42 = arith.constant 0 : index
    %69 = vector.load %arg44[%c0_40, %c0_41, %c0_42] : memref<4x8x8xbf16, #tpu.memory_space<vmem>>, vector<4x8x8xbf16>
    "tpu.trace_start"() <{level = 10 : i32, message = "hqf,hkf->hqk"}> : () -> ()
    %cst_43 = arith.constant dense<0.000000e+00> : vector<4x8x8xf32>
    %70 = tpu.matmul %68, %68, %cst_43 {dimension_numbers = #tpu.dot_dimension_numbers<[2], [2], [1], [1], [0, 0, 0, 1, 1, 1], [0], [0]>} : vector<4x8x8xbf16>, vector<4x8x8xbf16>, vector<4x8x8xf32> -> vector<4x8x8xf32>
    "tpu.trace_stop"() : () -> ()
    %cst_44 = arith.constant 0.353553385 : f32
    %71 = vector.broadcast %cst_44 : f32 to vector<4x8x8xf32>
    %72 = arith.mulf %70, %71 : vector<4x8x8xf32>
    %c1_i32 = arith.constant 1 : i32
    %73 = vector.broadcast %c1_i32 : i32 to vector<8x8xi32>
    %74 = arith.addi %0, %73 : vector<8x8xi32>
    %75 = arith.cmpi slt, %1, %74 : vector<8x8xi32>
    %cst_45 = arith.constant -1.000000e+32 : f32
    %76 = vector.shape_cast %75 : vector<8x8xi1> to vector<1x8x8xi1>
    %77 = vector.broadcast %76 : vector<1x8x8xi1> to vector<4x8x8xi1>
    %78 = vector.broadcast %cst_45 : f32 to vector<4x8x8xf32>
    %79 = arith.select %77, %72, %78 : vector<4x8x8xi1>, vector<4x8x8xf32>
    %cst_46 = arith.constant dense<0xFF800000> : vector<4x8xf32>
    %80 = vector.multi_reduction <maximumf>, %79, %cst_46 [2] : vector<4x8x8xf32> to vector<4x8xf32>
    %81 = vector.shape_cast %80 : vector<4x8xf32> to vector<4x8x1xf32>
    %82 = vector.broadcast %81 : vector<4x8x1xf32> to vector<4x8x8xf32>
    %83 = arith.subf %79, %82 : vector<4x8x8xf32>
    %84 = math.exp %83 : vector<4x8x8xf32>
    %cst_47 = arith.constant dense<0.000000e+00> : vector<4x8xf32>
    %85 = vector.multi_reduction <add>, %84, %cst_47 [2] : vector<4x8x8xf32> to vector<4x8xf32>
    %86 = vector.shape_cast %85 : vector<4x8xf32> to vector<4x8x1xf32>
    %87 = tpu.reciprocal %86 {approx = true} : vector<4x8x1xf32> -> vector<4x8x1xf32>
    %88 = vector.broadcast %87 : vector<4x8x1xf32> to vector<4x8x8xf32>
    %89 = arith.mulf %84, %88 : vector<4x8x8xf32>
    %cst_48 = arith.constant 0.000000e+00 : f32
    %90 = vector.shape_cast %75 : vector<8x8xi1> to vector<1x8x8xi1>
    %91 = vector.broadcast %90 : vector<1x8x8xi1> to vector<4x8x8xi1>
    %92 = vector.broadcast %cst_48 : f32 to vector<4x8x8xf32>
    %93 = arith.select %91, %89, %92 : vector<4x8x8xi1>, vector<4x8x8xf32>
    %94 = arith.truncf %93 : vector<4x8x8xf32> to vector<4x8x8xbf16>
    "tpu.trace_start"() <{level = 10 : i32, message = "hqk,hkj->hqj"}> : () -> ()
    %cst_49 = arith.constant dense<0.000000e+00> : vector<4x8x8xf32>
    %95 = tpu.matmul %94, %11, %cst_49 {dimension_numbers = #tpu.dot_dimension_numbers<[2], [1], [1], [2], [0, 0, 0, 1, 1, 2], [0], [0]>} : vector<4x8x8xbf16>, vector<4x8x8xbf16>, vector<4x8x8xf32> -> vector<4x8x8xf32>
    "tpu.trace_stop"() : () -> ()
    %96 = vector.shape_cast %4 : vector<8x8xf32> to vector<1x8x8xf32>
    %97 = vector.broadcast %96 : vector<1x8x8xf32> to vector<4x8x8xf32>
    %98 = arith.mulf %95, %97 : vector<4x8x8xf32>
    %cst_50 = arith.constant 0.000000e+00 : f32
    %99 = vector.broadcast %cst_50 : f32 to vector<4x8x8xf32>
    %100 = arith.maximumf %98, %99 : vector<4x8x8xf32>
    %101 = math.sqrt %100 : vector<4x8x8xf32>
    %c0_51 = arith.constant 0 : index
    %c0_52 = arith.constant 0 : index
    %c0_53 = arith.constant 0 : index
    %102 = vector.load %arg9[%c0_51, %c0_52, %c0_53] : memref<4x1x1xf32, #tpu.memory_space<vmem>>, vector<4x1x1xf32>
    %103 = vector.broadcast %102 : vector<4x1x1xf32> to vector<4x8x8xf32>
    %104 = arith.mulf %101, %103 : vector<4x8x8xf32>
    %105 = math.exp %104 : vector<4x8x8xf32>
    %cst_54 = arith.constant 9.99999974E-6 : f32
    %cst_55 = arith.constant 1.000000e+05 : f32
    %106 = vector.broadcast %cst_54 : f32 to vector<4x8x8xf32>
    %107 = arith.maximumf %106, %105 : vector<4x8x8xf32>
    %108 = vector.broadcast %cst_55 : f32 to vector<4x8x8xf32>
    %109 = arith.minimumf %108, %107 : vector<4x8x8xf32>
    %110 = arith.mulf %72, %109 : vector<4x8x8xf32>
    %cst_56 = arith.constant -1.000000e+32 : f32
    %111 = vector.shape_cast %75 : vector<8x8xi1> to vector<1x8x8xi1>
    %112 = vector.broadcast %111 : vector<1x8x8xi1> to vector<4x8x8xi1>
    %113 = vector.broadcast %cst_56 : f32 to vector<4x8x8xf32>
    %114 = arith.select %112, %110, %113 : vector<4x8x8xi1>, vector<4x8x8xf32>
    %cst_57 = arith.constant dense<0xFF800000> : vector<4x8xf32>
    %115 = vector.multi_reduction <maximumf>, %114, %cst_57 [2] : vector<4x8x8xf32> to vector<4x8xf32>
    %116 = vector.shape_cast %115 : vector<4x8xf32> to vector<4x8x1xf32>
    %117 = vector.broadcast %116 : vector<4x8x1xf32> to vector<4x8x8xf32>
    %118 = arith.subf %114, %117 : vector<4x8x8xf32>
    %119 = math.exp %118 : vector<4x8x8xf32>
    %cst_58 = arith.constant dense<0.000000e+00> : vector<4x8xf32>
    %120 = vector.multi_reduction <add>, %119, %cst_58 [2] : vector<4x8x8xf32> to vector<4x8xf32>
    %121 = vector.shape_cast %120 : vector<4x8xf32> to vector<4x8x1xf32>
    %122 = tpu.reciprocal %121 {approx = true} : vector<4x8x1xf32> -> vector<4x8x1xf32>
    %123 = vector.broadcast %122 : vector<4x8x1xf32> to vector<4x8x8xf32>
    %124 = arith.mulf %119, %123 : vector<4x8x8xf32>
    %125 = arith.truncf %124 : vector<4x8x8xf32> to vector<4x8x8xbf16>
    "tpu.trace_start"() <{level = 10 : i32, message = "hqk,hkf->hqf"}> : () -> ()
    %cst_59 = arith.constant dense<0.000000e+00> : vector<4x8x8xf32>
    %126 = tpu.matmul %125, %69, %cst_59 {dimension_numbers = #tpu.dot_dimension_numbers<[2], [1], [1], [2], [0, 0, 0, 1, 1, 2], [0], [0]>} : vector<4x8x8xbf16>, vector<4x8x8xbf16>, vector<4x8x8xf32> -> vector<4x8x8xf32>
    "tpu.trace_stop"() : () -> ()
    %127 = vector.extract_strided_slice %126 {offsets = [0, 0, 0], sizes = [1, 8, 8], strides = [1, 1, 1]} : vector<4x8x8xf32> to vector<1x8x8xf32>
    %128 = vector.shape_cast %127 : vector<1x8x8xf32> to vector<8x8xf32>
    %129 = arith.truncf %128 : vector<8x8xf32> to vector<8x8xbf16>
    %c0_60 = arith.constant 0 : index
    %c0_61 = arith.constant 0 : index
    %130 = vector.load %arg45[%c0_60, %c0_61] : memref<8x32xbf16, #tpu.memory_space<vmem>>, vector<8x8xbf16>
    tpu.vector_store %arg45[%c0_60, %c0_61], %129 {strides = array<i32>} : memref<8x32xbf16, #tpu.memory_space<vmem>>, vector<8x8xbf16>,
    %131 = vector.extract_strided_slice %126 {offsets = [1, 0, 0], sizes = [1, 8, 8], strides = [1, 1, 1]} : vector<4x8x8xf32> to vector<1x8x8xf32>
    %132 = vector.shape_cast %131 : vector<1x8x8xf32> to vector<8x8xf32>
    %133 = arith.truncf %132 : vector<8x8xf32> to vector<8x8xbf16>
    %c0_62 = arith.constant 0 : index
    %c8 = arith.constant 8 : index
    %134 = vector.load %arg45[%c0_62, %c8] : memref<8x32xbf16, #tpu.memory_space<vmem>>, vector<8x8xbf16>
    tpu.vector_store %arg45[%c0_62, %c8], %133 {strides = array<i32>} : memref<8x32xbf16, #tpu.memory_space<vmem>>, vector<8x8xbf16>,
    %135 = vector.extract_strided_slice %126 {offsets = [2, 0, 0], sizes = [1, 8, 8], strides = [1, 1, 1]} : vector<4x8x8xf32> to vector<1x8x8xf32>
    %136 = vector.shape_cast %135 : vector<1x8x8xf32> to vector<8x8xf32>
    %137 = arith.truncf %136 : vector<8x8xf32> to vector<8x8xbf16>
    %c0_63 = arith.constant 0 : index
    %c16 = arith.constant 16 : index
    %138 = vector.load %arg45[%c0_63, %c16] : memref<8x32xbf16, #tpu.memory_space<vmem>>, vector<8x8xbf16>
    tpu.vector_store %arg45[%c0_63, %c16], %137 {strides = array<i32>} : memref<8x32xbf16, #tpu.memory_space<vmem>>, vector<8x8xbf16>,
    %139 = vector.extract_strided_slice %126 {offsets = [3, 0, 0], sizes = [1, 8, 8], strides = [1, 1, 1]} : vector<4x8x8xf32> to vector<1x8x8xf32>
    %140 = vector.shape_cast %139 : vector<1x8x8xf32> to vector<8x8xf32>
    %141 = arith.truncf %140 : vector<8x8xf32> to vector<8x8xbf16>
    %c0_64 = arith.constant 0 : index
    %c24 = arith.constant 24 : index
    %142 = vector.load %arg45[%c0_64, %c24] : memref<8x32xbf16, #tpu.memory_space<vmem>>, vector<8x8xbf16>
    tpu.vector_store %arg45[%c0_64, %c24], %141 {strides = array<i32>} : memref<8x32xbf16, #tpu.memory_space<vmem>>, vector<8x8xbf16>,
    %c0_65 = arith.constant 0 : index
    %c0_66 = arith.constant 0 : index
    %143 = vector.load %arg45[%c0_65, %c0_66] : memref<8x32xbf16, #tpu.memory_space<vmem>>, vector<8x32xbf16>
    %c0_67 = arith.constant 0 : index
    %c0_68 = arith.constant 0 : index
    %144 = vector.load %arg7[%c0_67, %c0_68] : memref<32x32xbf16, #tpu.memory_space<vmem>>, vector<32x32xbf16>
    %cst_69 = arith.constant dense<0.000000e+00> : vector<8x32xf32>
    %145 = tpu.matmul %143, %144, %cst_69 {dimension_numbers = #tpu.dot_dimension_numbers<[1], [0], [0], [1], [0, 0, 1, 1], [], []>} : vector<8x32xbf16>, vector<32x32xbf16>, vector<8x32xf32> -> vector<8x32xf32>
    %c0_70 = arith.constant 0 : index
    %c0_71 = arith.constant 0 : index
    %146 = vector.load %arg8[%c0_70, %c0_71] : memref<1x32xf32, #tpu.memory_space<vmem>>, vector<1x32xf32>
    %147 = vector.broadcast %146 : vector<1x32xf32> to vector<8x32xf32>
    %148 = arith.addf %145, %147 : vector<8x32xf32>
    %149 = arith.addf %15, %148 : vector<8x32xf32>
    %cst_72 = arith.constant dense<0.000000e+00> : vector<8xf32>
    %150 = vector.multi_reduction <add>, %149, %cst_72 [1] : vector<8x32xf32> to vector<8xf32>
    %151 = vector.shape_cast %150 : vector<8xf32> to vector<8x1xf32>
    %cst_73 = arith.constant 3.200000e+01 : f32
    %152 = vector.broadcast %cst_73 : f32 to vector<8x1xf32>
    %153 = arith.divf %151, %152 : vector<8x1xf32>
    %154 = vector.broadcast %153 : vector<8x1xf32> to vector<8x32xf32>
    %155 = arith.subf %149, %154 : vector<8x32xf32>
    %156 = arith.mulf %155, %155 : vector<8x32xf32>
    %cst_74 = arith.constant dense<0.000000e+00> : vector<8xf32>
    %157 = vector.multi_reduction <add>, %156, %cst_74 [1] : vector<8x32xf32> to vector<8xf32>
    %158 = vector.shape_cast %157 : vector<8xf32> to vector<8x1xf32>
    %cst_75 = arith.constant 3.200000e+01 : f32
    %159 = vector.broadcast %cst_75 : f32 to vector<8x1xf32>
    %160 = arith.divf %158, %159 : vector<8x1xf32>
    %161 = vector.broadcast %153 : vector<8x1xf32> to vector<8x32xf32>
    %162 = arith.subf %149, %161 : vector<8x32xf32>
    %cst_76 = arith.constant 9.99999974E-6 : f32
    %163 = vector.broadcast %cst_76 : f32 to vector<8x1xf32>
    %164 = arith.addf %160, %163 : vector<8x1xf32>
    %165 = math.rsqrt %164 : vector<8x1xf32>
    %166 = vector.broadcast %165 : vector<8x1xf32> to vector<8x32xf32>
    %167 = arith.mulf %162, %166 : vector<8x32xf32>
    %c0_77 = arith.constant 0 : index
    %c0_78 = arith.constant 0 : index
    %168 = vector.load %arg10[%c0_77, %c0_78] : memref<1x32xf32, #tpu.memory_space<vmem>>, vector<1x32xf32>
    %169 = vector.broadcast %168 : vector<1x32xf32> to vector<8x32xf32>
    %170 = arith.mulf %167, %169 : vector<8x32xf32>
    %c0_79 = arith.constant 0 : index
    %c0_80 = arith.constant 0 : index
    %171 = vector.load %arg11[%c0_79, %c0_80] : memref<1x32xf32, #tpu.memory_space<vmem>>, vector<1x32xf32>
    %172 = vector.broadcast %171 : vector<1x32xf32> to vector<8x32xf32>
    %173 = arith.addf %170, %172 : vector<8x32xf32>
    %174 = arith.truncf %173 : vector<8x32xf32> to vector<8x32xbf16>
    %c0_81 = arith.constant 0 : index
    %c0_82 = arith.constant 0 : index
    %175 = vector.load %arg12[%c0_81, %c0_82] : memref<32x64xbf16, #tpu.memory_space<vmem>>, vector<32x64xbf16>
    %cst_83 = arith.constant dense<0.000000e+00> : vector<8x64xf32>
    %176 = tpu.matmul %174, %175, %cst_83 {dimension_numbers = #tpu.dot_dimension_numbers<[1], [0], [0], [1], [0, 0, 1, 1], [], []>} : vector<8x32xbf16>, vector<32x64xbf16>, vector<8x64xf32> -> vector<8x64xf32>
    %c0_84 = arith.constant 0 : index
    %c0_85 = arith.constant 0 : index
    %177 = vector.load %arg13[%c0_84, %c0_85] : memref<1x64xf32, #tpu.memory_space<vmem>>, vector<1x64xf32>
    %178 = vector.broadcast %177 : vector<1x64xf32> to vector<8x64xf32>
    %179 = arith.addf %176, %178 : vector<8x64xf32>
    %cst_86 = arith.constant 0.000000e+00 : f32
    %180 = vector.broadcast %cst_86 : f32 to vector<8x64xf32>
    %181 = arith.maximumf %179, %180 : vector<8x64xf32>
    %182 = arith.truncf %181 : vector<8x64xf32> to vector<8x64xbf16>
    %c0_87 = arith.constant 0 : index
    %c0_88 = arith.constant 0 : index
    %183 = vector.load %arg14[%c0_87, %c0_88] : memref<64x32xbf16, #tpu.memory_space<vmem>>, vector<64x32xbf16>
    %cst_89 = arith.constant dense<0.000000e+00> : vector<8x32xf32>
    %184 = tpu.matmul %182, %183, %cst_89 {dimension_numbers = #tpu.dot_dimension_numbers<[1], [0], [0], [1], [0, 0, 1, 1], [], []>} : vector<8x64xbf16>, vector<64x32xbf16>, vector<8x32xf32> -> vector<8x32xf32>
    %c0_90 = arith.constant 0 : index
    %c0_91 = arith.constant 0 : index
    %185 = vector.load %arg15[%c0_90, %c0_91] : memref<1x32xf32, #tpu.memory_space<vmem>>, vector<1x32xf32>
    %186 = vector.broadcast %185 : vector<1x32xf32> to vector<8x32xf32>
    %187 = arith.addf %184, %186 : vector<8x32xf32>
    %188 = arith.addf %173, %187 : vector<8x32xf32>
    %cst_92 = arith.constant dense<0.000000e+00> : vector<8xf32>
    %189 = vector.multi_reduction <add>, %188, %cst_92 [1] : vector<8x32xf32> to vector<8xf32>
    %190 = vector.shape_cast %189 : vector<8xf32> to vector<8x1xf32>
    %cst_93 = arith.constant 3.200000e+01 : f32
    %191 = vector.broadcast %cst_93 : f32 to vector<8x1xf32>
    %192 = arith.divf %190, %191 : vector<8x1xf32>
    %193 = vector.broadcast %192 : vector<8x1xf32> to vector<8x32xf32>
    %194 = arith.subf %188, %193 : vector<8x32xf32>
    %195 = arith.mulf %194, %194 : vector<8x32xf32>
    %cst_94 = arith.constant dense<0.000000e+00> : vector<8xf32>
    %196 = vector.multi_reduction <add>, %195, %cst_94 [1] : vector<8x32xf32> to vector<8xf32>
    %197 = vector.shape_cast %196 : vector<8xf32> to vector<8x1xf32>
    %cst_95 = arith.constant 3.200000e+01 : f32
    %198 = vector.broadcast %cst_95 : f32 to vector<8x1xf32>
    %199 = arith.divf %197, %198 : vector<8x1xf32>
    %200 = vector.broadcast %192 : vector<8x1xf32> to vector<8x32xf32>
    %201 = arith.subf %188, %200 : vector<8x32xf32>
    %cst_96 = arith.constant 9.99999974E-6 : f32
    %202 = vector.broadcast %cst_96 : f32 to vector<8x1xf32>
    %203 = arith.addf %199, %202 : vector<8x1xf32>
    %204 = math.rsqrt %203 : vector<8x1xf32>
    %205 = vector.broadcast %204 : vector<8x1xf32> to vector<8x32xf32>
    %206 = arith.mulf %201, %205 : vector<8x32xf32>
    %c0_97 = arith.constant 0 : index
    %c0_98 = arith.constant 0 : index
    %207 = vector.load %arg16[%c0_97, %c0_98] : memref<1x32xf32, #tpu.memory_space<vmem>>, vector<1x32xf32>
    %208 = vector.broadcast %207 : vector<1x32xf32> to vector<8x32xf32>
    %209 = arith.mulf %206, %208 : vector<8x32xf32>
    %c0_99 = arith.constant 0 : index
    %c0_100 = arith.constant 0 : index
    %210 = vector.load %arg17[%c0_99, %c0_100] : memref<1x32xf32, #tpu.memory_space<vmem>>, vector<1x32xf32>
    %211 = vector.broadcast %210 : vector<1x32xf32> to vector<8x32xf32>
    %212 = arith.addf %209, %211 : vector<8x32xf32>
    %213 = arith.truncf %13 : vector<8x32xf32> to vector<8x32xbf16>
    %c0_101 = arith.constant 0 : index
    %c0_102 = arith.constant 0 : index
    %214 = vector.load %arg18[%c0_101, %c0_102] : memref<32x32xbf16, #tpu.memory_space<vmem>>, vector<32x32xbf16>
    %cst_103 = arith.constant dense<0.000000e+00> : vector<8x32xf32>
    %215 = tpu.matmul %213, %214, %cst_103 {dimension_numbers = #tpu.dot_dimension_numbers<[1], [0], [0], [1], [0, 0, 1, 1], [], []>} : vector<8x32xbf16>, vector<32x32xbf16>, vector<8x32xf32> -> vector<8x32xf32>
    %c0_104 = arith.constant 0 : index
    %c0_105 = arith.constant 0 : index
    %216 = vector.load %arg19[%c0_104, %c0_105] : memref<1x32xf32, #tpu.memory_space<vmem>>, vector<1x32xf32>
    %217 = vector.broadcast %216 : vector<1x32xf32> to vector<8x32xf32>
    %218 = arith.addf %215, %217 : vector<8x32xf32>
    %219 = arith.truncf %13 : vector<8x32xf32> to vector<8x32xbf16>
    %c0_106 = arith.constant 0 : index
    %c0_107 = arith.constant 0 : index
    %220 = vector.load %arg20[%c0_106, %c0_107] : memref<32x32xbf16, #tpu.memory_space<vmem>>, vector<32x32xbf16>
    %cst_108 = arith.constant dense<0.000000e+00> : vector<8x32xf32>
    %221 = tpu.matmul %219, %220, %cst_108 {dimension_numbers = #tpu.dot_dimension_numbers<[1], [0], [0], [1], [0, 0, 1, 1], [], []>} : vector<8x32xbf16>, vector<32x32xbf16>, vector<8x32xf32> -> vector<8x32xf32>
    %c0_109 = arith.constant 0 : index
    %c0_110 = arith.constant 0 : index
    %222 = vector.load %arg21[%c0_109, %c0_110] : memref<1x32xf32, #tpu.memory_space<vmem>>, vector<1x32xf32>
    %223 = vector.broadcast %222 : vector<1x32xf32> to vector<8x32xf32>
    %224 = arith.addf %221, %223 : vector<8x32xf32>
    %225 = vector.extract_strided_slice %218 {offsets = [0, 0], sizes = [8, 8], strides = [1, 1]} : vector<8x32xf32> to vector<8x8xf32>
    %226 = arith.truncf %225 : vector<8x8xf32> to vector<8x8xbf16>
    %c0_111 = arith.constant 0 : index
    %c0_112 = arith.constant 0 : index
    %c0_113 = arith.constant 0 : index
    %227 = vector.load %arg43[%c0_111, %c0_112, %c0_113] : memref<4x8x8xbf16, #tpu.memory_space<vmem>>, vector<1x8x8xbf16>
    %228 = vector.shape_cast %227 : vector<1x8x8xbf16> to vector<8x8xbf16>
    %229 = vector.shape_cast %226 : vector<8x8xbf16> to vector<1x8x8xbf16>
    tpu.vector_store %arg43[%c0_111, %c0_112, %c0_113], %229 {strides = array<i32>} : memref<4x8x8xbf16, #tpu.memory_space<vmem>>, vector<1x8x8xbf16>,
    %230 = vector.extract_strided_slice %224 {offsets = [0, 0], sizes = [8, 8], strides = [1, 1]} : vector<8x32xf32> to vector<8x8xf32>
    %231 = arith.truncf %230 : vector<8x8xf32> to vector<8x8xbf16>
    %c0_114 = arith.constant 0 : index
    %c0_115 = arith.constant 0 : index
    %c0_116 = arith.constant 0 : index
    %232 = vector.load %arg44[%c0_114, %c0_115, %c0_116] : memref<4x8x8xbf16, #tpu.memory_space<vmem>>, vector<1x8x8xbf16>
    %233 = vector.shape_cast %232 : vector<1x8x8xbf16> to vector<8x8xbf16>
    %234 = vector.shape_cast %231 : vector<8x8xbf16> to vector<1x8x8xbf16>
    tpu.vector_store %arg44[%c0_114, %c0_115, %c0_116], %234 {strides = array<i32>} : memref<4x8x8xbf16, #tpu.memory_space<vmem>>, vector<1x8x8xbf16>,
    %235 = vector.extract_strided_slice %218 {offsets = [0, 8], sizes = [8, 8], strides = [1, 1]} : vector<8x32xf32> to vector<8x8xf32>
    %236 = arith.truncf %235 : vector<8x8xf32> to vector<8x8xbf16>
    %c1_117 = arith.constant 1 : index
    %c0_118 = arith.constant 0 : index
    %c0_119 = arith.constant 0 : index
    %237 = vector.load %arg43[%c1_117, %c0_118, %c0_119] : memref<4x8x8xbf16, #tpu.memory_space<vmem>>, vector<1x8x8xbf16>
    %238 = vector.shape_cast %237 : vector<1x8x8xbf16> to vector<8x8xbf16>
    %239 = vector.shape_cast %236 : vector<8x8xbf16> to vector<1x8x8xbf16>
    tpu.vector_store %arg43[%c1_117, %c0_118, %c0_119], %239 {strides = array<i32>} : memref<4x8x8xbf16, #tpu.memory_space<vmem>>, vector<1x8x8xbf16>,
    %240 = vector.extract_strided_slice %224 {offsets = [0, 8], sizes = [8, 8], strides = [1, 1]} : vector<8x32xf32> to vector<8x8xf32>
    %241 = arith.truncf %240 : vector<8x8xf32> to vector<8x8xbf16>
    %c1_120 = arith.constant 1 : index
    %c0_121 = arith.constant 0 : index
    %c0_122 = arith.constant 0 : index
    %242 = vector.load %arg44[%c1_120, %c0_121, %c0_122] : memref<4x8x8xbf16, #tpu.memory_space<vmem>>, vector<1x8x8xbf16>
    %243 = vector.shape_cast %242 : vector<1x8x8xbf16> to vector<8x8xbf16>
    %244 = vector.shape_cast %241 : vector<8x8xbf16> to vector<1x8x8xbf16>
    tpu.vector_store %arg44[%c1_120, %c0_121, %c0_122], %244 {strides = array<i32>} : memref<4x8x8xbf16, #tpu.memory_space<vmem>>, vector<1x8x8xbf16>,
    %245 = vector.extract_strided_slice %218 {offsets = [0, 16], sizes = [8, 8], strides = [1, 1]} : vector<8x32xf32> to vector<8x8xf32>
    %246 = arith.truncf %245 : vector<8x8xf32> to vector<8x8xbf16>
    %c2_123 = arith.constant 2 : index
    %c0_124 = arith.constant 0 : index
    %c0_125 = arith.constant 0 : index
    %247 = vector.load %arg43[%c2_123, %c0_124, %c0_125] : memref<4x8x8xbf16, #tpu.memory_space<vmem>>, vector<1x8x8xbf16>
    %248 = vector.shape_cast %247 : vector<1x8x8xbf16> to vector<8x8xbf16>
    %249 = vector.shape_cast %246 : vector<8x8xbf16> to vector<1x8x8xbf16>
    tpu.vector_store %arg43[%c2_123, %c0_124, %c0_125], %249 {strides = array<i32>} : memref<4x8x8xbf16, #tpu.memory_space<vmem>>, vector<1x8x8xbf16>,
    %250 = vector.extract_strided_slice %224 {offsets = [0, 16], sizes = [8, 8], strides = [1, 1]} : vector<8x32xf32> to vector<8x8xf32>
    %251 = arith.truncf %250 : vector<8x8xf32> to vector<8x8xbf16>
    %c2_126 = arith.constant 2 : index
    %c0_127 = arith.constant 0 : index
    %c0_128 = arith.constant 0 : index
    %252 = vector.load %arg44[%c2_126, %c0_127, %c0_128] : memref<4x8x8xbf16, #tpu.memory_space<vmem>>, vector<1x8x8xbf16>
    %253 = vector.shape_cast %252 : vector<1x8x8xbf16> to vector<8x8xbf16>
    %254 = vector.shape_cast %251 : vector<8x8xbf16> to vector<1x8x8xbf16>
    tpu.vector_store %arg44[%c2_126, %c0_127, %c0_128], %254 {strides = array<i32>} : memref<4x8x8xbf16, #tpu.memory_space<vmem>>, vector<1x8x8xbf16>,
    %255 = vector.extract_strided_slice %218 {offsets = [0, 24], sizes = [8, 8], strides = [1, 1]} : vector<8x32xf32> to vector<8x8xf32>
    %256 = arith.truncf %255 : vector<8x8xf32> to vector<8x8xbf16>
    %c3_129 = arith.constant 3 : index
    %c0_130 = arith.constant 0 : index
    %c0_131 = arith.constant 0 : index
    %257 = vector.load %arg43[%c3_129, %c0_130, %c0_131] : memref<4x8x8xbf16, #tpu.memory_space<vmem>>, vector<1x8x8xbf16>
    %258 = vector.shape_cast %257 : vector<1x8x8xbf16> to vector<8x8xbf16>
    %259 = vector.shape_cast %256 : vector<8x8xbf16> to vector<1x8x8xbf16>
    tpu.vector_store %arg43[%c3_129, %c0_130, %c0_131], %259 {strides = array<i32>} : memref<4x8x8xbf16, #tpu.memory_space<vmem>>, vector<1x8x8xbf16>,
    %260 = vector.extract_strided_slice %224 {offsets = [0, 24], sizes = [8, 8], strides = [1, 1]} : vector<8x32xf32> to vector<8x8xf32>
    %261 = arith.truncf %260 : vector<8x8xf32> to vector<8x8xbf16>
    %c3_132 = arith.constant 3 : index
    %c0_133 = arith.constant 0 : index
    %c0_134 = arith.constant 0 : index
    %262 = vector.load %arg44[%c3_132, %c0_133, %c0_134] : memref<4x8x8xbf16, #tpu.memory_space<vmem>>, vector<1x8x8xbf16>
    %263 = vector.shape_cast %262 : vector<1x8x8xbf16> to vector<8x8xbf16>
    %264 = vector.shape_cast %261 : vector<8x8xbf16> to vector<1x8x8xbf16>
    tpu.vector_store %arg44[%c3_132, %c0_133, %c0_134], %264 {strides = array<i32>} : memref<4x8x8xbf16, #tpu.memory_space<vmem>>, vector<1x8x8xbf16>,
    %c0_135 = arith.constant 0 : index
    %c0_136 = arith.constant 0 : index
    %c0_137 = arith.constant 0 : index
    %265 = vector.load %arg43[%c0_135, %c0_136, %c0_137] : memref<4x8x8xbf16, #tpu.memory_space<vmem>>, vector<4x8x8xbf16>
    %c0_138 = arith.constant 0 : index
    %c0_139 = arith.constant 0 : index
    %c0_140 = arith.constant 0 : index
    %266 = vector.load %arg44[%c0_138, %c0_139, %c0_140] : memref<4x8x8xbf16, #tpu.memory_space<vmem>>, vector<4x8x8xbf16>
    "tpu.trace_start"() <{level = 10 : i32, message = "hqf,hkf->hqk"}> : () -> ()
    %cst_141 = arith.constant dense<0.000000e+00> : vector<4x8x8xf32>
    %267 = tpu.matmul %265, %265, %cst_141 {dimension_numbers = #tpu.dot_dimension_numbers<[2], [2], [1], [1], [0, 0, 0, 1, 1, 1], [0], [0]>} : vector<4x8x8xbf16>, vector<4x8x8xbf16>, vector<4x8x8xf32> -> vector<4x8x8xf32>
    "tpu.trace_stop"() : () -> ()
    %cst_142 = arith.constant 0.353553385 : f32
    %268 = vector.broadcast %cst_142 : f32 to vector<4x8x8xf32>
    %269 = arith.mulf %267, %268 : vector<4x8x8xf32>
    %c1_i32_143 = arith.constant 1 : i32
    %270 = vector.broadcast %c1_i32_143 : i32 to vector<8x8xi32>
    %271 = arith.addi %0, %270 : vector<8x8xi32>
    %272 = arith.cmpi slt, %1, %271 : vector<8x8xi32>
    %cst_144 = arith.constant -1.000000e+32 : f32
    %273 = vector.shape_cast %272 : vector<8x8xi1> to vector<1x8x8xi1>
    %274 = vector.broadcast %273 : vector<1x8x8xi1> to vector<4x8x8xi1>
    %275 = vector.broadcast %cst_144 : f32 to vector<4x8x8xf32>
    %276 = arith.select %274, %269, %275 : vector<4x8x8xi1>, vector<4x8x8xf32>
    %cst_145 = arith.constant dense<0xFF800000> : vector<4x8xf32>
    %277 = vector.multi_reduction <maximumf>, %276, %cst_145 [2] : vector<4x8x8xf32> to vector<4x8xf32>
    %278 = vector.shape_cast %277 : vector<4x8xf32> to vector<4x8x1xf32>
    %279 = vector.broadcast %278 : vector<4x8x1xf32> to vector<4x8x8xf32>
    %280 = arith.subf %276, %279 : vector<4x8x8xf32>
    %281 = math.exp %280 : vector<4x8x8xf32>
    %cst_146 = arith.constant dense<0.000000e+00> : vector<4x8xf32>
    %282 = vector.multi_reduction <add>, %281, %cst_146 [2] : vector<4x8x8xf32> to vector<4x8xf32>
    %283 = vector.shape_cast %282 : vector<4x8xf32> to vector<4x8x1xf32>
    %284 = tpu.reciprocal %283 {approx = true} : vector<4x8x1xf32> -> vector<4x8x1xf32>
    %285 = vector.broadcast %284 : vector<4x8x1xf32> to vector<4x8x8xf32>
    %286 = arith.mulf %281, %285 : vector<4x8x8xf32>
    %cst_147 = arith.constant 0.000000e+00 : f32
    %287 = vector.shape_cast %272 : vector<8x8xi1> to vector<1x8x8xi1>
    %288 = vector.broadcast %287 : vector<1x8x8xi1> to vector<4x8x8xi1>
    %289 = vector.broadcast %cst_147 : f32 to vector<4x8x8xf32>
    %290 = arith.select %288, %286, %289 : vector<4x8x8xi1>, vector<4x8x8xf32>
    %291 = arith.truncf %290 : vector<4x8x8xf32> to vector<4x8x8xbf16>
    "tpu.trace_start"() <{level = 10 : i32, message = "hqk,hkj->hqj"}> : () -> ()
    %cst_148 = arith.constant dense<0.000000e+00> : vector<4x8x8xf32>
    %292 = tpu.matmul %291, %11, %cst_148 {dimension_numbers = #tpu.dot_dimension_numbers<[2], [1], [1], [2], [0, 0, 0, 1, 1, 2], [0], [0]>} : vector<4x8x8xbf16>, vector<4x8x8xbf16>, vector<4x8x8xf32> -> vector<4x8x8xf32>
    "tpu.trace_stop"() : () -> ()
    %293 = vector.shape_cast %4 : vector<8x8xf32> to vector<1x8x8xf32>
    %294 = vector.broadcast %293 : vector<1x8x8xf32> to vector<4x8x8xf32>
    %295 = arith.mulf %292, %294 : vector<4x8x8xf32>
    %cst_149 = arith.constant 0.000000e+00 : f32
    %296 = vector.broadcast %cst_149 : f32 to vector<4x8x8xf32>
    %297 = arith.maximumf %295, %296 : vector<4x8x8xf32>
    %298 = math.sqrt %297 : vector<4x8x8xf32>
    %c0_150 = arith.constant 0 : index
    %c0_151 = arith.constant 0 : index
    %c0_152 = arith.constant 0 : index
    %299 = vector.load %arg24[%c0_150, %c0_151, %c0_152] : memref<4x1x1xf32, #tpu.memory_space<vmem>>, vector<4x1x1xf32>
    %300 = vector.broadcast %299 : vector<4x1x1xf32> to vector<4x8x8xf32>
    %301 = arith.mulf %298, %300 : vector<4x8x8xf32>
    %302 = math.exp %301 : vector<4x8x8xf32>
    %cst_153 = arith.constant 9.99999974E-6 : f32
    %cst_154 = arith.constant 1.000000e+05 : f32
    %303 = vector.broadcast %cst_153 : f32 to vector<4x8x8xf32>
    %304 = arith.maximumf %303, %302 : vector<4x8x8xf32>
    %305 = vector.broadcast %cst_154 : f32 to vector<4x8x8xf32>
    %306 = arith.minimumf %305, %304 : vector<4x8x8xf32>
    %307 = arith.mulf %269, %306 : vector<4x8x8xf32>
    %cst_155 = arith.constant -1.000000e+32 : f32
    %308 = vector.shape_cast %272 : vector<8x8xi1> to vector<1x8x8xi1>
    %309 = vector.broadcast %308 : vector<1x8x8xi1> to vector<4x8x8xi1>
    %310 = vector.broadcast %cst_155 : f32 to vector<4x8x8xf32>
    %311 = arith.select %309, %307, %310 : vector<4x8x8xi1>, vector<4x8x8xf32>
    %cst_156 = arith.constant dense<0xFF800000> : vector<4x8xf32>
    %312 = vector.multi_reduction <maximumf>, %311, %cst_156 [2] : vector<4x8x8xf32> to vector<4x8xf32>
    %313 = vector.shape_cast %312 : vector<4x8xf32> to vector<4x8x1xf32>
    %314 = vector.broadcast %313 : vector<4x8x1xf32> to vector<4x8x8xf32>
    %315 = arith.subf %311, %314 : vector<4x8x8xf32>
    %316 = math.exp %315 : vector<4x8x8xf32>
    %cst_157 = arith.constant dense<0.000000e+00> : vector<4x8xf32>
    %317 = vector.multi_reduction <add>, %316, %cst_157 [2] : vector<4x8x8xf32> to vector<4x8xf32>
    %318 = vector.shape_cast %317 : vector<4x8xf32> to vector<4x8x1xf32>
    %319 = tpu.reciprocal %318 {approx = true} : vector<4x8x1xf32> -> vector<4x8x1xf32>
    %320 = vector.broadcast %319 : vector<4x8x1xf32> to vector<4x8x8xf32>
    %321 = arith.mulf %316, %320 : vector<4x8x8xf32>
    %322 = arith.truncf %321 : vector<4x8x8xf32> to vector<4x8x8xbf16>
    "tpu.trace_start"() <{level = 10 : i32, message = "hqk,hkf->hqf"}> : () -> ()
    %cst_158 = arith.constant dense<0.000000e+00> : vector<4x8x8xf32>
    %323 = tpu.matmul %322, %266, %cst_158 {dimension_numbers = #tpu.dot_dimension_numbers<[2], [1], [1], [2], [0, 0, 0, 1, 1, 2], [0], [0]>} : vector<4x8x8xbf16>, vector<4x8x8xbf16>, vector<4x8x8xf32> -> vector<4x8x8xf32>
    "tpu.trace_stop"() : () -> ()
    %324 = vector.extract_strided_slice %323 {offsets = [0, 0, 0], sizes = [1, 8, 8], strides = [1, 1, 1]} : vector<4x8x8xf32> to vector<1x8x8xf32>
    %325 = vector.shape_cast %324 : vector<1x8x8xf32> to vector<8x8xf32>
    %326 = arith.truncf %325 : vector<8x8xf32> to vector<8x8xbf16>
    %c0_159 = arith.constant 0 : index
    %c0_160 = arith.constant 0 : index
    %327 = vector.load %arg45[%c0_159, %c0_160] : memref<8x32xbf16, #tpu.memory_space<vmem>>, vector<8x8xbf16>
    tpu.vector_store %arg45[%c0_159, %c0_160], %326 {strides = array<i32>} : memref<8x32xbf16, #tpu.memory_space<vmem>>, vector<8x8xbf16>,
    %328 = vector.extract_strided_slice %323 {offsets = [1, 0, 0], sizes = [1, 8, 8], strides = [1, 1, 1]} : vector<4x8x8xf32> to vector<1x8x8xf32>
    %329 = vector.shape_cast %328 : vector<1x8x8xf32> to vector<8x8xf32>
    %330 = arith.truncf %329 : vector<8x8xf32> to vector<8x8xbf16>
    %c0_161 = arith.constant 0 : index
    %c8_162 = arith.constant 8 : index
    %331 = vector.load %arg45[%c0_161, %c8_162] : memref<8x32xbf16, #tpu.memory_space<vmem>>, vector<8x8xbf16>
    tpu.vector_store %arg45[%c0_161, %c8_162], %330 {strides = array<i32>} : memref<8x32xbf16, #tpu.memory_space<vmem>>, vector<8x8xbf16>,
    %332 = vector.extract_strided_slice %323 {offsets = [2, 0, 0], sizes = [1, 8, 8], strides = [1, 1, 1]} : vector<4x8x8xf32> to vector<1x8x8xf32>
    %333 = vector.shape_cast %332 : vector<1x8x8xf32> to vector<8x8xf32>
    %334 = arith.truncf %333 : vector<8x8xf32> to vector<8x8xbf16>
    %c0_163 = arith.constant 0 : index
    %c16_164 = arith.constant 16 : index
    %335 = vector.load %arg45[%c0_163, %c16_164] : memref<8x32xbf16, #tpu.memory_space<vmem>>, vector<8x8xbf16>
    tpu.vector_store %arg45[%c0_163, %c16_164], %334 {strides = array<i32>} : memref<8x32xbf16, #tpu.memory_space<vmem>>, vector<8x8xbf16>,
    %336 = vector.extract_strided_slice %323 {offsets = [3, 0, 0], sizes = [1, 8, 8], strides = [1, 1, 1]} : vector<4x8x8xf32> to vector<1x8x8xf32>
    %337 = vector.shape_cast %336 : vector<1x8x8xf32> to vector<8x8xf32>
    %338 = arith.truncf %337 : vector<8x8xf32> to vector<8x8xbf16>
    %c0_165 = arith.constant 0 : index
    %c24_166 = arith.constant 24 : index
    %339 = vector.load %arg45[%c0_165, %c24_166] : memref<8x32xbf16, #tpu.memory_space<vmem>>, vector<8x8xbf16>
    tpu.vector_store %arg45[%c0_165, %c24_166], %338 {strides = array<i32>} : memref<8x32xbf16, #tpu.memory_space<vmem>>, vector<8x8xbf16>,
    %c0_167 = arith.constant 0 : index
    %c0_168 = arith.constant 0 : index
    %340 = vector.load %arg45[%c0_167, %c0_168] : memref<8x32xbf16, #tpu.memory_space<vmem>>, vector<8x32xbf16>
    %c0_169 = arith.constant 0 : index
    %c0_170 = arith.constant 0 : index
    %341 = vector.load %arg22[%c0_169, %c0_170] : memref<32x32xbf16, #tpu.memory_space<vmem>>, vector<32x32xbf16>
    %cst_171 = arith.constant dense<0.000000e+00> : vector<8x32xf32>
    %342 = tpu.matmul %340, %341, %cst_171 {dimension_numbers = #tpu.dot_dimension_numbers<[1], [0], [0], [1], [0, 0, 1, 1], [], []>} : vector<8x32xbf16>, vector<32x32xbf16>, vector<8x32xf32> -> vector<8x32xf32>
    %c0_172 = arith.constant 0 : index
    %c0_173 = arith.constant 0 : index
    %343 = vector.load %arg23[%c0_172, %c0_173] : memref<1x32xf32, #tpu.memory_space<vmem>>, vector<1x32xf32>
    %344 = vector.broadcast %343 : vector<1x32xf32> to vector<8x32xf32>
    %345 = arith.addf %342, %344 : vector<8x32xf32>
    %346 = arith.addf %13, %345 : vector<8x32xf32>
    %cst_174 = arith.constant dense<0.000000e+00> : vector<8xf32>
    %347 = vector.multi_reduction <add>, %346, %cst_174 [1] : vector<8x32xf32> to vector<8xf32>
    %348 = vector.shape_cast %347 : vector<8xf32> to vector<8x1xf32>
    %cst_175 = arith.constant 3.200000e+01 : f32
    %349 = vector.broadcast %cst_175 : f32 to vector<8x1xf32>
    %350 = arith.divf %348, %349 : vector<8x1xf32>
    %351 = vector.broadcast %350 : vector<8x1xf32> to vector<8x32xf32>
    %352 = arith.subf %346, %351 : vector<8x32xf32>
    %353 = arith.mulf %352, %352 : vector<8x32xf32>
    %cst_176 = arith.constant dense<0.000000e+00> : vector<8xf32>
    %354 = vector.multi_reduction <add>, %353, %cst_176 [1] : vector<8x32xf32> to vector<8xf32>
    %355 = vector.shape_cast %354 : vector<8xf32> to vector<8x1xf32>
    %cst_177 = arith.constant 3.200000e+01 : f32
    %356 = vector.broadcast %cst_177 : f32 to vector<8x1xf32>
    %357 = arith.divf %355, %356 : vector<8x1xf32>
    %358 = vector.broadcast %350 : vector<8x1xf32> to vector<8x32xf32>
    %359 = arith.subf %346, %358 : vector<8x32xf32>
    %cst_178 = arith.constant 9.99999974E-6 : f32
    %360 = vector.broadcast %cst_178 : f32 to vector<8x1xf32>
    %361 = arith.addf %357, %360 : vector<8x1xf32>
    %362 = math.rsqrt %361 : vector<8x1xf32>
    %363 = vector.broadcast %362 : vector<8x1xf32> to vector<8x32xf32>
    %364 = arith.mulf %359, %363 : vector<8x32xf32>
    %c0_179 = arith.constant 0 : index
    %c0_180 = arith.constant 0 : index
    %365 = vector.load %arg25[%c0_179, %c0_180] : memref<1x32xf32, #tpu.memory_space<vmem>>, vector<1x32xf32>
    %366 = vector.broadcast %365 : vector<1x32xf32> to vector<8x32xf32>
    %367 = arith.mulf %364, %366 : vector<8x32xf32>
    %c0_181 = arith.constant 0 : index
    %c0_182 = arith.constant 0 : index
    %368 = vector.load %arg26[%c0_181, %c0_182] : memref<1x32xf32, #tpu.memory_space<vmem>>, vector<1x32xf32>
    %369 = vector.broadcast %368 : vector<1x32xf32> to vector<8x32xf32>
    %370 = arith.addf %367, %369 : vector<8x32xf32>
    %371 = arith.truncf %370 : vector<8x32xf32> to vector<8x32xbf16>
    %c0_183 = arith.constant 0 : index
    %c0_184 = arith.constant 0 : index
    %372 = vector.load %arg27[%c0_183, %c0_184] : memref<32x32xbf16, #tpu.memory_space<vmem>>, vector<32x32xbf16>
    %cst_185 = arith.constant dense<0.000000e+00> : vector<8x32xf32>
    %373 = tpu.matmul %371, %372, %cst_185 {dimension_numbers = #tpu.dot_dimension_numbers<[1], [0], [0], [1], [0, 0, 1, 1], [], []>} : vector<8x32xbf16>, vector<32x32xbf16>, vector<8x32xf32> -> vector<8x32xf32>
    %c0_186 = arith.constant 0 : index
    %c0_187 = arith.constant 0 : index
    %374 = vector.load %arg28[%c0_186, %c0_187] : memref<1x32xf32, #tpu.memory_space<vmem>>, vector<1x32xf32>
    %375 = vector.broadcast %374 : vector<1x32xf32> to vector<8x32xf32>
    %376 = arith.addf %373, %375 : vector<8x32xf32>
    %377 = arith.truncf %212 : vector<8x32xf32> to vector<8x32xbf16>
    %c0_188 = arith.constant 0 : index
    %c0_189 = arith.constant 0 : index
    %378 = vector.load %arg29[%c0_188, %c0_189] : memref<32x32xbf16, #tpu.memory_space<vmem>>, vector<32x32xbf16>
    %cst_190 = arith.constant dense<0.000000e+00> : vector<8x32xf32>
    %379 = tpu.matmul %377, %378, %cst_190 {dimension_numbers = #tpu.dot_dimension_numbers<[1], [0], [0], [1], [0, 0, 1, 1], [], []>} : vector<8x32xbf16>, vector<32x32xbf16>, vector<8x32xf32> -> vector<8x32xf32>
    %c0_191 = arith.constant 0 : index
    %c0_192 = arith.constant 0 : index
    %380 = vector.load %arg30[%c0_191, %c0_192] : memref<1x32xf32, #tpu.memory_space<vmem>>, vector<1x32xf32>
    %381 = vector.broadcast %380 : vector<1x32xf32> to vector<8x32xf32>
    %382 = arith.addf %379, %381 : vector<8x32xf32>
    %383 = vector.extract_strided_slice %376 {offsets = [0, 0], sizes = [8, 8], strides = [1, 1]} : vector<8x32xf32> to vector<8x8xf32>
    %384 = arith.truncf %383 : vector<8x8xf32> to vector<8x8xbf16>
    %c0_193 = arith.constant 0 : index
    %c0_194 = arith.constant 0 : index
    %c0_195 = arith.constant 0 : index
    %385 = vector.load %arg43[%c0_193, %c0_194, %c0_195] : memref<4x8x8xbf16, #tpu.memory_space<vmem>>, vector<1x8x8xbf16>
    %386 = vector.shape_cast %385 : vector<1x8x8xbf16> to vector<8x8xbf16>
    %387 = vector.shape_cast %384 : vector<8x8xbf16> to vector<1x8x8xbf16>
    tpu.vector_store %arg43[%c0_193, %c0_194, %c0_195], %387 {strides = array<i32>} : memref<4x8x8xbf16, #tpu.memory_space<vmem>>, vector<1x8x8xbf16>,
    %388 = vector.extract_strided_slice %382 {offsets = [0, 0], sizes = [8, 8], strides = [1, 1]} : vector<8x32xf32> to vector<8x8xf32>
    %389 = arith.truncf %388 : vector<8x8xf32> to vector<8x8xbf16>
    %c0_196 = arith.constant 0 : index
    %c0_197 = arith.constant 0 : index
    %c0_198 = arith.constant 0 : index
    %390 = vector.load %arg44[%c0_196, %c0_197, %c0_198] : memref<4x8x8xbf16, #tpu.memory_space<vmem>>, vector<1x8x8xbf16>
    %391 = vector.shape_cast %390 : vector<1x8x8xbf16> to vector<8x8xbf16>
    %392 = vector.shape_cast %389 : vector<8x8xbf16> to vector<1x8x8xbf16>
    tpu.vector_store %arg44[%c0_196, %c0_197, %c0_198], %392 {strides = array<i32>} : memref<4x8x8xbf16, #tpu.memory_space<vmem>>, vector<1x8x8xbf16>,
    %393 = vector.extract_strided_slice %376 {offsets = [0, 8], sizes = [8, 8], strides = [1, 1]} : vector<8x32xf32> to vector<8x8xf32>
    %394 = arith.truncf %393 : vector<8x8xf32> to vector<8x8xbf16>
    %c1_199 = arith.constant 1 : index
    %c0_200 = arith.constant 0 : index
    %c0_201 = arith.constant 0 : index
    %395 = vector.load %arg43[%c1_199, %c0_200, %c0_201] : memref<4x8x8xbf16, #tpu.memory_space<vmem>>, vector<1x8x8xbf16>
    %396 = vector.shape_cast %395 : vector<1x8x8xbf16> to vector<8x8xbf16>
    %397 = vector.shape_cast %394 : vector<8x8xbf16> to vector<1x8x8xbf16>
    tpu.vector_store %arg43[%c1_199, %c0_200, %c0_201], %397 {strides = array<i32>} : memref<4x8x8xbf16, #tpu.memory_space<vmem>>, vector<1x8x8xbf16>,
    %398 = vector.extract_strided_slice %382 {offsets = [0, 8], sizes = [8, 8], strides = [1, 1]} : vector<8x32xf32> to vector<8x8xf32>
    %399 = arith.truncf %398 : vector<8x8xf32> to vector<8x8xbf16>
    %c1_202 = arith.constant 1 : index
    %c0_203 = arith.constant 0 : index
    %c0_204 = arith.constant 0 : index
    %400 = vector.load %arg44[%c1_202, %c0_203, %c0_204] : memref<4x8x8xbf16, #tpu.memory_space<vmem>>, vector<1x8x8xbf16>
    %401 = vector.shape_cast %400 : vector<1x8x8xbf16> to vector<8x8xbf16>
    %402 = vector.shape_cast %399 : vector<8x8xbf16> to vector<1x8x8xbf16>
    tpu.vector_store %arg44[%c1_202, %c0_203, %c0_204], %402 {strides = array<i32>} : memref<4x8x8xbf16, #tpu.memory_space<vmem>>, vector<1x8x8xbf16>,
    %403 = vector.extract_strided_slice %376 {offsets = [0, 16], sizes = [8, 8], strides = [1, 1]} : vector<8x32xf32> to vector<8x8xf32>
    %404 = arith.truncf %403 : vector<8x8xf32> to vector<8x8xbf16>
    %c2_205 = arith.constant 2 : index
    %c0_206 = arith.constant 0 : index
    %c0_207 = arith.constant 0 : index
    %405 = vector.load %arg43[%c2_205, %c0_206, %c0_207] : memref<4x8x8xbf16, #tpu.memory_space<vmem>>, vector<1x8x8xbf16>
    %406 = vector.shape_cast %405 : vector<1x8x8xbf16> to vector<8x8xbf16>
    %407 = vector.shape_cast %404 : vector<8x8xbf16> to vector<1x8x8xbf16>
    tpu.vector_store %arg43[%c2_205, %c0_206, %c0_207], %407 {strides = array<i32>} : memref<4x8x8xbf16, #tpu.memory_space<vmem>>, vector<1x8x8xbf16>,
    %408 = vector.extract_strided_slice %382 {offsets = [0, 16], sizes = [8, 8], strides = [1, 1]} : vector<8x32xf32> to vector<8x8xf32>
    %409 = arith.truncf %408 : vector<8x8xf32> to vector<8x8xbf16>
    %c2_208 = arith.constant 2 : index
    %c0_209 = arith.constant 0 : index
    %c0_210 = arith.constant 0 : index
    %410 = vector.load %arg44[%c2_208, %c0_209, %c0_210] : memref<4x8x8xbf16, #tpu.memory_space<vmem>>, vector<1x8x8xbf16>
    %411 = vector.shape_cast %410 : vector<1x8x8xbf16> to vector<8x8xbf16>
    %412 = vector.shape_cast %409 : vector<8x8xbf16> to vector<1x8x8xbf16>
    tpu.vector_store %arg44[%c2_208, %c0_209, %c0_210], %412 {strides = array<i32>} : memref<4x8x8xbf16, #tpu.memory_space<vmem>>, vector<1x8x8xbf16>,
    %413 = vector.extract_strided_slice %376 {offsets = [0, 24], sizes = [8, 8], strides = [1, 1]} : vector<8x32xf32> to vector<8x8xf32>
    %414 = arith.truncf %413 : vector<8x8xf32> to vector<8x8xbf16>
    %c3_211 = arith.constant 3 : index
    %c0_212 = arith.constant 0 : index
    %c0_213 = arith.constant 0 : index
    %415 = vector.load %arg43[%c3_211, %c0_212, %c0_213] : memref<4x8x8xbf16, #tpu.memory_space<vmem>>, vector<1x8x8xbf16>
    %416 = vector.shape_cast %415 : vector<1x8x8xbf16> to vector<8x8xbf16>
    %417 = vector.shape_cast %414 : vector<8x8xbf16> to vector<1x8x8xbf16>
    tpu.vector_store %arg43[%c3_211, %c0_212, %c0_213], %417 {strides = array<i32>} : memref<4x8x8xbf16, #tpu.memory_space<vmem>>, vector<1x8x8xbf16>,
    %418 = vector.extract_strided_slice %382 {offsets = [0, 24], sizes = [8, 8], strides = [1, 1]} : vector<8x32xf32> to vector<8x8xf32>
    %419 = arith.truncf %418 : vector<8x8xf32> to vector<8x8xbf16>
    %c3_214 = arith.constant 3 : index
    %c0_215 = arith.constant 0 : index
    %c0_216 = arith.constant 0 : index
    %420 = vector.load %arg44[%c3_214, %c0_215, %c0_216] : memref<4x8x8xbf16, #tpu.memory_space<vmem>>, vector<1x8x8xbf16>
    %421 = vector.shape_cast %420 : vector<1x8x8xbf16> to vector<8x8xbf16>
    %422 = vector.shape_cast %419 : vector<8x8xbf16> to vector<1x8x8xbf16>
    tpu.vector_store %arg44[%c3_214, %c0_215, %c0_216], %422 {strides = array<i32>} : memref<4x8x8xbf16, #tpu.memory_space<vmem>>, vector<1x8x8xbf16>,
    %c0_217 = arith.constant 0 : index
    %c0_218 = arith.constant 0 : index
    %c0_219 = arith.constant 0 : index
    %423 = vector.load %arg43[%c0_217, %c0_218, %c0_219] : memref<4x8x8xbf16, #tpu.memory_space<vmem>>, vector<4x8x8xbf16>
    %c0_220 = arith.constant 0 : index
    %c0_221 = arith.constant 0 : index
    %c0_222 = arith.constant 0 : index
    %424 = vector.load %arg44[%c0_220, %c0_221, %c0_222] : memref<4x8x8xbf16, #tpu.memory_space<vmem>>, vector<4x8x8xbf16>
    "tpu.trace_start"() <{level = 10 : i32, message = "hqf,hkf->hqk"}> : () -> ()
    %cst_223 = arith.constant dense<0.000000e+00> : vector<4x8x8xf32>
    %425 = tpu.matmul %423, %423, %cst_223 {dimension_numbers = #tpu.dot_dimension_numbers<[2], [2], [1], [1], [0, 0, 0, 1, 1, 1], [0], [0]>} : vector<4x8x8xbf16>, vector<4x8x8xbf16>, vector<4x8x8xf32> -> vector<4x8x8xf32>
    "tpu.trace_stop"() : () -> ()
    %cst_224 = arith.constant 0.353553385 : f32
    %426 = vector.broadcast %cst_224 : f32 to vector<4x8x8xf32>
    %427 = arith.mulf %425, %426 : vector<4x8x8xf32>
    %c0_i32 = arith.constant 0 : i32
    %428 = vector.broadcast %c0_i32 : i32 to vector<8x8xi32>
    %429 = arith.addi %0, %428 : vector<8x8xi32>
    %430 = arith.cmpi slt, %1, %429 : vector<8x8xi32>
    %cst_225 = arith.constant -1.000000e+32 : f32
    %431 = vector.shape_cast %430 : vector<8x8xi1> to vector<1x8x8xi1>
    %432 = vector.broadcast %431 : vector<1x8x8xi1> to vector<4x8x8xi1>
    %433 = vector.broadcast %cst_225 : f32 to vector<4x8x8xf32>
    %434 = arith.select %432, %427, %433 : vector<4x8x8xi1>, vector<4x8x8xf32>
    %cst_226 = arith.constant dense<0xFF800000> : vector<4x8xf32>
    %435 = vector.multi_reduction <maximumf>, %434, %cst_226 [2] : vector<4x8x8xf32> to vector<4x8xf32>
    %436 = vector.shape_cast %435 : vector<4x8xf32> to vector<4x8x1xf32>
    %437 = vector.broadcast %436 : vector<4x8x1xf32> to vector<4x8x8xf32>
    %438 = arith.subf %434, %437 : vector<4x8x8xf32>
    %439 = math.exp %438 : vector<4x8x8xf32>
    %cst_227 = arith.constant dense<0.000000e+00> : vector<4x8xf32>
    %440 = vector.multi_reduction <add>, %439, %cst_227 [2] : vector<4x8x8xf32> to vector<4x8xf32>
    %441 = vector.shape_cast %440 : vector<4x8xf32> to vector<4x8x1xf32>
    %442 = tpu.reciprocal %441 {approx = true} : vector<4x8x1xf32> -> vector<4x8x1xf32>
    %443 = vector.broadcast %442 : vector<4x8x1xf32> to vector<4x8x8xf32>
    %444 = arith.mulf %439, %443 : vector<4x8x8xf32>
    %cst_228 = arith.constant 0.000000e+00 : f32
    %445 = vector.shape_cast %430 : vector<8x8xi1> to vector<1x8x8xi1>
    %446 = vector.broadcast %445 : vector<1x8x8xi1> to vector<4x8x8xi1>
    %447 = vector.broadcast %cst_228 : f32 to vector<4x8x8xf32>
    %448 = arith.select %446, %444, %447 : vector<4x8x8xi1>, vector<4x8x8xf32>
    %449 = arith.truncf %448 : vector<4x8x8xf32> to vector<4x8x8xbf16>
    "tpu.trace_start"() <{level = 10 : i32, message = "hqk,hkj->hqj"}> : () -> ()
    %cst_229 = arith.constant dense<0.000000e+00> : vector<4x8x8xf32>
    %450 = tpu.matmul %449, %11, %cst_229 {dimension_numbers = #tpu.dot_dimension_numbers<[2], [1], [1], [2], [0, 0, 0, 1, 1, 2], [0], [0]>} : vector<4x8x8xbf16>, vector<4x8x8xbf16>, vector<4x8x8xf32> -> vector<4x8x8xf32>
    "tpu.trace_stop"() : () -> ()
    %451 = vector.shape_cast %4 : vector<8x8xf32> to vector<1x8x8xf32>
    %452 = vector.broadcast %451 : vector<1x8x8xf32> to vector<4x8x8xf32>
    %453 = arith.mulf %450, %452 : vector<4x8x8xf32>
    %cst_230 = arith.constant 0.000000e+00 : f32
    %454 = vector.broadcast %cst_230 : f32 to vector<4x8x8xf32>
    %455 = arith.maximumf %453, %454 : vector<4x8x8xf32>
    %456 = math.sqrt %455 : vector<4x8x8xf32>
    %c0_231 = arith.constant 0 : index
    %c0_232 = arith.constant 0 : index
    %c0_233 = arith.constant 0 : index
    %457 = vector.load %arg33[%c0_231, %c0_232, %c0_233] : memref<4x1x1xf32, #tpu.memory_space<vmem>>, vector<4x1x1xf32>
    %458 = vector.broadcast %457 : vector<4x1x1xf32> to vector<4x8x8xf32>
    %459 = arith.mulf %456, %458 : vector<4x8x8xf32>
    %460 = math.exp %459 : vector<4x8x8xf32>
    %cst_234 = arith.constant 9.99999974E-6 : f32
    %cst_235 = arith.constant 1.000000e+05 : f32
    %461 = vector.broadcast %cst_234 : f32 to vector<4x8x8xf32>
    %462 = arith.maximumf %461, %460 : vector<4x8x8xf32>
    %463 = vector.broadcast %cst_235 : f32 to vector<4x8x8xf32>
    %464 = arith.minimumf %463, %462 : vector<4x8x8xf32>
    %465 = arith.mulf %427, %464 : vector<4x8x8xf32>
    %cst_236 = arith.constant -1.000000e+32 : f32
    %466 = vector.shape_cast %430 : vector<8x8xi1> to vector<1x8x8xi1>
    %467 = vector.broadcast %466 : vector<1x8x8xi1> to vector<4x8x8xi1>
    %468 = vector.broadcast %cst_236 : f32 to vector<4x8x8xf32>
    %469 = arith.select %467, %465, %468 : vector<4x8x8xi1>, vector<4x8x8xf32>
    %cst_237 = arith.constant dense<0xFF800000> : vector<4x8xf32>
    %470 = vector.multi_reduction <maximumf>, %469, %cst_237 [2] : vector<4x8x8xf32> to vector<4x8xf32>
    %471 = vector.shape_cast %470 : vector<4x8xf32> to vector<4x8x1xf32>
    %472 = vector.broadcast %471 : vector<4x8x1xf32> to vector<4x8x8xf32>
    %473 = arith.subf %469, %472 : vector<4x8x8xf32>
    %474 = math.exp %473 : vector<4x8x8xf32>
    %cst_238 = arith.constant dense<0.000000e+00> : vector<4x8xf32>
    %475 = vector.multi_reduction <add>, %474, %cst_238 [2] : vector<4x8x8xf32> to vector<4x8xf32>
    %476 = vector.shape_cast %475 : vector<4x8xf32> to vector<4x8x1xf32>
    %477 = tpu.reciprocal %476 {approx = true} : vector<4x8x1xf32> -> vector<4x8x1xf32>
    %478 = vector.broadcast %477 : vector<4x8x1xf32> to vector<4x8x8xf32>
    %479 = arith.mulf %474, %478 : vector<4x8x8xf32>
    %c0_i32_239 = arith.constant 0 : i32
    %480 = vector.broadcast %c0_i32_239 : i32 to vector<8x8xi32>
    %481 = arith.cmpi eq, %0, %480 : vector<8x8xi32>
    %cst_240 = arith.constant 0.000000e+00 : f32
    %482 = vector.shape_cast %481 : vector<8x8xi1> to vector<1x8x8xi1>
    %483 = vector.broadcast %482 : vector<1x8x8xi1> to vector<4x8x8xi1>
    %484 = vector.broadcast %cst_240 : f32 to vector<4x8x8xf32>
    %485 = arith.select %483, %484, %479 : vector<4x8x8xi1>, vector<4x8x8xf32>
    %486 = arith.truncf %485 : vector<4x8x8xf32> to vector<4x8x8xbf16>
    "tpu.trace_start"() <{level = 10 : i32, message = "hqk,hkf->hqf"}> : () -> ()
    %cst_241 = arith.constant dense<0.000000e+00> : vector<4x8x8xf32>
    %487 = tpu.matmul %486, %424, %cst_241 {dimension_numbers = #tpu.dot_dimension_numbers<[2], [1], [1], [2], [0, 0, 0, 1, 1, 2], [0], [0]>} : vector<4x8x8xbf16>, vector<4x8x8xbf16>, vector<4x8x8xf32> -> vector<4x8x8xf32>
    "tpu.trace_stop"() : () -> ()
    %488 = vector.extract_strided_slice %487 {offsets = [0, 0, 0], sizes = [1, 8, 8], strides = [1, 1, 1]} : vector<4x8x8xf32> to vector<1x8x8xf32>
    %489 = vector.shape_cast %488 : vector<1x8x8xf32> to vector<8x8xf32>
    %490 = arith.truncf %489 : vector<8x8xf32> to vector<8x8xbf16>
    %c0_242 = arith.constant 0 : index
    %c0_243 = arith.constant 0 : index
    %491 = vector.load %arg45[%c0_242, %c0_243] : memref<8x32xbf16, #tpu.memory_space<vmem>>, vector<8x8xbf16>
    tpu.vector_store %arg45[%c0_242, %c0_243], %490 {strides = array<i32>} : memref<8x32xbf16, #tpu.memory_space<vmem>>, vector<8x8xbf16>,
    %492 = vector.extract_strided_slice %487 {offsets = [1, 0, 0], sizes = [1, 8, 8], strides = [1, 1, 1]} : vector<4x8x8xf32> to vector<1x8x8xf32>
    %493 = vector.shape_cast %492 : vector<1x8x8xf32> to vector<8x8xf32>
    %494 = arith.truncf %493 : vector<8x8xf32> to vector<8x8xbf16>
    %c0_244 = arith.constant 0 : index
    %c8_245 = arith.constant 8 : index
    %495 = vector.load %arg45[%c0_244, %c8_245] : memref<8x32xbf16, #tpu.memory_space<vmem>>, vector<8x8xbf16>
    tpu.vector_store %arg45[%c0_244, %c8_245], %494 {strides = array<i32>} : memref<8x32xbf16, #tpu.memory_space<vmem>>, vector<8x8xbf16>,
    %496 = vector.extract_strided_slice %487 {offsets = [2, 0, 0], sizes = [1, 8, 8], strides = [1, 1, 1]} : vector<4x8x8xf32> to vector<1x8x8xf32>
    %497 = vector.shape_cast %496 : vector<1x8x8xf32> to vector<8x8xf32>
    %498 = arith.truncf %497 : vector<8x8xf32> to vector<8x8xbf16>
    %c0_246 = arith.constant 0 : index
    %c16_247 = arith.constant 16 : index
    %499 = vector.load %arg45[%c0_246, %c16_247] : memref<8x32xbf16, #tpu.memory_space<vmem>>, vector<8x8xbf16>
    tpu.vector_store %arg45[%c0_246, %c16_247], %498 {strides = array<i32>} : memref<8x32xbf16, #tpu.memory_space<vmem>>, vector<8x8xbf16>,
    %500 = vector.extract_strided_slice %487 {offsets = [3, 0, 0], sizes = [1, 8, 8], strides = [1, 1, 1]} : vector<4x8x8xf32> to vector<1x8x8xf32>
    %501 = vector.shape_cast %500 : vector<1x8x8xf32> to vector<8x8xf32>
    %502 = arith.truncf %501 : vector<8x8xf32> to vector<8x8xbf16>
    %c0_248 = arith.constant 0 : index
    %c24_249 = arith.constant 24 : index
    %503 = vector.load %arg45[%c0_248, %c24_249] : memref<8x32xbf16, #tpu.memory_space<vmem>>, vector<8x8xbf16>
    tpu.vector_store %arg45[%c0_248, %c24_249], %502 {strides = array<i32>} : memref<8x32xbf16, #tpu.memory_space<vmem>>, vector<8x8xbf16>,
    %c0_250 = arith.constant 0 : index
    %c0_251 = arith.constant 0 : index
    %504 = vector.load %arg45[%c0_250, %c0_251] : memref<8x32xbf16, #tpu.memory_space<vmem>>, vector<8x32xbf16>
    %c0_252 = arith.constant 0 : index
    %c0_253 = arith.constant 0 : index
    %505 = vector.load %arg31[%c0_252, %c0_253] : memref<32x32xbf16, #tpu.memory_space<vmem>>, vector<32x32xbf16>
    %cst_254 = arith.constant dense<0.000000e+00> : vector<8x32xf32>
    %506 = tpu.matmul %504, %505, %cst_254 {dimension_numbers = #tpu.dot_dimension_numbers<[1], [0], [0], [1], [0, 0, 1, 1], [], []>} : vector<8x32xbf16>, vector<32x32xbf16>, vector<8x32xf32> -> vector<8x32xf32>
    %c0_255 = arith.constant 0 : index
    %c0_256 = arith.constant 0 : index
    %507 = vector.load %arg32[%c0_255, %c0_256] : memref<1x32xf32, #tpu.memory_space<vmem>>, vector<1x32xf32>
    %508 = vector.broadcast %507 : vector<1x32xf32> to vector<8x32xf32>
    %509 = arith.addf %506, %508 : vector<8x32xf32>
    %510 = arith.addf %370, %509 : vector<8x32xf32>
    %cst_257 = arith.constant dense<0.000000e+00> : vector<8xf32>
    %511 = vector.multi_reduction <add>, %510, %cst_257 [1] : vector<8x32xf32> to vector<8xf32>
    %512 = vector.shape_cast %511 : vector<8xf32> to vector<8x1xf32>
    %cst_258 = arith.constant 3.200000e+01 : f32
    %513 = vector.broadcast %cst_258 : f32 to vector<8x1xf32>
    %514 = arith.divf %512, %513 : vector<8x1xf32>
    %515 = vector.broadcast %514 : vector<8x1xf32> to vector<8x32xf32>
    %516 = arith.subf %510, %515 : vector<8x32xf32>
    %517 = arith.mulf %516, %516 : vector<8x32xf32>
    %cst_259 = arith.constant dense<0.000000e+00> : vector<8xf32>
    %518 = vector.multi_reduction <add>, %517, %cst_259 [1] : vector<8x32xf32> to vector<8xf32>
    %519 = vector.shape_cast %518 : vector<8xf32> to vector<8x1xf32>
    %cst_260 = arith.constant 3.200000e+01 : f32
    %520 = vector.broadcast %cst_260 : f32 to vector<8x1xf32>
    %521 = arith.divf %519, %520 : vector<8x1xf32>
    %522 = vector.broadcast %514 : vector<8x1xf32> to vector<8x32xf32>
    %523 = arith.subf %510, %522 : vector<8x32xf32>
    %cst_261 = arith.constant 9.99999974E-6 : f32
    %524 = vector.broadcast %cst_261 : f32 to vector<8x1xf32>
    %525 = arith.addf %521, %524 : vector<8x1xf32>
    %526 = math.rsqrt %525 : vector<8x1xf32>
    %527 = vector.broadcast %526 : vector<8x1xf32> to vector<8x32xf32>
    %528 = arith.mulf %523, %527 : vector<8x32xf32>
    %c0_262 = arith.constant 0 : index
    %c0_263 = arith.constant 0 : index
    %529 = vector.load %arg34[%c0_262, %c0_263] : memref<1x32xf32, #tpu.memory_space<vmem>>, vector<1x32xf32>
    %530 = vector.broadcast %529 : vector<1x32xf32> to vector<8x32xf32>
    %531 = arith.mulf %528, %530 : vector<8x32xf32>
    %c0_264 = arith.constant 0 : index
    %c0_265 = arith.constant 0 : index
    %532 = vector.load %arg35[%c0_264, %c0_265] : memref<1x32xf32, #tpu.memory_space<vmem>>, vector<1x32xf32>
    %533 = vector.broadcast %532 : vector<1x32xf32> to vector<8x32xf32>
    %534 = arith.addf %531, %533 : vector<8x32xf32>
    %535 = arith.truncf %534 : vector<8x32xf32> to vector<8x32xbf16>
    %c0_266 = arith.constant 0 : index
    %c0_267 = arith.constant 0 : index
    %536 = vector.load %arg36[%c0_266, %c0_267] : memref<32x64xbf16, #tpu.memory_space<vmem>>, vector<32x64xbf16>
    %cst_268 = arith.constant dense<0.000000e+00> : vector<8x64xf32>
    %537 = tpu.matmul %535, %536, %cst_268 {dimension_numbers = #tpu.dot_dimension_numbers<[1], [0], [0], [1], [0, 0, 1, 1], [], []>} : vector<8x32xbf16>, vector<32x64xbf16>, vector<8x64xf32> -> vector<8x64xf32>
    %c0_269 = arith.constant 0 : index
    %c0_270 = arith.constant 0 : index
    %538 = vector.load %arg37[%c0_269, %c0_270] : memref<1x64xf32, #tpu.memory_space<vmem>>, vector<1x64xf32>
    %539 = vector.broadcast %538 : vector<1x64xf32> to vector<8x64xf32>
    %540 = arith.addf %537, %539 : vector<8x64xf32>
    %cst_271 = arith.constant 0.000000e+00 : f32
    %541 = vector.broadcast %cst_271 : f32 to vector<8x64xf32>
    %542 = arith.maximumf %540, %541 : vector<8x64xf32>
    %543 = arith.truncf %542 : vector<8x64xf32> to vector<8x64xbf16>
    %c0_272 = arith.constant 0 : index
    %c0_273 = arith.constant 0 : index
    %544 = vector.load %arg38[%c0_272, %c0_273] : memref<64x32xbf16, #tpu.memory_space<vmem>>, vector<64x32xbf16>
    %cst_274 = arith.constant dense<0.000000e+00> : vector<8x32xf32>
    %545 = tpu.matmul %543, %544, %cst_274 {dimension_numbers = #tpu.dot_dimension_numbers<[1], [0], [0], [1], [0, 0, 1, 1], [], []>} : vector<8x64xbf16>, vector<64x32xbf16>, vector<8x32xf32> -> vector<8x32xf32>
    %c0_275 = arith.constant 0 : index
    %c0_276 = arith.constant 0 : index
    %546 = vector.load %arg39[%c0_275, %c0_276] : memref<1x32xf32, #tpu.memory_space<vmem>>, vector<1x32xf32>
    %547 = vector.broadcast %546 : vector<1x32xf32> to vector<8x32xf32>
    %548 = arith.addf %545, %547 : vector<8x32xf32>
    %549 = arith.addf %534, %548 : vector<8x32xf32>
    %cst_277 = arith.constant dense<0.000000e+00> : vector<8xf32>
    %550 = vector.multi_reduction <add>, %549, %cst_277 [1] : vector<8x32xf32> to vector<8xf32>
    %551 = vector.shape_cast %550 : vector<8xf32> to vector<8x1xf32>
    %cst_278 = arith.constant 3.200000e+01 : f32
    %552 = vector.broadcast %cst_278 : f32 to vector<8x1xf32>
    %553 = arith.divf %551, %552 : vector<8x1xf32>
    %554 = vector.broadcast %553 : vector<8x1xf32> to vector<8x32xf32>
    %555 = arith.subf %549, %554 : vector<8x32xf32>
    %556 = arith.mulf %555, %555 : vector<8x32xf32>
    %cst_279 = arith.constant dense<0.000000e+00> : vector<8xf32>
    %557 = vector.multi_reduction <add>, %556, %cst_279 [1] : vector<8x32xf32> to vector<8xf32>
    %558 = vector.shape_cast %557 : vector<8xf32> to vector<8x1xf32>
    %cst_280 = arith.constant 3.200000e+01 : f32
    %559 = vector.broadcast %cst_280 : f32 to vector<8x1xf32>
    %560 = arith.divf %558, %559 : vector<8x1xf32>
    %561 = vector.broadcast %553 : vector<8x1xf32> to vector<8x32xf32>
    %562 = arith.subf %549, %561 : vector<8x32xf32>
    %cst_281 = arith.constant 9.99999974E-6 : f32
    %563 = vector.broadcast %cst_281 : f32 to vector<8x1xf32>
    %564 = arith.addf %560, %563 : vector<8x1xf32>
    %565 = math.rsqrt %564 : vector<8x1xf32>
    %566 = vector.broadcast %565 : vector<8x1xf32> to vector<8x32xf32>
    %567 = arith.mulf %562, %566 : vector<8x32xf32>
    %c0_282 = arith.constant 0 : index
    %c0_283 = arith.constant 0 : index
    %568 = vector.load %arg40[%c0_282, %c0_283] : memref<1x32xf32, #tpu.memory_space<vmem>>, vector<1x32xf32>
    %569 = vector.broadcast %568 : vector<1x32xf32> to vector<8x32xf32>
    %570 = arith.mulf %567, %569 : vector<8x32xf32>
    %c0_284 = arith.constant 0 : index
    %c0_285 = arith.constant 0 : index
    %571 = vector.load %arg41[%c0_284, %c0_285] : memref<1x32xf32, #tpu.memory_space<vmem>>, vector<1x32xf32>
    %572 = vector.broadcast %571 : vector<1x32xf32> to vector<8x32xf32>
    %573 = arith.addf %570, %572 : vector<8x32xf32>
    %c0_286 = arith.constant 0 : index
    %c0_287 = arith.constant 0 : index
    %c0_288 = arith.constant 0 : index
    %574 = vector.load %arg42[%c0_286, %c0_287, %c0_288] : memref<1x8x32xf32, #tpu.memory_space<vmem>>, vector<1x8x32xf32>
    %575 = vector.shape_cast %574 : vector<1x8x32xf32> to vector<8x32xf32>
    %576 = vector.shape_cast %573 : vector<8x32xf32> to vector<1x8x32xf32>
    tpu.vector_store %arg42[%c0_286, %c0_287, %c0_288], %576 {strides = array<i32>} : memref<1x8x32xf32, #tpu.memory_space<vmem>>, vector<1x8x32xf32>,
    return
  }
  func.func @transform_0(%arg0: i32) -> (i32, i32, i32) {
    %c0_i32 = arith.constant 0 : i32
    %c0_i32_0 = arith.constant 0 : i32
    %c0_i32_1 = arith.constant 0 : i32
    return %arg0, %c0_i32, %c0_i32_0 : i32, i32, i32
  }
  func.func @transform_1(%arg0: i32) -> (i32, i32, i32) {
    %c0_i32 = arith.constant 0 : i32
    %c0_i32_0 = arith.constant 0 : i32
    %c0_i32_1 = arith.constant 0 : i32
    return %arg0, %c0_i32, %c0_i32_0 : i32, i32, i32
  }
  func.func @transform_2(%arg0: i32) -> (i32, i32) {
    %c0_i32 = arith.constant 0 : i32
    %c0_i32_0 = arith.constant 0 : i32
    %c0_i32_1 = arith.constant 0 : i32
    return %c0_i32, %c0_i32_0 : i32, i32
  }
  func.func @transform_3(%arg0: i32) -> (i32, i32) {
    %c0_i32 = arith.constant 0 : i32
    %c0_i32_0 = arith.constant 0 : i32
    %c0_i32_1 = arith.constant 0 : i32
    return %c0_i32, %c0_i32_0 : i32, i32
  }
  func.func @transform_4(%arg0: i32) -> (i32, i32) {
    %c0_i32 = arith.constant 0 : i32
    %c0_i32_0 = arith.constant 0 : i32
    %c0_i32_1 = arith.constant 0 : i32
    return %c0_i32, %c0_i32_0 : i32, i32
  }
  func.func @transform_5(%arg0: i32) -> (i32, i32) {
    %c0_i32 = arith.constant 0 : i32
    %c0_i32_0 = arith.constant 0 : i32
    %c0_i32_1 = arith.constant 0 : i32
    return %c0_i32, %c0_i32_0 : i32, i32
  }
  func.func @transform_6(%arg0: i32) -> (i32, i32) {
    %c0_i32 = arith.constant 0 : i32
    %c0_i32_0 = arith.constant 0 : i32
    %c0_i32_1 = arith.constant 0 : i32
    return %c0_i32, %c0_i32_0 : i32, i32
  }
  func.func @transform_7(%arg0: i32) -> (i32, i32) {
    %c0_i32 = arith.constant 0 : i32
    %c0_i32_0 = arith.constant 0 : i32
    %c0_i32_1 = arith.constant 0 : i32
    return %c0_i32, %c0_i32_0 : i32, i32
  }
  func.func @transform_8(%arg0: i32) -> (i32, i32, i32) {
    %c0_i32 = arith.constant 0 : i32
    %c0_i32_0 = arith.constant 0 : i32
    %c0_i32_1 = arith.constant 0 : i32
    %c0_i32_2 = arith.constant 0 : i32
    return %c0_i32, %c0_i32_0, %c0_i32_1 : i32, i32, i32
  }
  func.func @transform_9(%arg0: i32) -> (i32, i32) {
    %c0_i32 = arith.constant 0 : i32
    %c0_i32_0 = arith.constant 0 : i32
    %c0_i32_1 = arith.constant 0 : i32
    return %c0_i32, %c0_i32_0 : i32, i32
  }
  func.func @transform_10(%arg0: i32) -> (i32, i32) {
    %c0_i32 = arith.constant 0 : i32
    %c0_i32_0 = arith.constant 0 : i32
    %c0_i32_1 = arith.constant 0 : i32
    return %c0_i32, %c0_i32_0 : i32, i32
  }
  func.func @transform_11(%arg0: i32) -> (i32, i32) {
    %c0_i32 = arith.constant 0 : i32
    %c0_i32_0 = arith.constant 0 : i32
    %c0_i32_1 = arith.constant 0 : i32
    return %c0_i32, %c0_i32_0 : i32, i32
  }
  func.func @transform_12(%arg0: i32) -> (i32, i32) {
    %c0_i32 = arith.constant 0 : i32
    %c0_i32_0 = arith.constant 0 : i32
    %c0_i32_1 = arith.constant 0 : i32
    return %c0_i32, %c0_i32_0 : i32, i32
  }
  func.func @transform_13(%arg0: i32) -> (i32, i32) {
    %c0_i32 = arith.constant 0 : i32
    %c0_i32_0 = arith.constant 0 : i32
    %c0_i32_1 = arith.constant 0 : i32
    return %c0_i32, %c0_i32_0 : i32, i32
  }
  func.func @transform_14(%arg0: i32) -> (i32, i32) {
    %c0_i32 = arith.constant 0 : i32
    %c0_i32_0 = arith.constant 0 : i32
    %c0_i32_1 = arith.constant 0 : i32
    return %c0_i32, %c0_i32_0 : i32, i32
  }
  func.func @transform_15(%arg0: i32) -> (i32, i32) {
    %c0_i32 = arith.constant 0 : i32
    %c0_i32_0 = arith.constant 0 : i32
    %c0_i32_1 = arith.constant 0 : i32
    return %c0_i32, %c0_i32_0 : i32, i32
  }
  func.func @transform_16(%arg0: i32) -> (i32, i32) {
    %c0_i32 = arith.constant 0 : i32
    %c0_i32_0 = arith.constant 0 : i32
    %c0_i32_1 = arith.constant 0 : i32
    return %c0_i32, %c0_i32_0 : i32, i32
  }
  func.func @transform_17(%arg0: i32) -> (i32, i32) {
    %c0_i32 = arith.constant 0 : i32
    %c0_i32_0 = arith.constant 0 : i32
    %c0_i32_1 = arith.constant 0 : i32
    return %c0_i32, %c0_i32_0 : i32, i32
  }
  func.func @transform_18(%arg0: i32) -> (i32, i32) {
    %c0_i32 = arith.constant 0 : i32
    %c0_i32_0 = arith.constant 0 : i32
    %c0_i32_1 = arith.constant 0 : i32
    return %c0_i32, %c0_i32_0 : i32, i32
  }
  func.func @transform_19(%arg0: i32) -> (i32, i32) {
    %c0_i32 = arith.constant 0 : i32
    %c0_i32_0 = arith.constant 0 : i32
    %c0_i32_1 = arith.constant 0 : i32
    return %c0_i32, %c0_i32_0 : i32, i32
  }
  func.func @transform_20(%arg0: i32) -> (i32, i32) {
    %c0_i32 = arith.constant 0 : i32
    %c0_i32_0 = arith.constant 0 : i32
    %c0_i32_1 = arith.constant 0 : i32
    return %c0_i32, %c0_i32_0 : i32, i32
  }
  func.func @transform_21(%arg0: i32) -> (i32, i32) {
    %c0_i32 = arith.constant 0 : i32
    %c0_i32_0 = arith.constant 0 : i32
    %c0_i32_1 = arith.constant 0 : i32
    return %c0_i32, %c0_i32_0 : i32, i32
  }
  func.func @transform_22(%arg0: i32) -> (i32, i32) {
    %c0_i32 = arith.constant 0 : i32
    %c0_i32_0 = arith.constant 0 : i32
    %c0_i32_1 = arith.constant 0 : i32
    return %c0_i32, %c0_i32_0 : i32, i32
  }
  func.func @transform_23(%arg0: i32) -> (i32, i32, i32) {
    %c0_i32 = arith.constant 0 : i32
    %c0_i32_0 = arith.constant 0 : i32
    %c0_i32_1 = arith.constant 0 : i32
    %c0_i32_2 = arith.constant 0 : i32
    return %c0_i32, %c0_i32_0, %c0_i32_1 : i32, i32, i32
  }
  func.func @transform_24(%arg0: i32) -> (i32, i32) {
    %c0_i32 = arith.constant 0 : i32
    %c0_i32_0 = arith.constant 0 : i32
    %c0_i32_1 = arith.constant 0 : i32
    return %c0_i32, %c0_i32_0 : i32, i32
  }
  func.func @transform_25(%arg0: i32) -> (i32, i32) {
    %c0_i32 = arith.constant 0 : i32
    %c0_i32_0 = arith.constant 0 : i32
    %c0_i32_1 = arith.constant 0 : i32
    return %c0_i32, %c0_i32_0 : i32, i32
  }
  func.func @transform_26(%arg0: i32) -> (i32, i32) {
    %c0_i32 = arith.constant 0 : i32
    %c0_i32_0 = arith.constant 0 : i32
    %c0_i32_1 = arith.constant 0 : i32
    return %c0_i32, %c0_i32_0 : i32, i32
  }
  func.func @transform_27(%arg0: i32) -> (i32, i32) {
    %c0_i32 = arith.constant 0 : i32
    %c0_i32_0 = arith.constant 0 : i32
    %c0_i32_1 = arith.constant 0 : i32
    return %c0_i32, %c0_i32_0 : i32, i32
  }
  func.func @transform_28(%arg0: i32) -> (i32, i32) {
    %c0_i32 = arith.constant 0 : i32
    %c0_i32_0 = arith.constant 0 : i32
    %c0_i32_1 = arith.constant 0 : i32
    return %c0_i32, %c0_i32_0 : i32, i32
  }
  func.func @transform_29(%arg0: i32) -> (i32, i32) {
    %c0_i32 = arith.constant 0 : i32
    %c0_i32_0 = arith.constant 0 : i32
    %c0_i32_1 = arith.constant 0 : i32
    return %c0_i32, %c0_i32_0 : i32, i32
  }
  func.func @transform_30(%arg0: i32) -> (i32, i32) {
    %c0_i32 = arith.constant 0 : i32
    %c0_i32_0 = arith.constant 0 : i32
    %c0_i32_1 = arith.constant 0 : i32
    return %c0_i32, %c0_i32_0 : i32, i32
  }
  func.func @transform_31(%arg0: i32) -> (i32, i32) {
    %c0_i32 = arith.constant 0 : i32
    %c0_i32_0 = arith.constant 0 : i32
    %c0_i32_1 = arith.constant 0 : i32
    return %c0_i32, %c0_i32_0 : i32, i32
  }
  func.func @transform_32(%arg0: i32) -> (i32, i32, i32) {
    %c0_i32 = arith.constant 0 : i32
    %c0_i32_0 = arith.constant 0 : i32
    %c0_i32_1 = arith.constant 0 : i32
    %c0_i32_2 = arith.constant 0 : i32
    return %c0_i32, %c0_i32_0, %c0_i32_1 : i32, i32, i32
  }
  func.func @transform_33(%arg0: i32) -> (i32, i32) {
    %c0_i32 = arith.constant 0 : i32
    %c0_i32_0 = arith.constant 0 : i32
    %c0_i32_1 = arith.constant 0 : i32
    return %c0_i32, %c0_i32_0 : i32, i32
  }
  func.func @transform_34(%arg0: i32) -> (i32, i32) {
    %c0_i32 = arith.constant 0 : i32
    %c0_i32_0 = arith.constant 0 : i32
    %c0_i32_1 = arith.constant 0 : i32
    return %c0_i32, %c0_i32_0 : i32, i32
  }
  func.func @transform_35(%arg0: i32) -> (i32, i32) {
    %c0_i32 = arith.constant 0 : i32
    %c0_i32_0 = arith.constant 0 : i32
    %c0_i32_1 = arith.constant 0 : i32
    return %c0_i32, %c0_i32_0 : i32, i32
  }
  func.func @transform_36(%arg0: i32) -> (i32, i32) {
    %c0_i32 = arith.constant 0 : i32
    %c0_i32_0 = arith.constant 0 : i32
    %c0_i32_1 = arith.constant 0 : i32
    return %c0_i32, %c0_i32_0 : i32, i32
  }
  func.func @transform_37(%arg0: i32) -> (i32, i32) {
    %c0_i32 = arith.constant 0 : i32
    %c0_i32_0 = arith.constant 0 : i32
    %c0_i32_1 = arith.constant 0 : i32
    return %c0_i32, %c0_i32_0 : i32, i32
  }
  func.func @transform_38(%arg0: i32) -> (i32, i32) {
    %c0_i32 = arith.constant 0 : i32
    %c0_i32_0 = arith.constant 0 : i32
    %c0_i32_1 = arith.constant 0 : i32
    return %c0_i32, %c0_i32_0 : i32, i32
  }
  func.func @transform_39(%arg0: i32) -> (i32, i32) {
    %c0_i32 = arith.constant 0 : i32
    %c0_i32_0 = arith.constant 0 : i32
    %c0_i32_1 = arith.constant 0 : i32
    return %c0_i32, %c0_i32_0 : i32, i32
  }
  func.func @transform_40(%arg0: i32) -> (i32, i32) {
    %c0_i32 = arith.constant 0 : i32
    %c0_i32_0 = arith.constant 0 : i32
    %c0_i32_1 = arith.constant 0 : i32
    return %c0_i32, %c0_i32_0 : i32, i32
  }
  func.func @transform_41(%arg0: i32) -> (i32, i32, i32) {
    %c0_i32 = arith.constant 0 : i32
    %c0_i32_0 = arith.constant 0 : i32
    %c0_i32_1 = arith.constant 0 : i32
    return %arg0, %c0_i32, %c0_i32_0 : i32, i32, i32
  }
}

</mosaic_0001>

<bundles_post_ra>
// kernel: tpu_custom_call.1
= control target key start
LH: loop header
LB: loop body
LE: loop exit
PB: predicated region body
PF: predicated region fallthrough
CT: control target
= control target key end

     0   :  { %s5150_s6 = smov 1   ;;  %s5151_s10 = smov 2   ;;  %s6225_s0 = inlined_call_operand.smem [shape: u32[42], index: -1, kind: input, shape index: {}] }
   0x1   :  { %s5225_s5 = sld [smem:[%s6225_s0]]   ;;  %s5152_s14 = smov 3  }
   0x2   :  { %s5230_s9 = sld [smem:[%s6225_s0 + %s5150_s6]]   ;;  %s5153_s18 = smov 4  }
   0x3   :  { %s5235_s13 = sld [smem:[%s6225_s0 + %s5151_s10]]   ;;  %s5154_s22 = smov 5  }
   0x4   :  { %s5240_s17 = sld [smem:[%s6225_s0 + %s5152_s14]]   ;;  %s5155_s26 = smov 6  }
   0x5   :  { %s5245_s21 = sld [smem:[%s6225_s0 + %s5153_s18]]   ;;  %s5156_s30 = smov 7  }
   0x6   :  { %s5250_s25 = sld [smem:[%s6225_s0 + %s5154_s22]]   ;;  %s5157_s4 = smov 8  }
   0x7   :  { %6262 = sst [smem:[#allocation39_spill]] %s5225_s5  ;;  %s5158_s10 = smov 9  }
   0x8   :  { %6263 = sst [smem:[#allocation40_spill]] %s5230_s9  ;;  %s5159_s15 = smov 10  }
   0x9   :  { %6264 = sst [smem:[#allocation41_spill]] %s5235_s13  ;;  %s5160_s20 = smov 11  }
   0xa   :  { %6265 = sst [smem:[#allocation42_spill]] %s5240_s17  ;;  %s5162_s1 = smov 13  }
   0xb   :  { %6266 = sst [smem:[#allocation43_spill]] %s5245_s21  ;;  %s5163_s7 = smov 14  }
   0xc   :  { %6267 = sst [smem:[#allocation44_spill]] %s5250_s25  ;;  %s5165_s22 = smov 16  }
   0xd   :  { %s5255_s29 = sld [smem:[%s6225_s0 + %s5155_s26]]   ;;  %s5161_s26 = smov 12  }
   0xe   :  { %s5260_s3 = sld [smem:[%s6225_s0 + %s5156_s30]]   ;;  %s5166_s28 = smov 17  }
   0xf   :  { %s5265_s8 = sld [smem:[%s6225_s0 + %s5157_s4]]  }
  0x10   :  { %s5270_s14 = sld [smem:[%s6225_s0 + %s5158_s10]]  }
  0x11   :  { %s5275_s19 = sld [smem:[%s6225_s0 + %s5159_s15]]   ;;  %s5164_s15 = smov 15  }
  0x12   :  { %s5280_s24 = sld [smem:[%s6225_s0 + %s5160_s20]]  }
  0x13   :  { %6268 = sst [smem:[#allocation45_spill]] %s5255_s29 }
  0x14   :  { %6269 = sst [smem:[#allocation46_spill]] %s5260_s3 }
  0x15   :  { %6270 = sst [smem:[#allocation47_spill]] %s5265_s8 }
  0x16   :  { %6271 = sst [smem:[#allocation48_spill]] %s5270_s14 }
  0x17   :  { %6272 = sst [smem:[#allocation49_spill]] %s5275_s19 }
  0x18   :  { %s5285_s30 = sld [smem:[%s6225_s0 + %s5161_s26]]  }
  0x19   :  { %s5290_s6 = sld [smem:[%s6225_s0 + %s5162_s1]]  }
  0x1a   :  { %s5295_s12 = sld [smem:[%s6225_s0 + %s5163_s7]]   ;;  %s5167_s7 = smov 18  }
  0x1b   :  { %s5300_s20 = sld [smem:[%s6225_s0 + %s5164_s15]]   ;;  %s5168_s15 = smov 19  }
  0x1c   :  { %s5305_s27 = sld [smem:[%s6225_s0 + %s5165_s22]]   ;;  %s5169_s22 = smov 20  }
  0x1d   :  { %s5310_s4 = sld [smem:[%s6225_s0 + %s5166_s28]]   ;;  %s5170_s28 = smov 21  }
  0x1e   :  { %6273 = sst [smem:[#allocation50_spill]] %s5285_s30 }
  0x1f   :  { %6274 = sst [smem:[#allocation51_spill]] %s5290_s6 }
  0x20   :  { %6275 = sst [smem:[#allocation52_spill]] %s5295_s12 }
  0x21   :  { %6276 = sst [smem:[#allocation53_spill]] %s5300_s20 }
  0x22   :  { %6277 = sst [smem:[#allocation54_spill]] %s5305_s27 }
  0x23   :  { %6278 = sst [smem:[#allocation55_spill]] %s5310_s4 }
  0x24   :  { %s5315_s12 = sld [smem:[%s6225_s0 + %s5167_s7]]   ;;  %s5171_s7 = smov 22  }
  0x25   :  { %s5320_s20 = sld [smem:[%s6225_s0 + %s5168_s15]]   ;;  %s5172_s15 = smov 23  }
  0x26   :  { %s5325_s27 = sld [smem:[%s6225_s0 + %s5169_s22]]   ;;  %s5173_s22 = smov 24  }
  0x27   :  { %s5330_s30 = sld [smem:[%s6225_s0 + %s5170_s28]]   ;;  %s5174_s28 = smov 25  }
  0x28   :  { %s5335_s19 = sld [smem:[%s6225_s0 + %s5171_s7]]   ;;  %s5175_s7 = smov 26  }
  0x29   :  { %s5340_s14 = sld [smem:[%s6225_s0 + %s5172_s15]]   ;;  %s5176_s15 = smov 27  }
  0x2a   :  { %6279 = sst [smem:[#allocation56_spill]] %s5315_s12 }
  0x2b   :  { %s5345_s6 = sld [smem:[%s6225_s0 + %s5173_s22]]   ;;  %s5177_s22 = smov 28  }
  0x2c   :  { %s5350_s3 = sld [smem:[%s6225_s0 + %s5174_s28]]   ;;  %s5178_s28 = smov 29  }
  0x2d   :  { %s5355_s5 = sld [smem:[%s6225_s0 + %s5175_s7]]   ;;  %s5179_s7 = smov 30  }
  0x2e   :  { %s5365_s29 = sld [smem:[%s6225_s0 + %s5177_s22]]   ;;  %s5181_s22 = smov 32  }
  0x2f   :  { %6280 = sst [smem:[#allocation57_spill]] %s5340_s14 }
  0x30   :  { %s5360_s14 = sld [smem:[%s6225_s0 + %s5176_s15]]   ;;  %s5180_s15 = smov 31  }
  0x31   :  { %6281 = sst [smem:[#allocation58_spill]] %s5345_s6 }
  0x32   :  { %6282 = sst [smem:[#allocation59_spill]] %s5350_s3 }
  0x33   :  { %6283 = sst [smem:[#allocation60_spill]] %s5355_s5 }
  0x34   :  { %s5370_s8 = sld [smem:[%s6225_s0 + %s5178_s28]]   ;;  %s5182_s28 = smov 33  }
  0x35   :  { %s5375_s25 = sld [smem:[%s6225_s0 + %s5179_s7]]   ;;  %s5183_s7 = smov 34  }
  0x36   :  { %s5380_s17 = sld [smem:[%s6225_s0 + %s5180_s15]]   ;;  %s5184_s15 = smov 35  }
  0x37   :  { %s5385_s21 = sld [smem:[%s6225_s0 + %s5181_s22]]   ;;  %s5185_s22 = smov 36  }
  0x38   :  { %s5390_s13 = sld [smem:[%s6225_s0 + %s5182_s28]]   ;;  %s5186_s28 = smov 37  }
  0x39   :  { %s5400_s9 = sld [smem:[%s6225_s0 + %s5184_s15]]   ;;  %s5188_s15 = smov 39  }
  0x3a   :  { %6284 = sst [smem:[#allocation61_spill]] %s5370_s8 }
  0x3b   :  { %6285 = sst [smem:[#allocation62_spill]] %s5375_s25 }
  0x3c   :  { %s5395_s25 = sld [smem:[%s6225_s0 + %s5183_s7]]   ;;  %s5187_s7 = smov 38  }
  0x3d   :  { %6286 = sst [smem:[#allocation63_spill]] %s5385_s21 }
  0x3e   :  { %6287 = sst [smem:[#allocation64_spill]] %s5390_s13 }
  0x3f   :  { %6289 = sst [smem:[#allocation66_spill]] %s5400_s9 }
  0x40   :  { %s5405_s21 = sld [smem:[%s6225_s0 + %s5185_s22]]   ;;  %s5189_s22 = smov 40  }
  0x41   :  { %s5410_s13 = sld [smem:[%s6225_s0 + %s5186_s28]]   ;;  %s5190_s28 = smov 41  }
  0x42   :  { %6288 = sst [smem:[#allocation65_spill]] %s5395_s25 }
  0x43   :  { %s5415_s25 = sld [smem:[%s6225_s0 + %s5187_s7]]  }
  0x44   :  { %s5420_s9 = sld [smem:[%s6225_s0 + %s5188_s15]]  }
  0x46   :  { %6290 = sst [smem:[#allocation67_spill]] %s5405_s21 }
  0x47   :  { %6291 = sst [smem:[#allocation68_spill]] %s5410_s13 }
  0x48   :  { %s5425_s21 = sld [smem:[%s6225_s0 + %s5189_s22]]  }
  0x49   :  { %s5430_s13 = sld [smem:[%s6225_s0 + %s5190_s28]]  }
  0x4a   :  { %6292 = sst [smem:[#allocation69_spill]] %s5420_s9 }
  0x4e   :  { %6293 = sst [smem:[#allocation70_spill]] %s5425_s21 }
  0x4f   :  { %6294 = sst [smem:[#allocation71_spill]] %s5430_s13 }
  0x50   :  { %88 = vsyncpa [#allocation6], 0 }
  0x51   :  { %89 = vsyncpa [#allocation9], 0 }
  0x52   :  { %90 = vsyncpa [#allocation12], 0 }
  0x53   :  { %91 = vsyncpa [#allocation15], 0 }
  0x54   :  { %92 = vsyncpa [#allocation18], 0 }
  0x55   :  { %93 = vsyncpa [#allocation21], 0 }
  0x56   :  { %94 = vsyncpa [#allocation24], 0 }
  0x57   :  { %95 = vsyncpa [#allocation27], 0 }
  0x58   :  { %96 = vsyncpa [#allocation7], 0 }
  0x59   :  { %98 = vsyncpa [#allocation7 + $0x1], 0  ;;  %s5432_s7 = smov 0   ;;  %s5434_s10 = smov 0  }
  0x5a   :  { %s5436_s11 = smov 0   ;;  %s5438_s15 = smov 0  }
  0x5b LB: > { %s6295_s12 = sld [smem:[#allocation56_spill]]  ;;  %s5453_s0 = sadd.s32 4294967295, %s5148_s15   ;;  %s5140_s10 = sphi %s5434_s10, %s6361_s10   ;;  %s5136_s7 = sphi %s5432_s7, %s6360_s7   ;;  %s5148_s15 = sphi %s5438_s15, %s6357_s15   ;;  %s5144_s11 = sphi %s5436_s11, %s6359_s11  }
  0x5c   : > { %s6296_s8 = sld [smem:[#allocation61_spill]]  ;;  %s3928_s16 = sadd.s32 4294967294, %s5148_s15  }
  0x5d   : > { %s6297_s6 = sld [smem:[#allocation58_spill]]  ;;  %s5457_s18 = sadd.s32 1, %s5148_s15  }
  0x5e   : > { %s6298_s5 = sld [smem:[#allocation60_spill]]  ;;  %s982_s22 = sadd.s32 1, %s5144_s11 }
  0x5f   : > { %s6299_s3 = sld [smem:[#allocation59_spill]]  ;;  %s979_s23 = ssub.s32 %s5148_s15, %s5457_s18 }
  0x60   : > { %s6300_s4 = sld [smem:[#allocation55_spill]]  ;;  %p992_p0 = scmp.ne.s32.totalorder %s5144_s11, %s5140_s10 }
  0x61   : > { %6301 = sst [smem:[#allocation72_spill]] %s5136_s7  ;;  %p980_p1 = scmp.eq.s32.totalorder %s979_s23, 0 }
  0x62   : > { %6302 = sst [smem:[#allocation73_spill]] %s5144_s11  ;;  %p993_p2 = scmp.eq.s32.totalorder %s5453_s0, 1 }
  0x63   : > { %6303 = sst [smem:[#allocation74_spill]] %s5148_s15  ;;  %p998_p3 = scmp.ne.s32.totalorder %s5140_s10, %s5136_s7 }
  0x64   : > { %6304 = sst [smem:[#allocation75_spill]] %s5457_s18  ;;  %p999_p4 = scmp.eq.s32.totalorder %s3928_s16, 1 }
  0x65   : > { %s5468_s26 = scalar_select %p980_p1, %s5144_s11, %s982_s22  }
  0x66   : > { %p5470_p5 = por %p993_p2, %p992_p0  ;;  %p5474_p6 = por %p999_p4, %p998_p3 }
  0x67   : > { %6305 = sst [smem:[#allocation76_spill]] %s5468_s26  ;;  %p3929_p7 = scmp.ge.s32.totalorder %s5148_s15, 1 }
  0x68   : > { %s6306_s28 = scalar_select %p5470_p5, 1, 0 }
  0x69   : > { %s6308_s1 = scalar_select %p5474_p6, 1, 0 }
  0x6a   : > { %6307 = sst [smem:[#allocation77_spill]] %s6306_s28  ;;  %p1006_p8 = scmp.lt.s32.totalorder %s5148_s15, 3 }
  0x6b   : > { %6309 = sst [smem:[#allocation78_spill]] %s6308_s1  ;;  %p4280_p9 = scmp.eq.s32.totalorder %s5453_s0, 0 }
  0x6c   : > { %p5481_p10 = pnand %p3929_p7, %p1006_p8  ;;  %s1073_s23 = sshll.u32 %s6300_s4, 4  ;;  %s1074_s23 = int_to_ptr.hbm [resolvable:$true] %s1073_s23 }
  0x6d   : > { %s1099_s16 = sshll.u32 %s5320_s20, 4  ;;  %s5191_s26 = smov [#allocation8]   ;;  %s5495_s16 = int_to_ptr.hbm [resolvable:$true] %s1099_s16 }
  0x6e   : > { %p4230_p11 = pneg %p5481_p10  ;;  %s1075_s11 = sshll.u32 %s5191_s26, 4  ;;  %s1076_s11 = int_to_ptr.vmem [resolvable:$true] %s1075_s11 }
  0x6f   : > { %s4604_s18 = sshra.s32 %s1074_s23, 4  ;;  %s4611_s15 = scalar_lea.hbm %s6300_s4, 16  ;;  %s4605_s18 = int_to_ptr.hbm [resolvable:$true] %s4604_s18 }
  0x70   : > { %p5491_p12 = pnand %p4280_p9, %p4230_p11  ;;  %s4606_s1 = scalar_lea.hbm %s4605_s18, 16 }
  0x71   : > { %p4607_p13 = scmp.ne.s32.totalorder %s4605_s18, %s4606_s1  ;;  %p4612_p3 = scmp.lt.s32.totalorder %s4605_s18, %s6300_s4 }
  0x72   : > { %p5499_p0 = pneg %p5491_p12  ;;  %p4613_p4 = scmp.lt.s32.totalorder %s4611_s15, %s4606_s1 }
  0x74   : > { %p4609_p1 = pnand %p5499_p0, %p4607_p13  ;;  %p4614_p7 = por %p4613_p4, %p4612_p3 }
  0x76   : > { %p4610_p2 = pneg %p4609_p1 }
  0x78   : > { %p4615_p8 = pnand %p4614_p7, %p4610_p2 }
  0x7a   : > { %4618 = shalt.err (!%p4615_p8)
}
  0x7b   : > { %s6246_s26 = smov 64   ;;  %s6247_s28 = smov 4  }
  0x7c   : > { %4236 = dma.hbm_to_vmem [thread:$0]  (!%p5491_p12), %s1074_s23, 256, %s1076_s11, [#allocation9], %s6246_s26, %s6246_s26, %s6247_s28  }
  0x7d   : > { %s5194_s21 = smov [#allocation11]   ;;  %s1125_s18 = sshll.u32 %s5330_s30, 4  ;;  %s5513_s18 = int_to_ptr.hbm [resolvable:$true] %s1125_s18 }
  0x7e   : > { %s1101_s13 = sshll.u32 %s5194_s21, 4  ;;  %s4634_s15 = sshra.s32 %s5495_s16, 4  ;;  %s1102_s13 = int_to_ptr.vmem [resolvable:$true] %s1101_s13  ;;  %s4635_s15 = int_to_ptr.hbm [resolvable:$true] %s4634_s15 }
  0x7f   : > { %s4636_s1 = scalar_lea.hbm %s4635_s15, 16  ;;  %s4641_s4 = scalar_lea.hbm %s5320_s20, 16 }
  0x80   : > { %p4637_p11 = scmp.ne.s32.totalorder %s4635_s15, %s4636_s1  ;;  %p4642_p2 = scmp.lt.s32.totalorder %s4635_s15, %s5320_s20 }
  0x81   : > { %p4643_p3 = scmp.lt.s32.totalorder %s4641_s4, %s4636_s1 }
  0x82   : > { %p4639_p13 = pnand %p4637_p11, %p5499_p0 }
  0x83   : > { %p4644_p4 = por %p4643_p3, %p4642_p2 }
  0x84   : > { %p4640_p1 = pneg %p4639_p13 }
  0x86   : > { %p4645_p7 = pnand %p4644_p4, %p4640_p1 }
  0x88   : > { %4648 = shalt.err (!%p4645_p7)
}
  0x89   : > { %4242 = dma.hbm_to_vmem [thread:$0]  (!%p5491_p12), %s5495_s16, 256, %s1102_s13, [#allocation12], %s6246_s26, %s6246_s26, %s6247_s28  }
  0x8a   : > { %s1155_s21 = sshll.u32 %s6297_s6, 4  ;;  %s5195_s11 = smov [#allocation14]   ;;  %s5527_s21 = int_to_ptr.hbm [resolvable:$true] %s1155_s21 }
  0x8b   : > { %s1127_s23 = sshll.u32 %s5195_s11, 4  ;;  %s4664_s4 = sshra.s32 %s5513_s18, 4  ;;  %s1128_s23 = int_to_ptr.vmem [resolvable:$true] %s1127_s23  ;;  %s4665_s4 = int_to_ptr.hbm [resolvable:$true] %s4664_s4 }
  0x8c   : > { %s4666_s15 = scalar_lea.hbm %s4665_s4, 16  ;;  %s4671_s1 = scalar_lea.hbm %s5330_s30, 16 }
  0x8d   : > { %p4667_p8 = scmp.ne.s32.totalorder %s4665_s4, %s4666_s15  ;;  %p4672_p1 = scmp.lt.s32.totalorder %s4665_s4, %s5330_s30 }
  0x8e   : > { %p4673_p2 = scmp.lt.s32.totalorder %s4671_s1, %s4666_s15 }
  0x8f   : > { %p4669_p11 = pnand %p4667_p8, %p5499_p0 }
  0x90   : > { %p4674_p3 = por %p4673_p2, %p4672_p1 }
  0x91   : > { %p4670_p13 = pneg %p4669_p11 }
  0x93   : > { %p4675_p4 = pnand %p4674_p3, %p4670_p13 }
  0x95   : > { %4678 = shalt.err (!%p4675_p4)
}
  0x96   : > { %4248 = dma.hbm_to_vmem [thread:$0]  (!%p5491_p12), %s5513_s18, 256, %s1128_s23, [#allocation15], %s6246_s26, %s6246_s26, %s6247_s28  }
  0x97   : > { %s5196_s13 = smov [#allocation17]   ;;  %s1178_s11 = sshll.u32 %s6298_s5, 4  ;;  %s5541_s11 = int_to_ptr.hbm [resolvable:$true] %s1178_s11 }
  0x98   : > { %s1157_s16 = sshll.u32 %s5196_s13, 4  ;;  %s4694_s4 = sshra.s32 %s5527_s21, 4  ;;  %s1158_s16 = int_to_ptr.vmem [resolvable:$true] %s1157_s16  ;;  %s4695_s4 = int_to_ptr.hbm [resolvable:$true] %s4694_s4 }
  0x99   : > { %s4696_s15 = scalar_lea.hbm %s4695_s4, 1  ;;  %s4701_s1 = scalar_lea.hbm %s6297_s6, 1 }
  0x9a   : > { %p4697_p7 = scmp.ne.s32.totalorder %s4695_s4, %s4696_s15  ;;  %p4702_p13 = scmp.lt.s32.totalorder %s4695_s4, %s6297_s6 }
  0x9b   : > { %p4703_p1 = scmp.lt.s32.totalorder %s4701_s1, %s4696_s15 }
  0x9c   : > { %p4699_p8 = pnand %p4697_p7, %p5499_p0 }
  0x9d   : > { %p4704_p2 = por %p4703_p1, %p4702_p13 }
  0x9e   : > { %p4700_p11 = pneg %p4699_p8 }
  0xa0   : > { %p4705_p3 = pnand %p4704_p2, %p4700_p11 }
  0xa2   : > { %4708 = shalt.err (!%p4705_p3)
}
  0xa3   : > { %4254 = dma.hbm_to_vmem [thread:$0]  (!%p5491_p12), %s5527_s21, 16, %s1158_s16, [#allocation18]  }
  0xa4   : > { %s1204_s18 = sshll.u32 %s5365_s29, 4  ;;  %s5197_s23 = smov [#allocation20]   ;;  %s5552_s18 = int_to_ptr.hbm [resolvable:$true] %s1204_s18 }
  0xa5   : > { %s1180_s13 = sshll.u32 %s5197_s23, 4  ;;  %s4724_s4 = sshra.s32 %s5541_s11, 4  ;;  %s1181_s13 = int_to_ptr.vmem [resolvable:$true] %s1180_s13  ;;  %s4725_s4 = int_to_ptr.hbm [resolvable:$true] %s4724_s4 }
  0xa6   : > { %s4726_s15 = scalar_lea.hbm %s4725_s4, 16  ;;  %s4731_s1 = scalar_lea.hbm %s6298_s5, 16 }
  0xa7   : > { %p4727_p4 = scmp.ne.s32.totalorder %s4725_s4, %s4726_s15  ;;  %p4732_p11 = scmp.lt.s32.totalorder %s4725_s4, %s6298_s5 }
  0xa8   : > { %p4733_p13 = scmp.lt.s32.totalorder %s4731_s1, %s4726_s15 }
  0xa9   : > { %p4729_p7 = pnand %p4727_p4, %p5499_p0 }
  0xaa   : > { %p4734_p1 = por %p4733_p13, %p4732_p11 }
  0xab   : > { %p4730_p8 = pneg %p4729_p7 }
  0xad   : > { %p4735_p2 = pnand %p4734_p1, %p4730_p8 }
  0xaf   : > { %4738 = shalt.err (!%p4735_p2)
}
  0xb0   : > { %4260 = dma.hbm_to_vmem [thread:$0]  (!%p5491_p12), %s5541_s11, 256, %s1181_s13, [#allocation21], %s6246_s26, %s6246_s26, %s6247_s28  }
  0xb1   : > { %s5198_s21 = smov [#allocation23]   ;;  %s1234_s23 = sshll.u32 %s5380_s17, 4  ;;  %s5566_s23 = int_to_ptr.hbm [resolvable:$true] %s1234_s23 }
  0xb2   : > { %s1206_s16 = sshll.u32 %s5198_s21, 4  ;;  %s4754_s4 = sshra.s32 %s5552_s18, 4  ;;  %s1207_s16 = int_to_ptr.vmem [resolvable:$true] %s1206_s16  ;;  %s4755_s4 = int_to_ptr.hbm [resolvable:$true] %s4754_s4 }
  0xb3   : > { %s4756_s15 = scalar_lea.hbm %s4755_s4, 16  ;;  %s4761_s1 = scalar_lea.hbm %s5365_s29, 16 }
  0xb4   : > { %p4757_p3 = scmp.ne.s32.totalorder %s4755_s4, %s4756_s15  ;;  %p4762_p8 = scmp.lt.s32.totalorder %s4755_s4, %s5365_s29 }
  0xb5   : > { %p4763_p11 = scmp.lt.s32.totalorder %s4761_s1, %s4756_s15 }
  0xb6   : > { %p4759_p4 = pnand %p4757_p3, %p5499_p0 }
  0xb7   : > { %p4764_p13 = por %p4763_p11, %p4762_p8 }
  0xb8   : > { %p4760_p7 = pneg %p4759_p4 }
  0xba   : > { %p4765_p1 = pnand %p4764_p13, %p4760_p7 }
  0xbc   : > { %4768 = shalt.err (!%p4765_p1)
}
  0xbd   : > { %4266 = dma.hbm_to_vmem [thread:$0]  (!%p5491_p12), %s5552_s18, 256, %s1207_s16, [#allocation24], %s6246_s26, %s6246_s26, %s6247_s28  }
  0xbe   : > { %s1044_s11 = sshll.u32 %s5280_s24, 4  ;;  %s5199_s13 = smov [#allocation26]   ;;  %s5580_s11 = int_to_ptr.hbm [resolvable:$true] %s1044_s11 }
  0xbf   : > { %s1236_s21 = sshll.u32 %s5199_s13, 4  ;;  %s4784_s4 = sshra.s32 %s5566_s23, 4  ;;  %s1237_s21 = int_to_ptr.vmem [resolvable:$true] %s1236_s21  ;;  %s4785_s4 = int_to_ptr.hbm [resolvable:$true] %s4784_s4 }
  0xc0   : > { %s4786_s15 = scalar_lea.hbm %s4785_s4, 1  ;;  %s4791_s1 = scalar_lea.hbm %s5380_s17, 1 }
  0xc1   : > { %p4787_p2 = scmp.ne.s32.totalorder %s4785_s4, %s4786_s15  ;;  %p4792_p7 = scmp.lt.s32.totalorder %s4785_s4, %s5380_s17 }
  0xc2   : > { %p4793_p8 = scmp.lt.s32.totalorder %s4791_s1, %s4786_s15 }
  0xc3   : > { %p4789_p3 = pnand %p4787_p2, %p5499_p0 }
  0xc4   : > { %p4794_p11 = por %p4793_p8, %p4792_p7 }
  0xc5   : > { %p4790_p4 = pneg %p4789_p3 }
  0xc7   : > { %p4795_p13 = pnand %p4794_p11, %p4790_p4 }
  0xc9   : > { %4798 = shalt.err (!%p4795_p13)
}
  0xca   : > { %4272 = dma.hbm_to_vmem [thread:$0]  (!%p5491_p12), %s5566_s23, 16, %s1237_s21, [#allocation27]  }
  0xcb   : > { %s5200_s18 = smov [#allocation5]   ;;  %s1088_s13 = sshll.u32 %s6295_s12, 4  ;;  %s5591_s13 = int_to_ptr.hbm [resolvable:$true] %s1088_s13 }
  0xcc   : > { %s1046_s16 = sshll.u32 %s5200_s18, 4  ;;  %s4814_s4 = sshra.s32 %s5580_s11, 4  ;;  %s1047_s16 = int_to_ptr.vmem [resolvable:$true] %s1046_s16  ;;  %s4815_s4 = int_to_ptr.hbm [resolvable:$true] %s4814_s4 }
  0xcd   : > { %s4816_s15 = scalar_lea.hbm %s4815_s4, 16  ;;  %s4821_s1 = scalar_lea.hbm %s5280_s24, 16 }
  0xce   : > { %p4817_p1 = scmp.ne.s32.totalorder %s4815_s4, %s4816_s15  ;;  %p4822_p4 = scmp.lt.s32.totalorder %s4815_s4, %s5280_s24 }
  0xcf   : > { %p4823_p7 = scmp.lt.s32.totalorder %s4821_s1, %s4816_s15 }
  0xd0   : > { %p4819_p2 = pnand %p4817_p1, %p5499_p0 }
  0xd1   : > { %p4824_p8 = por %p4823_p7, %p4822_p4 }
  0xd2   : > { %p4820_p3 = pneg %p4819_p2 }
  0xd4   : > { %p4825_p11 = pnand %p4824_p8, %p4820_p3 }
  0xd6   : > { %4828 = shalt.err (!%p4825_p11)
}
  0xd7   : > { %4233 = dma.hbm_to_vmem [thread:$0]  (!%p5491_p12), %s5580_s11, 256, %s1047_s16, [#allocation6], %s6246_s26, %s6246_s26, %s6247_s28  }
  0xd8   : > { %s1114_s23 = sshll.u32 %s5325_s27, 4  ;;  %s5201_s21 = smov [#allocation10]   ;;  %s5605_s23 = int_to_ptr.hbm [resolvable:$true] %s1114_s23 }
  0xd9   : > { %s1090_s18 = sshll.u32 %s5201_s21, 4  ;;  %s4844_s4 = sshra.s32 %s5591_s13, 4  ;;  %s1091_s18 = int_to_ptr.vmem [resolvable:$true] %s1090_s18  ;;  %s4845_s4 = int_to_ptr.hbm [resolvable:$true] %s4844_s4 }
  0xda   : > { %s4846_s15 = scalar_lea.hbm %s4845_s4, 1  ;;  %s4851_s1 = scalar_lea.hbm %s6295_s12, 1 }
  0xdb   : > { %p4847_p13 = scmp.ne.s32.totalorder %s4845_s4, %s4846_s15  ;;  %p4852_p3 = scmp.lt.s32.totalorder %s4845_s4, %s6295_s12 }
  0xdc   : > { %p4853_p4 = scmp.lt.s32.totalorder %s4851_s1, %s4846_s15 }
  0xdd   : > { %p4849_p1 = pnand %p4847_p13, %p5499_p0 }
  0xde   : > { %p4854_p7 = por %p4853_p4, %p4852_p3 }
  0xdf   : > { %p4850_p2 = pneg %p4849_p1 }
  0xe1   : > { %p4855_p8 = pnand %p4854_p7, %p4850_p2 }
  0xe3   : > { %4858 = shalt.err (!%p4855_p8)
}
  0xe4   : > { %4239 = dma.hbm_to_vmem [thread:$0]  (!%p5491_p12), %s5591_s13, 16, %s1091_s18, [#allocation9]  }
  0xe5   : > { %s5202_s11 = smov [#allocation13]   ;;  %s1140_s21 = sshll.u32 %s5335_s19, 4  ;;  %s5616_s21 = int_to_ptr.hbm [resolvable:$true] %s1140_s21 }
  0xe6   : > { %s1116_s16 = sshll.u32 %s5202_s11, 4  ;;  %s4874_s4 = sshra.s32 %s5605_s23, 4  ;;  %s1117_s16 = int_to_ptr.vmem [resolvable:$true] %s1116_s16  ;;  %s4875_s4 = int_to_ptr.hbm [resolvable:$true] %s4874_s4 }
  0xe7   : > { %s4876_s15 = scalar_lea.hbm %s4875_s4, 1  ;;  %s4881_s1 = scalar_lea.hbm %s5325_s27, 1 }
  0xe8   : > { %p4877_p11 = scmp.ne.s32.totalorder %s4875_s4, %s4876_s15  ;;  %p4882_p2 = scmp.lt.s32.totalorder %s4875_s4, %s5325_s27 }
  0xe9   : > { %p4883_p3 = scmp.lt.s32.totalorder %s4881_s1, %s4876_s15 }
  0xea   : > { %p4879_p13 = pnand %p4877_p11, %p5499_p0 }
  0xeb   : > { %p4884_p4 = por %p4883_p3, %p4882_p2 }
  0xec   : > { %p4880_p1 = pneg %p4879_p13 }
  0xee   : > { %p4885_p7 = pnand %p4884_p4, %p4880_p1 }
  0xf0   : > { %4888 = shalt.err (!%p4885_p7)
}
  0xf1   : > { %4245 = dma.hbm_to_vmem [thread:$0]  (!%p5491_p12), %s5605_s23, 16, %s1117_s16, [#allocation12]  }
  0xf2   : > { %s1167_s13 = sshll.u32 %s6299_s3, 4  ;;  %s5203_s18 = smov [#allocation16]   ;;  %s5627_s13 = int_to_ptr.hbm [resolvable:$true] %s1167_s13 }
  0xf3   : > { %s1142_s11 = sshll.u32 %s5203_s18, 4  ;;  %s4904_s4 = sshra.s32 %s5616_s21, 4  ;;  %s1143_s11 = int_to_ptr.vmem [resolvable:$true] %s1142_s11  ;;  %s4905_s4 = int_to_ptr.hbm [resolvable:$true] %s4904_s4 }
  0xf4   : > { %s4906_s15 = scalar_lea.hbm %s4905_s4, 1  ;;  %s4911_s1 = scalar_lea.hbm %s5335_s19, 1 }
  0xf5   : > { %p4907_p8 = scmp.ne.s32.totalorder %s4905_s4, %s4906_s15  ;;  %p4912_p1 = scmp.lt.s32.totalorder %s4905_s4, %s5335_s19 }
  0xf6   : > { %p4913_p2 = scmp.lt.s32.totalorder %s4911_s1, %s4906_s15 }
  0xf7   : > { %p4909_p11 = pnand %p4907_p8, %p5499_p0 }
  0xf8   : > { %p4914_p3 = por %p4913_p2, %p4912_p1 }
  0xf9   : > { %p4910_p13 = pneg %p4909_p11 }
  0xfb   : > { %p4915_p4 = pnand %p4914_p3, %p4910_p13 }
  0xfd   : > { %4918 = shalt.err (!%p4915_p4)
}
  0xfe   : > { %4251 = dma.hbm_to_vmem [thread:$0]  (!%p5491_p12), %s5616_s21, 16, %s1143_s11, [#allocation15]  }
  0xff   : > { %s5204_s23 = smov [#allocation19]   ;;  %s1193_s18 = sshll.u32 %s5360_s14, 4  ;;  %s5638_s18 = int_to_ptr.hbm [resolvable:$true] %s1193_s18 }
 0x100   : > { %s1169_s16 = sshll.u32 %s5204_s23, 4  ;;  %s4934_s4 = sshra.s32 %s5627_s13, 4  ;;  %s1170_s16 = int_to_ptr.vmem [resolvable:$true] %s1169_s16  ;;  %s4935_s4 = int_to_ptr.hbm [resolvable:$true] %s4934_s4 }
 0x101   : > { %s4936_s15 = scalar_lea.hbm %s4935_s4, 1  ;;  %s4941_s1 = scalar_lea.hbm %s6299_s3, 1 }
 0x102   : > { %p4937_p7 = scmp.ne.s32.totalorder %s4935_s4, %s4936_s15  ;;  %p4942_p13 = scmp.lt.s32.totalorder %s4935_s4, %s6299_s3 }
 0x103   : > { %p4943_p1 = scmp.lt.s32.totalorder %s4941_s1, %s4936_s15 }
 0x104   : > { %p4939_p8 = pnand %p4937_p7, %p5499_p0 }
 0x105   : > { %p4944_p2 = por %p4943_p1, %p4942_p13 }
 0x106   : > { %p4940_p11 = pneg %p4939_p8 }
 0x108   : > { %p4945_p3 = pnand %p4944_p2, %p4940_p11 }
 0x10a   : > { %4948 = shalt.err (!%p4945_p3)
}
 0x10b   : > { %4257 = dma.hbm_to_vmem [thread:$0]  (!%p5491_p12), %s5627_s13, 16, %s1170_s16, [#allocation18]  }
 0x10c   : > { %s1219_s21 = sshll.u32 %s6296_s8, 4  ;;  %s5205_s11 = smov [#allocation22]   ;;  %s5649_s21 = int_to_ptr.hbm [resolvable:$true] %s1219_s21 }
 0x10d   : > { %s1195_s23 = sshll.u32 %s5205_s11, 4  ;;  %s4964_s4 = sshra.s32 %s5638_s18, 4  ;;  %s1196_s23 = int_to_ptr.vmem [resolvable:$true] %s1195_s23  ;;  %s4965_s4 = int_to_ptr.hbm [resolvable:$true] %s4964_s4 }
 0x10e   : > { %s4966_s15 = scalar_lea.hbm %s4965_s4, 1  ;;  %s4971_s1 = scalar_lea.hbm %s5360_s14, 1 }
 0x10f   : > { %p4967_p4 = scmp.ne.s32.totalorder %s4965_s4, %s4966_s15  ;;  %p4972_p11 = scmp.lt.s32.totalorder %s4965_s4, %s5360_s14 }
 0x110   : > { %p4973_p13 = scmp.lt.s32.totalorder %s4971_s1, %s4966_s15 }
 0x111   : > { %p4969_p7 = pnand %p4967_p4, %p5499_p0 }
 0x112   : > { %p4974_p1 = por %p4973_p13, %p4972_p11 }
 0x113   : > { %p4970_p8 = pneg %p4969_p7 }
 0x115   : > { %p4975_p2 = pnand %p4974_p1, %p4970_p8 }
 0x117   : > { %4978 = shalt.err (!%p4975_p2)
}
 0x118   : > { %s6313_s13 = sld [smem:[#allocation66_spill]]  ;;  %s5206_s16 = smov [#allocation25]  }
 0x119   : > { %4263 = dma.hbm_to_vmem [thread:$0]  (!%p5491_p12), %s5638_s18, 16, %s1196_s23, [#allocation21]  }
 0x11a   : > { %s1221_s11 = sshll.u32 %s5206_s16, 4  ;;  %s4994_s28 = sshra.s32 %s5649_s21, 4  ;;  %s1222_s11 = int_to_ptr.vmem [resolvable:$true] %s1221_s11  ;;  %s4995_s28 = int_to_ptr.hbm [resolvable:$true] %s4994_s28 }
 0x11b   : > { %s4996_s4 = scalar_lea.hbm %s4995_s28, 1  ;;  %s5001_s15 = scalar_lea.hbm %s6296_s8, 1 }
 0x11c   : > { %p4997_p3 = scmp.ne.s32.totalorder %s4995_s28, %s4996_s4  ;;  %p5002_p8 = scmp.lt.s32.totalorder %s4995_s28, %s6296_s8 }
 0x11d   : > { %p5003_p11 = scmp.lt.s32.totalorder %s5001_s15, %s4996_s4 }
 0x11e   : > { %s1254_s26 = sshll.u32 %s6313_s13, 4  ;;  %p4999_p4 = pnand %p4997_p3, %p5499_p0  ;;  %s1255_s26 = int_to_ptr.hbm [resolvable:$true] %s1254_s26 }
 0x11f   : > { %p5004_p13 = por %p5003_p11, %p5002_p8 }
 0x120   : > { %p5000_p7 = pneg %p4999_p4 }
 0x122   : > { %p5005_p1 = pnand %p5004_p13, %p5000_p7 }
 0x124   : > { %5008 = shalt.err (!%p5005_p1)
}
 0x125   : > { %4269 = dma.hbm_to_vmem [thread:$0]  (!%p5491_p12), %s5649_s21, 16, %s1222_s11, [#allocation24]  }
 0x126   : > { %s5207_s18 = smov [#allocation28]   ;;  %s5024_s1 = sshra.s32 %s1255_s26, 4  ;;  %s5025_s1 = int_to_ptr.hbm [resolvable:$true] %s5024_s1 }
 0x127   : > { %s1256_s23 = sshll.u32 %s5207_s18, 4  ;;  %s5026_s16 = scalar_lea.hbm %s5025_s1, 16  ;;  %s1257_s23 = int_to_ptr.vmem [resolvable:$true] %s1256_s23 }
 0x128   : > { %p5027_p2 = scmp.ne.s32.totalorder %s5025_s1, %s5026_s16  ;;  %s5031_s28 = scalar_lea.hbm %s6313_s13, 16 }
 0x129   : > { %p5032_p7 = scmp.lt.s32.totalorder %s5025_s1, %s6313_s13  ;;  %p5033_p8 = scmp.lt.s32.totalorder %s5031_s28, %s5026_s16 }
 0x12a   : > { %p5029_p3 = pnand %p5027_p2, %p5499_p0 }
 0x12b   : > { %p5034_p11 = por %p5033_p8, %p5032_p7 }
 0x12c   : > { %p5030_p4 = pneg %p5029_p3 }
 0x12e   : > { %p5035_p13 = pnand %p5034_p11, %p5030_p4 }
 0x130   : > { %5038 = shalt.err (!%p5035_p13)
}
 0x131   : > { %s6314_s21 = smov 4   ;;  %s6315_s11 = smov 64  }
 0x132   : > { %4275 = dma.hbm_to_vmem [thread:$0]  (!%p5491_p12), %s1255_s26, 256, %s1257_s23, [#allocation27], %s6315_s11, %s6315_s11, %s6314_s21  }
 0x133   : > { %1301 = sbr.rel (%p5481_p10) target bundleno = 6086 (0x17c6), region = 184 }
 0x138   : > { %5099 = dma.done.wait (%p4280_p9), [#allocation6], 256  }
 0x139   : > { %5101 = vsyncadd (%p4280_p9), [#allocation6], 4294967040 }
 0x13a   : > { %5103 = dma.done.wait (%p4280_p9), [#allocation9], 272  }
 0x13b   : > { %5105 = vsyncadd (%p4280_p9), [#allocation9], 4294967024 }
 0x13c   : > { %5107 = dma.done.wait (%p4280_p9), [#allocation12], 272  }
 0x13d   : > { %5109 = vsyncadd (%p4280_p9), [#allocation12], 4294967024 }
 0x13e   : > { %5111 = dma.done.wait (%p4280_p9), [#allocation15], 272  }
 0x13f   : > { %5113 = vsyncadd (%p4280_p9), [#allocation15], 4294967024 }
 0x140   : > { %5115 = dma.done.wait (%p4280_p9), [#allocation18], 32  }
 0x141   : > { %5117 = vsyncadd (%p4280_p9), [#allocation18], 4294967264 }
 0x142   : > { %5119 = dma.done.wait (%p4280_p9), [#allocation21], 272  }
 0x143   : > { %5121 = vsyncadd (%p4280_p9), [#allocation21], 4294967024 }
 0x144   : > { %5123 = dma.done.wait (%p4280_p9), [#allocation24], 272  }
 0x145   : > { %5125 = vsyncadd (%p4280_p9), [#allocation24], 4294967024 }
 0x146   : > { %5127 = dma.done.wait (%p4280_p9), [#allocation27], 272  }
 0x147   : > { %5129 = vsyncadd (%p4280_p9), [#allocation27], 4294967024  ;;  %s6316_s7 = sld [smem:[#allocation40_spill]]  ;;  %p1475_p10 = scmp.lt.s32.totalorder %s5453_s0, 1  ;;  %vm1519_vm0 = vcmask 261120   ;;  %vm1570_vm1 = vcmask 60416   ;;  %v1484_v27 = vlaneseq }
 0x148   : > { %s6317_s2 = sld [smem:[#allocation41_spill]]  ;;  %s5208_s23 = smov 104   ;;  %vm1614_vm2 = vcmask 64512   ;;  %vm1746_vm5 = vcmask 1043456   ;;  %v5211_v38 = vmov 0.0   ;;  %vm2054_vm15 = vcmask 126016  }
 0x149   : > { %s6318_s22 = sld [smem:[#allocation43_spill]]  ;;  %s5209_s1 = smov 120   ;;  %v5750_v28 = vshrl.u32 %v1484_v27, 7  ;;  %v5752_v29 = vand.u32 127, %v1484_v27 }
 0x14a   : > { %s6319_s26 = sld [smem:[#allocation42_spill]]  ;;  %s6248_s16 = smov 112  }
 0x14b   : > { %s5713_s4 = scalar_select %p1475_p10, %s5453_s0, 1  ;;  %v1683_v30 = vadd.s32 1, %v5750_v28  ;;  %vm1493_vm4 = vcmp.gt.s32.totalorder %v5750_v28, %v5752_v29 }
 0x14c   : > { %s6320_s28 = sld [smem:[#allocation44_spill]]  ;;  %v1494_v39 = vsel %vm1493_vm4, 1.0, %v5211_v38  ;;  %s6250_s11 = smov 8   ;;  %vm2061_vm4 = vcmask 191616  }
 0x14d   : > { %s3963_s15 = sshll.u32 %s5713_s4, 3  ;;  %vm5756_vm3 = vcmp.lt.s32.totalorder %v5752_v29, %v1683_v30  ;;  %v1495_v40 = vpack.c.bf16 %v1494_v39, %v1494_v39  ;;  %s6323_s21 = sld [smem:[#allocation47_spill]] }
 0x14e   : > { %s1482_s18 = scalar_lea.vmem %s6316_s7, %s3963_s15  ;;  %v4139_v0 = vld [vmem:[%s6317_s2 + $0x8] sm:$0xff]  ;;  %v4138_v1 = vld [vmem:[%s6317_s2] sm:$0xff]  ;;  %s6324_s7 = sld [smem:[#allocation45_spill]] }
 0x14f   : > { %v5721_v2 = vld [vmem:[%s1482_s18] sm:$0xff]  ;;  %1529 = vmatpush.bf16.msra.mxu0 %v4139_v0  ;;  %v4141_v4 = vld [vmem:[%s6318_s22 + $0x8] sm:$0xff]  ;;  %v5770_v42 = vsel %vm1746_vm5, %v1495_v40, 0  ;;  %s6254_s18 = smov 16   ;;  %s6328_s4 = smov 112  }
 0x150   : > { %v1498_v3 = vpack.c.bf16 %v5721_v2, %v5721_v2  ;;  %1562 = vmatpush.bf16.msra.mxu1 %v4141_v4  ;;  %v4140_v5 = vld [vmem:[%s6318_s22] sm:$0xff]  ;;  %s6350_s9 = sld [smem:[#allocation69_spill]]  ;;  %s4135_s2 = sshll.u32 %s5453_s0, 3 }
 0x151   : > { %v4413_v6 = vld [vmem:[%s6319_s26] ss:$0 sm:$0xff] }
 0x152   : > { %v4414_v21 = vld [vmem:[%s6320_s28] ss:$0 sm:$0xff]  ;;  %s6326_s28 = sld [smem:[#allocation39_spill]] }
 0x153   : > { %1530 = vmatpush.bf16.msra.mxu0 %v4138_v1 }
 0x154   : > { %1563 = vmatpush.bf16.msra.mxu1 %v4140_v5  ;;  %s6325_s26 = smov %s6324_s7 }
 0x156   : > { %3973 = vmatmul.msk.bf16.vlgmr.msra.gmra.mxu0 %vm1519_vm0, %v1498_v3 }
 0x157   : > { %3982 = vmatmul.msk.bf16.vlgmr.msra.gmra.mxu1 %vm1519_vm0, %v1498_v3 }
 0x1d3   : > { %v1532_v7 = vpop.f32.mrf.mxu0 }
 0x1d4   : > { %v1533_v8 = vadd.f32 %v4413_v6, %v1532_v7  ;;  %v1565_v19 = vpop.f32.mrf.mxu1 }
 0x1d5   : > { %v1566_v22 = vadd.f32 %v4414_v21, %v1565_v19  ;;  %v4417_v19 = vld [vmem:[%s6323_s21 + $0x1] ss:$0 sm:$0xff] }
 0x1d6   : > { %v1569_v9 = vpack.c.bf16 %v1533_v8, %v1533_v8 }
 0x1d7   : > { %v5742_v23 = vpack.c.bf16 %v1566_v22, %v1566_v22 }
 0x1d8   : > { %1571 = vst.msk [vmem:[#allocation2] sm:$0xf] %vm1570_vm1, %v1569_v9  ;;  %1596 = vrot.lane.b32.xlu1 %v1569_v9, %s5208_s23  ;;  %1575 = vrot.lane.b32.xlu0 %v1569_v9, %s5209_s1 }
 0x1d9   : > { %1573 = vst.msk [vmem:[#allocation3] sm:$0xf] %vm1570_vm1, %v5742_v23 }
 0x1db   : > { %v1534_v10 = vpop.f32.mrf.mxu0 }
 0x1dc   : > { %v1567_v26 = vpop.f32.mrf.mxu1 }
 0x1dd   : > { %v4418_v26 = vld [vmem:[%s6323_s21] ss:$0 sm:$0xff] }
 0x1df   : > { %v1606_v11 = vld [vmem:[#allocation2] sm:$0xf] }
 0x1e0   : > { %1586 = vrot.lane.b32.xlu0 %v1569_v9, %s6248_s16  ;;  %v1616_v12 = vsel %vm1614_vm2, %v1606_v11, 0  ;;  %v1610_v37 = vld [vmem:[#allocation3] sm:$0xf] }
 0x1e1   : > { %1625 = vmatpush.bf16.xpose.msra.mxu2 %v1616_v12  ;;  %v1975_v41 = vsel %vm1746_vm5, %v1610_v37, 0 }
 0x1e8   : > { %3983 = vmatmul.msk.bf16.vlgmr.msra.gmra.mxu2 %vm1614_vm2, %v1606_v11 }
 0x1e9   : > { %1757 = vmatpush.bf16.msrb.mxu2 %v5770_v42 }
 0x1ed   : > { %1984 = vmatpush.bf16.msra.mxu2 %v1975_v41 }
 0x24a   : > { %v1597_v13 = vpop.permute.xlu1 %1596  ;;  %v1576_v14 = vpop.permute.xlu0 %1575 }
 0x24b   : > { %1600 = vst.msk [vmem:[#allocation2 + $0xc] sm:$0xf] %vm1570_vm1, %v1597_v13 }
 0x24c   : > { %1579 = vst.msk [vmem:[#allocation2 + $0x4] sm:$0xf] %vm1570_vm1, %v1576_v14 }
 0x252   : > { %v1587_v15 = vpop.permute.xlu0 %1586  ;;  %v1609_v16 = vld [vmem:[#allocation2 + $0xc] sm:$0xf] }
 0x253   : > { %1590 = vst.msk [vmem:[#allocation2 + $0x8] sm:$0xf] %vm1570_vm1, %v1587_v15  ;;  %v1607_v17 = vld [vmem:[#allocation2 + $0x4] sm:$0xf]  ;;  %v1664_v18 = vsel %vm1614_vm2, %v1609_v16, 0 }
 0x254   : > { %v1632_v20 = vsel %vm1614_vm2, %v1607_v17, 0  ;;  %1673 = vmatpush.bf16.xpose.msrb.mxu1 %v1664_v18  ;;  %v5212_v18 = vmov 0  }
 0x255   : > { %1641 = vmatpush.bf16.xpose.msra.mxu3 %v1632_v20  ;;  %4411 = vset.pattern.permute.xlu1 %v5212_v18 }
 0x256   : > { %4412 = vset.pattern.permute.xlu0 %v5212_v18  ;;  %4410 = vset.pattern.permute.xlu2 %v5212_v18 }
 0x25a   : > { %v1608_v24 = vld [vmem:[#allocation2 + $0x8] sm:$0xf] }
 0x25b   : > { %3986 = vmatmul.msk.bf16.vlgmr.msrb.gmra.mxu1 %vm1614_vm2, %v1609_v16  ;;  %v1648_v25 = vsel %vm1614_vm2, %v1608_v24, 0  ;;  %v4415_v16 = vld [vmem:[%s6323_s21 + $0x2] ss:$0 sm:$0xff] }
 0x25c   : > { %3984 = vmatmul.msk.bf16.vlgmr.msra.gmra.mxu3 %vm1614_vm2, %v1607_v17  ;;  %1657 = vmatpush.bf16.xpose.msrb.mxu0 %v1648_v25  ;;  %v4416_v17 = vld [vmem:[%s6323_s21 + $0x3] ss:$0 sm:$0xff] }
 0x25d   : > { %1773 = vmatpush.bf16.msrb.mxu3 %v5770_v42  ;;  %1805 = vmatpush.bf16.msra.mxu1 %v5770_v42 }
 0x263   : > { %3985 = vmatmul.msk.bf16.vlgmr.msrb.gmra.mxu0 %vm1614_vm2, %v1608_v24 }
 0x264   : > { %1789 = vmatpush.bf16.msra.mxu0 %v5770_v42 }
 0x26b   : > { %v1627_v31 = vpop.f32.mrf.mxu2 }
 0x26c   : > { %v5760_v33 = vmul.f32 0.35355338, %v1627_v31 }
 0x26e   : > { %v1687_v34 = vsel %vm5756_vm3, %v5760_v33, -1e+32 }
 0x26f   : > { %v1691_v35 = vsel %vm1614_vm2, %v1687_v34, -inf }
 0x270   : > { %1692 = vmax.xlane.f32.xlu0 %v1691_v35 }
 0x273   : > { %v1629_v36 = vpop.f32.mrf.mxu2 }
 0x284   : > { %1892 = vperm.xlu0 %4412, %v4416_v17  }
 0x2d8   : > { %v1675_v43 = vpop.f32.mrf.mxu1 }
 0x2d9   : > { %v5788_v53 = vmul.f32 0.35355338, %v1675_v43 }
 0x2db   : > { %v1690_v56 = vsel %vm5756_vm3, %v5788_v53, -1e+32 }
 0x2dc   : > { %v1700_v57 = vsel %vm1614_vm2, %v1690_v56, -inf }
 0x2df   : > { %v1643_v44 = vpop.f32.mrf.mxu3 }
 0x2e0   : > { %v5776_v45 = vmul.f32 0.35355338, %v1643_v44  ;;  %v1659_v46 = vpop.f32.mrf.mxu0  ;;  %v1677_v47 = vpop.f32.mrf.mxu1 }
 0x2e1   : > { %v5778_v48 = vmul.f32 0.35355338, %v1659_v46  ;;  %v1488_v47 = vsub.s32 %v5752_v29, %v5750_v28 }
 0x2e2   : > { %v1688_v49 = vsel %vm5756_vm3, %v5776_v45, -1e+32 }
 0x2e3   : > { %v1694_v50 = vsel %vm1614_vm2, %v1688_v49, -inf  ;;  %v1689_v51 = vsel %vm5756_vm3, %v5778_v48, -1e+32  ;;  %v1693_v6 = vpop.xlane.xlu0 %1692  ;;  %vm1489_vm6 = vcmp.lt.s32.totalorder %v1488_v47, 0 }
 0x2e4   : > { %1695 = vmax.xlane.f32.xlu1 %v1694_v50  ;;  %v1697_v52 = vsel %vm1614_vm2, %v1689_v51, -inf  ;;  %v1703_v8 = vsub.f32 %v1687_v34, %v1693_v6 }
 0x2e5   : > { %1698 = vmax.xlane.f32.xlu2 %v1697_v52 }
 0x2e6   : > { %v1707_v10 = vmul.f32 1.442695, %v1703_v8 }
 0x2e7   : > { %v1645_v54 = vpop.f32.mrf.mxu3 }
 0x2e8   : > { %v1661_v55 = vpop.f32.mrf.mxu0 }
 0x2ed   : > { %1701 = vmax.xlane.f32.xlu2 %v1700_v57 }
 0x2fd   : > { %1888 = vperm.xlu1 %4411, %v4415_v16  }
 0x357   : > { %v1696_v58 = vpop.xlane.xlu1 %1695 }
 0x358   : > { %v1704_v59 = vsub.f32 %v1688_v49, %v1696_v58  ;;  %v1699_v60 = vpop.xlane.xlu2 %1698  ;;  %v1490_v49 = vsub.s32 0, %v1488_v47 }
 0x359   : > { %v1705_v62 = vsub.f32 %v1689_v51, %v1699_v60 }
 0x35a   : > { %v1709_v61 = vmul.f32 1.442695, %v1704_v59  ;;  %v1491_v50 = vsel %vm1489_vm6, %v1490_v49, %v1488_v47  ;;  %v1893_v47 = vpop.permute.xlu0 %1892  ;;  %vm2068_vm6 = vcmask 257216  }
 0x35b   : > { %v1711_v63 = vmul.f32 1.442695, %v1705_v62  ;;  %v5816_v51 = vcvt.s32.f32 %v1491_v50 }
 0x35c   : > { %4448 = vpow2.f32 %v1709_v61 }
 0x35d   : > { %4450 = vpow2.f32 %v1711_v63 }
 0x360   : > { %v1702_v0 = vpop.xlane.xlu2 %1701 }
 0x361   : > { %v1706_v3 = vsub.f32 %v1690_v56, %v1702_v0 }
 0x362   : > { %v4449_v1 = vpop.eup %4448 }
 0x363   : > { %v1718_v4 = vsel %vm1614_vm2, %v4449_v1, 0.0  ;;  %v1713_v5 = vmul.f32 1.442695, %v1706_v3  ;;  %v4451_v7 = vpop.eup %4450 }
 0x364   : > { %1719 = vadd.xlane.f32.xlu2 %v1718_v4  ;;  %v1721_v9 = vsel %vm1614_vm2, %v4451_v7, 0.0 }
 0x365   : > { %4452 = vpow2.f32 %v1713_v5 }
 0x366   : > { %4454 = vpow2.f32 %v1707_v10 }
 0x36b   : > { %v4453_v11 = vpop.eup %4452 }
 0x36c   : > { %1722 = vadd.xlane.f32.xlu2 %v1721_v9  ;;  %v1724_v12 = vsel %vm1614_vm2, %v4453_v11, 0.0  ;;  %v4455_v13 = vpop.eup %4454 }
 0x36d   : > { %v1715_v14 = vsel %vm1614_vm2, %v4455_v13, 0.0 }
 0x374   : > { %1725 = vadd.xlane.f32.xlu2 %v1724_v12 }
 0x37c   : > { %1716 = vadd.xlane.f32.xlu2 %v1715_v14 }
 0x394   : > { %1884 = vperm.xlu2 %4410, %v4417_v19  }
 0x39c   : > { %1880 = vperm.xlu2 %4410, %v4418_v26   ;;  %v1889_v26 = vpop.permute.xlu1 %1888 }
 0x3d7   : > { %v1720_v15 = vpop.xlane.xlu2 %1719 }
 0x3d8   : > { %4456 = vrcp.f32 %v1720_v15 }
 0x3de   : > { %v4457_v20 = vpop.eup %4456 }
 0x3df   : > { %v1732_v21 = vmul.f32 %v4457_v20, %v4449_v1  ;;  %v1723_v22 = vpop.xlane.xlu2 %1722 }
 0x3e0   : > { %4458 = vrcp.f32 %v1723_v22 }
 0x3e1   : > { %v1736_v24 = vsel %vm5756_vm3, %v1732_v21, 0.0 }
 0x3e2   : > { %v1740_v25 = vpack.c.bf16 %v1736_v24, %v1736_v24 }
 0x3e4   : > { %3988 = vmatmul.msk.bf16.vlgmr.msrb.gmra.mxu3 %vm1614_vm2, %v1740_v25 }
 0x3e6   : > { %v4459_v27 = vpop.eup %4458 }
 0x3e7   : > { %v1733_v30 = vmul.f32 %v4459_v27, %v4451_v7  ;;  %v1726_v31 = vpop.xlane.xlu2 %1725 }
 0x3e8   : > { %4460 = vrcp.f32 %v1726_v31 }
 0x3e9   : > { %v1737_v34 = vsel %vm5756_vm3, %v1733_v30, 0.0 }
 0x3ea   : > { %v1741_v35 = vpack.c.bf16 %v1737_v34, %v1737_v34 }
 0x3ec   : > { %3989 = vmatmul.msk.bf16.vlgmr.msra.gmra.mxu0 %vm1614_vm2, %v1741_v35 }
 0x3ee   : > { %v4461_v36 = vpop.eup %4460 }
 0x3ef   : > { %v1734_v37 = vmul.f32 %v4461_v36, %v4453_v11  ;;  %v1717_v38 = vpop.xlane.xlu2 %1716 }
 0x3f0   : > { %4462 = vrcp.f32 %v1717_v38 }
 0x3f1   : > { %v1738_v39 = vsel %vm5756_vm3, %v1734_v37, 0.0 }
 0x3f2   : > { %v1742_v40 = vpack.c.bf16 %v1738_v39, %v1738_v39 }
 0x3f4   : > { %3990 = vmatmul.msk.bf16.vlgmr.msra.gmra.mxu1 %vm1614_vm2, %v1742_v40 }
 0x3f6   : > { %v4463_v41 = vpop.eup %4462 }
 0x3f7   : > { %v1731_v43 = vmul.f32 %v4463_v41, %v4455_v13  ;;  %v1885_v24 = vpop.permute.xlu2 %1884 }
 0x3f9   : > { %v1735_v44 = vsel %vm5756_vm3, %v1731_v43, 0.0 }
 0x3fa   : > { %v1739_v46 = vpack.c.bf16 %v1735_v44, %v1735_v44 }
 0x3fc   : > { %3987 = vmatmul.msk.bf16.vlgmr.msrb.gmra.mxu2 %vm1614_vm2, %v1739_v46 }
 0x467   : > { %v1775_v52 = vpop.f32.mrf.mxu3 }
 0x468   : > { %v1812_v54 = vmul.f32 %v1775_v52, %v5816_v51 }
 0x469   : > { %v1791_v55 = vpop.f32.mrf.mxu0 }
 0x46a   : > { %v1816_v56 = vmax.f32 %v1812_v54, 0.0  ;;  %v1813_v57 = vmul.f32 %v1791_v55, %v5816_v51 }
 0x46c   : > { %4464 = vrsqrt.f32 %v1816_v56  ;;  %v1817_v58 = vmax.f32 %v1813_v57, 0.0  ;;  %vm1838_vm7 = vcmp.eq.f32.partialorder %v1816_v56, inf  ;;  %v1841_v17 = vand.u32 2147483648, %v1816_v56 }
 0x46d   : > { %vm1840_vm8 = vcmp.eq.f32.partialorder %v1816_v56, 0.0 }
 0x46e   : > { %4466 = vrsqrt.f32 %v1817_v58  ;;  %vm1850_vm9 = vcmp.eq.f32.partialorder %v1817_v58, inf  ;;  %v1853_v27 = vand.u32 2147483648, %v1817_v58  ;;  %vm1852_vm10 = vcmp.eq.f32.partialorder %v1817_v58, 0.0 }
 0x46f   : > { %v1777_v59 = vpop.f32.mrf.mxu3 }
 0x471   : > { %v1793_v60 = vpop.f32.mrf.mxu0  ;;  %v1807_v61 = vpop.f32.mrf.mxu1 }
 0x472   : > { %v4465_v62 = vpop.eup %4464  ;;  %v1814_v63 = vmul.f32 %v1807_v61, %v5816_v51 }
 0x473   : > { %v1832_v0 = vmul.f32 %v4465_v62, %v1816_v56 }
 0x474   : > { %v4467_v1 = vpop.eup %4466  ;;  %v1818_v3 = vmax.f32 %v1814_v63, 0.0 }
 0x475   : > { %v1833_v4 = vmul.f32 %v4465_v62, %v1832_v0  ;;  %v1844_v5 = vmul.f32 %v4467_v1, %v1817_v58 }
 0x476   : > { %4468 = vrsqrt.f32 %v1818_v3  ;;  %vm1862_vm11 = vcmp.eq.f32.partialorder %v1818_v3, inf  ;;  %v1865_v46 = vand.u32 2147483648, %v1818_v3  ;;  %vm1864_vm12 = vcmp.eq.f32.partialorder %v1818_v3, 0.0 }
 0x477   : > { %v1834_v6 = vmul.f32 0.5, %v1833_v4  ;;  %v1845_v7 = vmul.f32 %v4467_v1, %v1844_v5 }
 0x479   : > { %v1835_v8 = vsub.f32 1.5, %v1834_v6  ;;  %v1809_v9 = vpop.f32.mrf.mxu1  ;;  %v1846_v10 = vmul.f32 0.5, %v1845_v7 }
 0x47b   : > { %v1836_v11 = vmul.f32 %v4465_v62, %v1835_v8  ;;  %v1847_v12 = vsub.f32 1.5, %v1846_v10 }
 0x47c   : > { %v4469_v13 = vpop.eup %4468 }
 0x47d   : > { %v1837_v14 = vmul.f32 %v1836_v11, %v1816_v56  ;;  %v1848_v15 = vmul.f32 %v4467_v1, %v1847_v12  ;;  %v1856_v16 = vmul.f32 %v4469_v13, %v1818_v3 }
 0x47f   : > { %v1839_v18 = vsel %vm1838_vm7, %v1816_v56, %v1837_v14  ;;  %v1759_v19 = vpop.f32.mrf.mxu2  ;;  %v1849_v20 = vmul.f32 %v1848_v15, %v1817_v58  ;;  %v1857_v21 = vmul.f32 %v4469_v13, %v1856_v16  ;;  %v1881_v14 = vpop.permute.xlu2 %1880 }
 0x480   : > { %v1842_v22 = vsel %vm1840_vm8, %v1841_v17, %v1839_v18  ;;  %v1811_v25 = vmul.f32 %v1759_v19, %v5816_v51 }
 0x481   : > { %v1896_v30 = vmul.f32 %v1885_v24, %v1842_v22  ;;  %v1851_v31 = vsel %vm1850_vm9, %v1817_v58, %v1849_v20  ;;  %v1858_v34 = vmul.f32 0.5, %v1857_v21 }
 0x482   : > { %v1815_v35 = vmax.f32 %v1811_v25, 0.0  ;;  %v1854_v36 = vsel %vm1852_vm10, %v1853_v27, %v1851_v31 }
 0x483   : > { %v1901_v37 = vmul.f32 1.442695, %v1896_v30  ;;  %v1897_v38 = vmul.f32 %v1889_v26, %v1854_v36  ;;  %v1859_v39 = vsub.f32 1.5, %v1858_v34 }
 0x484   : > { %4470 = vrsqrt.f32 %v1815_v35  ;;  %vm1826_vm13 = vcmp.eq.f32.partialorder %v1815_v35, inf  ;;  %v1829_v12 = vand.u32 2147483648, %v1815_v35  ;;  %vm1828_vm14 = vcmp.eq.f32.partialorder %v1815_v35, 0.0 }
 0x485   : > { %4472 = vpow2.f32 %v1901_v37  ;;  %v1903_v40 = vmul.f32 1.442695, %v1897_v38  ;;  %v1860_v41 = vmul.f32 %v4469_v13, %v1859_v39 }
 0x487   : > { %4474 = vpow2.f32 %v1903_v40  ;;  %v1761_v43 = vpop.f32.mrf.mxu2  ;;  %v1861_v44 = vmul.f32 %v1860_v41, %v1818_v3 }
 0x489   : > { %v1863_v49 = vsel %vm1862_vm11, %v1818_v3, %v1861_v44  ;;  %vm2222_vm11 = vcmask 523264  }
 0x48a   : > { %v4471_v50 = vpop.eup %4470  ;;  %v1866_v52 = vsel %vm1864_vm12, %v1865_v46, %v1863_v49 }
 0x48b   : > { %v4473_v54 = vpop.eup %4472  ;;  %v1820_v55 = vmul.f32 %v4471_v50, %v1815_v35  ;;  %v1898_v56 = vmul.f32 %v1893_v47, %v1866_v52 }
 0x48c   : > { %v1908_v57 = vmax.f32 %v4473_v54, 1e-05 }
 0x48d   : > { %v4475_v58 = vpop.eup %4474  ;;  %v1821_v59 = vmul.f32 %v4471_v50, %v1820_v55  ;;  %v1905_v60 = vmul.f32 1.442695, %v1898_v56 }
 0x48e   : > { %v1912_v61 = vmin.f32 %v1908_v57, 100000.0  ;;  %v1909_v62 = vmax.f32 %v4475_v58, 1e-05 }
 0x48f   : > { %v1822_v63 = vmul.f32 0.5, %v1821_v59  ;;  %4476 = vpow2.f32 %v1905_v60 }
 0x490   : > { %v1913_v0 = vmin.f32 %v1909_v62, 100000.0  ;;  %v1916_v1 = vmul.f32 %v1912_v61, %v5776_v45 }
 0x491   : > { %v1823_v4 = vsub.f32 1.5, %v1822_v63 }
 0x492   : > { %v1920_v3 = vsel %vm5756_vm3, %v1916_v1, -1e+32  ;;  %v1917_v5 = vmul.f32 %v1913_v0, %v5778_v48 }
 0x493   : > { %v1824_v6 = vmul.f32 %v4471_v50, %v1823_v4  ;;  %v1926_v7 = vsel %vm1614_vm2, %v1920_v3, -inf }
 0x494   : > { %1927 = vmax.xlane.f32.xlu1 %v1926_v7  ;;  %v1921_v8 = vsel %vm5756_vm3, %v1917_v5, -1e+32 }
 0x495   : > { %v4477_v9 = vpop.eup %4476  ;;  %v1825_v10 = vmul.f32 %v1824_v6, %v1815_v35  ;;  %v1929_v11 = vsel %vm1614_vm2, %v1921_v8, -inf }
 0x496   : > { %v1910_v45 = vmax.f32 %v4477_v9, 1e-05  ;;  %1930 = vmax.xlane.f32.xlu2 %v1929_v11 }
 0x497   : > { %v1827_v13 = vsel %vm1826_vm13, %v1815_v35, %v1825_v10 }
 0x498   : > { %v1830_v15 = vsel %vm1828_vm14, %v1829_v12, %v1827_v13  ;;  %v1914_v48 = vmin.f32 %v1910_v45, 100000.0 }
 0x499   : > { %v1895_v16 = vmul.f32 %v1881_v14, %v1830_v15 }
 0x49a   : > { %v1918_v17 = vmul.f32 %v1914_v48, %v5788_v53 }
 0x49b   : > { %v1899_v18 = vmul.f32 1.442695, %v1895_v16 }
 0x49c   : > { %v1922_v19 = vsel %vm5756_vm3, %v1918_v17, -1e+32 }
 0x49d   : > { %4478 = vpow2.f32 %v1899_v18  ;;  %v1932_v20 = vsel %vm1614_vm2, %v1922_v19, -inf }
 0x49e   : > { %1933 = vmax.xlane.f32.xlu0 %v1932_v20 }
 0x4a3   : > { %v4479_v21 = vpop.eup %4478 }
 0x4a4   : > { %v1907_v22 = vmax.f32 %v4479_v21, 1e-05 }
 0x4a6   : > { %v1911_v24 = vmin.f32 %v1907_v22, 100000.0 }
 0x4a8   : > { %v1915_v25 = vmul.f32 %v1911_v24, %v5760_v33 }
 0x4aa   : > { %v1919_v26 = vsel %vm5756_vm3, %v1915_v25, -1e+32 }
 0x4ab   : > { %v1923_v27 = vsel %vm1614_vm2, %v1919_v26, -inf }
 0x4ac   : > { %1924 = vmax.xlane.f32.xlu1 %v1923_v27  ;;  %v4143_v27 = vld [vmem:[%s6324_s7 + $0x8] sm:$0xff]  ;;  %s6327_s7 = sld [smem:[#allocation46_spill]] }
 0x4ad   : > { %2100 = vmatpush.bf16.msrb.mxu2 %v4143_v27 }
 0x4ae   : > { %1581 = vrot.lane.b32.xlu2 %v5742_v23, %s5209_s1 }
 0x4b6   : > { %1601 = vrot.lane.b32.xlu2 %v5742_v23, %s5208_s23 }
 0x507   : > { %v1928_v53 = vpop.xlane.xlu1 %1927 }
 0x508   : > { %v1936_v30 = vsub.f32 %v1920_v3, %v1928_v53  ;;  %v4142_v53 = vld [vmem:[%s6325_s26] sm:$0xff] }
 0x509   : > { %v1931_v31 = vpop.xlane.xlu2 %1930  ;;  %2101 = vmatpush.bf16.msrb.mxu2 %v4142_v53 }
 0x50a   : > { %v1941_v34 = vmul.f32 1.442695, %v1936_v30  ;;  %v1937_v35 = vsub.f32 %v1921_v8, %v1931_v31  ;;  %v4151_v31 = vld [vmem:[#allocation8 + $0x8] sm:$0xff] }
 0x50c   : > { %4480 = vpow2.f32 %v1941_v34  ;;  %v1943_v36 = vmul.f32 1.442695, %v1937_v35  ;;  %v4150_v35 = vld [vmem:[#allocation8] sm:$0xff] }
 0x50e   : > { %4482 = vpow2.f32 %v1943_v36 }
 0x511   : > { %v1582_v33 = vpop.permute.xlu2 %1581  ;;  %v1934_v37 = vpop.xlane.xlu0 %1933 }
 0x512   : > { %v4481_v38 = vpop.eup %4480  ;;  %1585 = vst.msk [vmem:[#allocation3 + $0x4] sm:$0xf] %vm1570_vm1, %v1582_v33  ;;  %v1938_v39 = vsub.f32 %v1922_v19, %v1934_v37 }
 0x513   : > { %v1950_v40 = vsel %vm1614_vm2, %v4481_v38, 0.0 }
 0x514   : > { %v4483_v41 = vpop.eup %4482  ;;  %v1945_v43 = vmul.f32 1.442695, %v1938_v39  ;;  %1951 = vadd.xlane.f32.xlu1 %v1950_v40  ;;  %v4420_v39 = vld [vmem:[#allocation10] ss:$0 sm:$0xff] }
 0x515   : > { %v1953_v44 = vsel %vm1614_vm2, %v4483_v41, 0.0 }
 0x516   : > { %4484 = vpow2.f32 %v1945_v43  ;;  %1954 = vadd.xlane.f32.xlu0 %v1953_v44 }
 0x519   : > { %v1602_v46 = vpop.permute.xlu2 %1601  ;;  %v1611_v47 = vld [vmem:[#allocation3 + $0x4] sm:$0xf] }
 0x51a   : > { %1605 = vst.msk [vmem:[#allocation3 + $0xc] sm:$0xf] %vm1570_vm1, %v1602_v46  ;;  %v1994_v49 = vsel %vm1746_vm5, %v1611_v47, 0  ;;  %v4419_v46 = vld [vmem:[%s6327_s7] ss:$0 sm:$0xff]  ;;  %s6332_s7 = sld [smem:[#allocation49_spill]] }
 0x51b   : > { %2003 = vmatpush.bf16.msra.mxu3 %v1994_v49 }
 0x51c   : > { %v4485_v50 = vpop.eup %4484 }
 0x51d   : > { %v1956_v52 = vsel %vm1614_vm2, %v4485_v50, 0.0 }
 0x51e   : > { %1957 = vadd.xlane.f32.xlu0 %v1956_v52 }
 0x51f   : > { %v1925_v54 = vpop.xlane.xlu1 %1924 }
 0x520   : > { %v1935_v55 = vsub.f32 %v1919_v26, %v1925_v54 }
 0x521   : > { %v1613_v56 = vld [vmem:[#allocation3 + $0xc] sm:$0xf] }
 0x522   : > { %v1939_v57 = vmul.f32 1.442695, %v1935_v55  ;;  %v2032_v58 = vsel %vm1746_vm5, %v1613_v56, 0  ;;  %v5216_v55 = vmov 32.0   ;;  %v4153_v56 = vld [vmem:[#allocation11 + $0x8] sm:$0xff] }
 0x523   : > { %2041 = vmatpush.bf16.msrb.mxu1 %v2032_v58  ;;  %v4152_v58 = vld [vmem:[#allocation11] sm:$0xff] }
 0x524   : > { %4486 = vpow2.f32 %v1939_v57 }
 0x527   : > { %2302 = vmatpush.bf16.msra.mxu1 %v4151_v31 }
 0x52a   : > { %v4487_v59 = vpop.eup %4486 }
 0x52b   : > { %v1947_v60 = vsel %vm1614_vm2, %v4487_v59, 0.0  ;;  %2303 = vmatpush.bf16.msra.mxu1 %v4150_v35 }
 0x52c   : > { %1948 = vadd.xlane.f32.xlu2 %v1947_v60 }
 0x52d   : > { %1591 = vrot.lane.b32.xlu1 %v5742_v23, %s6248_s16  ;;  %s6252_s16 = smov 24  }
 0x587   : > { %v1952_v61 = vpop.xlane.xlu1 %1951 }
 0x588   : > { %4488 = vrcp.f32 %v1952_v61 }
 0x589   : > { %v1955_v62 = vpop.xlane.xlu0 %1954 }
 0x58e   : > { %v4489_v63 = vpop.eup %4488 }
 0x58f   : > { %v1964_v0 = vmul.f32 %v4489_v63, %v4481_v38 }
 0x591   : > { %v1968_v1 = vpack.c.bf16 %v1964_v0, %v1964_v0  ;;  %v1958_v4 = vpop.xlane.xlu0 %1957 }
 0x592   : > { %4490 = vrcp.f32 %v1958_v4 }
 0x593   : > { %3992 = vmatmul.msk.bf16.vlgmr.msra.gmra.mxu3 %vm1614_vm2, %v1968_v1  ;;  %4492 = vrcp.f32 %v1955_v62 }
 0x598   : > { %v4491_v3 = vpop.eup %4490 }
 0x599   : > { %v1966_v5 = vmul.f32 %v4491_v3, %v4485_v50  ;;  %v4493_v23 = vpop.eup %4492 }
 0x59a   : > { %v1965_v10 = vmul.f32 %v4493_v23, %v4483_v41  ;;  %v4144_v23 = vld [vmem:[#allocation5] sm:$0xff] }
 0x59b   : > { %v1970_v6 = vpack.c.bf16 %v1966_v5, %v1966_v5 }
 0x59c   : > { %v1969_v14 = vpack.c.bf16 %v1965_v10, %v1965_v10  ;;  %v4423_v10 = vld [vmem:[#allocation13] ss:$0 sm:$0xff] }
 0x59d   : > { %3994 = vmatmul.msk.bf16.vlgmr.msrb.gmra.mxu1 %vm1614_vm2, %v1970_v6 }
 0x59f   : > { %v1949_v7 = vpop.xlane.xlu2 %1948  ;;  %v1592_v8 = vpop.permute.xlu1 %1591 }
 0x5a0   : > { %4494 = vrcp.f32 %v1949_v7  ;;  %1595 = vst.msk [vmem:[#allocation3 + $0x8] sm:$0xf] %vm1570_vm1, %v1592_v8  ;;  %v4145_v8 = vld [vmem:[#allocation5 + $0x8] sm:$0xff] }
 0x5a1   : > { %4496 = vrcp.f32 %v5216_v55  ;;  %2177 = vmatpush.bf16.msrb.mxu3 %v4145_v8 }
 0x5a5   : > { %2178 = vmatpush.bf16.msrb.mxu3 %v4144_v23 }
 0x5a6   : > { %v4495_v9 = vpop.eup %4494 }
 0x5a7   : > { %v1963_v11 = vmul.f32 %v4495_v9, %v4487_v59  ;;  %v1612_v12 = vld [vmem:[#allocation3 + $0x8] sm:$0xf]  ;;  %v4497_v59 = vpop.eup %4496 }
 0x5a8   : > { %v2013_v45 = vsel %vm1746_vm5, %v1612_v12, 0  ;;  %v2112_v60 = vmul.f32 32.0, %v4497_v59  ;;  %vm2116_vm7 = vweird.f32 %v4497_v59 }
 0x5a9   : > { %v1967_v13 = vpack.c.bf16 %v1963_v11, %v1963_v11  ;;  %2022 = vmatpush.bf16.msrb.mxu0 %v2013_v45 }
 0x5aa   : > { %v2113_v62 = vsub.f32 1.0, %v2112_v60 }
 0x5ab   : > { %3991 = vmatmul.msk.bf16.vlgmr.msra.gmra.mxu2 %vm1614_vm2, %v1967_v13 }
 0x5ac   : > { %3993 = vmatmul.msk.bf16.vlgmr.msrb.gmra.mxu0 %vm1614_vm2, %v1969_v14  ;;  %2335 = vmatpush.bf16.msra.mxu2 %v4153_v56  ;;  %v2114_v63 = vmul.f32 %v4497_v59, %v2113_v62 }
 0x5ae   : > { %v2115_v0 = vadd.f32 %v4497_v59, %v2114_v63 }
 0x5b0   : > { %2336 = vmatpush.bf16.msra.mxu2 %v4152_v58  ;;  %v5886_v1 = vsel %vm2116_vm7, %v4497_v59, %v2115_v0 }
 0x616   : > { %v2005_v15 = vpop.f32.mrf.mxu3 }
 0x617   : > { %v2049_v48 = vpack.c.bf16 %v2005_v15, %v2005_v15 }
 0x619   : > { %2051 = vrot.lane.b32.xlu0 %v2049_v48, %s6250_s11  ;;  %s1478_s11 = scalar_lea.vmem %s6326_s28, %s3963_s15  ;;  %s6329_s15 = sld [smem:[#allocation51_spill]] }
 0x61a   : > { %v2043_v16 = vpop.f32.mrf.mxu1  ;;  %v5868_v34 = vld [vmem:[%s1478_s11] sm:$0xff]  ;;  %s6331_s11 = sld [smem:[#allocation48_spill]] }
 0x61b   : > { %v2063_v25 = vpack.c.bf16 %v2043_v16, %v2043_v16  ;;  %v2272_v36 = vpack.c.bf16 %v5868_v34, %v5868_v34 }
 0x61d   : > { %4038 = vmatmul.msk.bf16.vlgmr.msra.gmra.mxu1 %vm1519_vm0, %v2272_v36 }
 0x61e   : > { %v2007_v17 = vpop.f32.mrf.mxu3 }
 0x61f   : > { %s6330_s28 = smov %s6329_s15 }
 0x620   : > { %v4421_v35 = vld [vmem:[%s6331_s11] ss:$0 sm:$0xff]  ;;  %s6334_s11 = sld [smem:[#allocation57_spill]] }
 0x622   : > { %v2045_v18 = vpop.f32.mrf.mxu1 }
 0x629   : > { %v2024_v19 = vpop.f32.mrf.mxu0 }
 0x62a   : > { %v2056_v20 = vpack.c.bf16 %v2024_v19, %v2024_v19 }
 0x62c   : > { %2058 = vrot.lane.b32.xlu1 %v2056_v20, %s6254_s18 }
 0x62e   : > { %v1986_v21 = vpop.f32.mrf.mxu2 }
 0x62f   : > { %v2047_v22 = vpack.c.bf16 %v1986_v21, %v1986_v21  ;;  %v4149_v21 = vld [vmem:[%s6329_s15 + $0x18] sm:$0xff]  ;;  %s6333_s15 = sld [smem:[#allocation50_spill]] }
 0x630   : > { %2230 = vmatpush.bf16.msra.mxu0 %v4149_v21 }
 0x631   : > { %2048 = vst.msk [vmem:[#allocation4] sm:$0xf] %vm1570_vm1, %v2047_v22  ;;  %v2026_v24 = vpop.f32.mrf.mxu0 }
 0x634   : > { %2065 = vrot.lane.b32.xlu1 %v2063_v25, %s6252_s16  ;;  %v4148_v25 = vld [vmem:[%s6330_s28 + $0x10] sm:$0xff]  ;;  %s6335_s16 = smov %s6334_s11 }
 0x635   : > { %2231 = vmatpush.bf16.msra.mxu0 %v4148_v25 }
 0x636   : > { %v1988_v26 = vpop.f32.mrf.mxu2 }
 0x68b   : > { %v2052_v30 = vpop.permute.xlu0 %2051 }
 0x68c   : > { %2055 = vst.msk [vmem:[#allocation4] sm:$0xf] %vm2054_vm15, %v2052_v30 }
 0x69a   : > { %v2305_v40 = vpop.f32.mrf.mxu1 }
 0x69b   : > { %v2306_v41 = vadd.f32 %v4420_v39, %v2305_v40 }
 0x69d   : > { %v2342_v43 = vpack.c.bf16 %v2306_v41, %v2306_v41 }
 0x69e   : > { %v2059_v33 = vpop.permute.xlu1 %2058 }
 0x69f   : > { %2062 = vst.msk [vmem:[#allocation4] sm:$0xf] %vm2061_vm4, %v2059_v33  ;;  %2364 = vrot.lane.b32.xlu2 %v2342_v43, %s5208_s23  ;;  %v4422_v33 = vld [vmem:[%s6332_s7] ss:$0 sm:$0xff]  ;;  %s6336_s7 = sld [smem:[#allocation52_spill]] }
 0x6a0   : > { %2343 = vst.msk [vmem:[#allocation2] sm:$0xf] %vm1570_vm1, %v2342_v43 }
 0x6a2   : > { %v2307_v44 = vpop.f32.mrf.mxu1 }
 0x6a6   : > { %v2066_v37 = vpop.permute.xlu1 %2065 }
 0x6a7   : > { %2069 = vst.msk [vmem:[#allocation4] sm:$0xf] %vm2068_vm6, %v2066_v37  ;;  %v2372_v9 = vld [vmem:[#allocation2] sm:$0xf] }
 0x6a8   : > { %v2381_v45 = vsel %vm1614_vm2, %v2372_v9, 0 }
 0x6a9   : > { %2390 = vmatpush.bf16.xpose.msra.mxu3 %v2381_v45 }
 0x6ae   : > { %v2070_v38 = vld [vmem:[#allocation4] sm:$0xf] }
 0x6af   : > { %4003 = vmatmul.msk.bf16.vlgmr.msrb.gmra.mxu2 %vm1519_vm0, %v2070_v38 }
 0x6bf   : > { %4047 = vmatmul.msk.bf16.vlgmr.msra.gmra.mxu2 %vm1519_vm0, %v2272_v36 }
 0x6f9   : > { %v2365_v57 = vpop.permute.xlu2 %2364 }
 0x6fa   : > { %2367 = vst.msk [vmem:[#allocation2 + $0xc] sm:$0xf] %vm1570_vm1, %v2365_v57 }
 0x701   : > { %v2375_v61 = vld [vmem:[#allocation2 + $0xc] sm:$0xf] }
 0x732   : > { %v2103_v47 = vpop.f32.mrf.mxu2 }
 0x733   : > { %v2104_v49 = vadd.f32 %v4419_v46, %v2103_v47  ;;  %v4147_v46 = vld [vmem:[%s6330_s28 + $0x8] sm:$0xff]  ;;  %v4146_v47 = vld [vmem:[%s6330_s28] sm:$0xff] }
 0x734   : > { %2232 = vmatpush.bf16.msra.mxu0 %v4147_v46 }
 0x735   : > { %v2107_v50 = vadd.f32 %v2104_v49, %v5721_v2  ;;  %v2429_v2 = vsel %vm1614_vm2, %v2375_v61, 0 }
 0x736   : > { %2438 = vmatpush.bf16.xpose.msrb.mxu2 %v2429_v2 }
 0x737   : > { %v2108_v52 = vsel %vm1519_vm0, %v2107_v50, 0.0 }
 0x738   : > { %2109 = vadd.xlane.f32.xlu1 %v2108_v52  ;;  %2233 = vmatpush.bf16.msra.mxu0 %v4146_v47 }
 0x73a   : > { %v2105_v54 = vpop.f32.mrf.mxu2 }
 0x73b   : > { %v4424_v54 = vld [vmem:[%s6333_s15] ss:$0 sm:$0xff]  ;;  %s6337_s15 = smov 8  }
 0x73d   : > { %4051 = vmatmul.msk.bf16.vlgmr.msrb.gmra.mxu2 %vm1614_vm2, %v2375_v61 }
 0x73e   : > { %2562 = vmatpush.bf16.msra.mxu2 %v5770_v42 }
 0x742   : > { %v2338_v11 = vpop.f32.mrf.mxu2 }
 0x743   : > { %v2339_v14 = vadd.f32 %v4423_v10, %v2338_v11 }
 0x745   : > { %v5894_v48 = vpack.c.bf16 %v2339_v14, %v2339_v14 }
 0x747   : > { %2345 = vst.msk [vmem:[#allocation3] sm:$0xf] %vm1570_vm1, %v5894_v48 }
 0x74a   : > { %v2340_v16 = vpop.f32.mrf.mxu2 }
 0x74e   : > { %v2376_v11 = vld [vmem:[#allocation3] sm:$0xf] }
 0x751   : > { %2347 = vrot.lane.b32.xlu1 %v2342_v43, %s5209_s1 }
 0x7ab   : > { %v2110_v4 = vpop.xlane.xlu1 %2109 }
 0x7ac   : > { %v2118_v3 = vmul.f32 %v5886_v1, %v2110_v4 }
 0x7ae   : > { %v2119_v5 = vsub.f32 %v2107_v50, %v2118_v3 }
 0x7b0   : > { %v2120_v6 = vmul.f32 %v2119_v5, %v2119_v5 }
 0x7b2   : > { %v2121_v7 = vsel %vm1519_vm0, %v2120_v6, 0.0 }
 0x7b3   : > { %2122 = vadd.xlane.f32.xlu0 %v2121_v7 }
 0x7c0   : > { %v2440_v20 = vpop.f32.mrf.mxu2 }
 0x7c1   : > { %v5899_v24 = vmul.f32 0.35355338, %v2440_v20 }
 0x7c3   : > { %v2451_v27 = vsel %vm5756_vm3, %v5899_v24, -1e+32  ;;  %v2348_v49 = vpop.permute.xlu1 %2347 }
 0x7c4   : > { %v2461_v30 = vsel %vm1614_vm2, %v2451_v27, -inf  ;;  %2350 = vst.msk [vmem:[#allocation2 + $0x4] sm:$0xf] %vm1570_vm1, %v2348_v49 }
 0x7c5   : > { %2462 = vmax.xlane.f32.xlu2 %v2461_v30 }
 0x7c7   : > { %2356 = vrot.lane.b32.xlu0 %v2342_v43, %s6328_s4 }
 0x7c8   : > { %v2442_v38 = vpop.f32.mrf.mxu2 }
 0x7cb   : > { %v2373_v50 = vld [vmem:[#allocation2 + $0x4] sm:$0xf] }
 0x7cc   : > { %v2397_v52 = vsel %vm1614_vm2, %v2373_v50, 0 }
 0x7cd   : > { %2406 = vmatpush.bf16.xpose.msrb.mxu0 %v2397_v52 }
 0x826   : > { %v2123_v12 = vpop.xlane.xlu0 %2122 }
 0x827   : > { %v2124_v13 = vmul.f32 %v2123_v12, %v5886_v1  ;;  %v2732_v12 = vsel %vm1746_vm5, %v2376_v11, 0 }
 0x829   : > { %v2125_v15 = vadd.f32 1e-05, %v2124_v13 }
 0x82b   : > { %4498 = vrsqrt.f32 %v2125_v15  ;;  %vm2132_vm9 = vweird.f32 %v2125_v15 }
 0x831   : > { %v4499_v17 = vpop.eup %4498 }
 0x832   : > { %v2127_v18 = vmul.f32 %v4499_v17, %v2125_v15  ;;  %vm2133_vm8 = vweird.f32 %v4499_v17 }
 0x833   : > { %vm2134_vm10 = vmor %vm2132_vm9, %vm2133_vm8 }
 0x834   : > { %v2128_v19 = vmul.f32 %v4499_v17, %v2127_v18 }
 0x836   : > { %v2129_v22 = vmul.f32 0.5, %v2128_v19 }
 0x838   : > { %v2130_v26 = vsub.f32 1.5, %v2129_v22  ;;  %v2463_v62 = vpop.xlane.xlu2 %2462 }
 0x839   : > { %v2357_v53 = vpop.permute.xlu0 %2356  ;;  %v2467_v4 = vsub.f32 %v2451_v27, %v2463_v62 }
 0x83a   : > { %v2131_v31 = vmul.f32 %v4499_v17, %v2130_v26  ;;  %2359 = vst.msk [vmem:[#allocation2 + $0x8] sm:$0xf] %vm1570_vm1, %v2357_v53 }
 0x83b   : > { %v2474_v3 = vmul.f32 1.442695, %v2467_v4  ;;  %v4429_v4 = vld [vmem:[%s6335_s16] ss:$0 sm:$0xff] }
 0x83c   : > { %v2135_v36 = vsel %vm2134_vm10, %v4499_v17, %v2131_v31 }
 0x83d   : > { %v2136_v37 = vmul.f32 %v2135_v36, %v2119_v5  ;;  %4500 = vpow2.f32 %v2474_v3 }
 0x83f   : > { %v2141_v39 = vmul.f32 %v4421_v35, %v2136_v37 }
 0x841   : > { %v5909_v40 = vadd.f32 %v4422_v33, %v2141_v39  ;;  %v2374_v41 = vld [vmem:[#allocation2 + $0x8] sm:$0xf]  ;;  %v4426_v39 = vld [vmem:[%s6334_s11 + $0x2] ss:$0 sm:$0xff]  ;;  %s6338_s11 = smov 24  }
 0x842   : > { %v2413_v43 = vsel %vm1614_vm2, %v2374_v41, 0 }
 0x843   : > { %v2147_v44 = vpack.c.bf16 %v5909_v40, %v5909_v40  ;;  %2422 = vmatpush.bf16.xpose.msrb.mxu1 %v2413_v43  ;;  %v4501_v23 = vpop.eup %4500 }
 0x844   : > { %v2485_v10 = vsel %vm1614_vm2, %v4501_v23, 0.0 }
 0x845   : > { %4012 = vmatmul.msk.bf16.vlgmr.msrb.gmra.mxu3 %vm1519_vm0, %v2147_v44 }
 0x846   : > { %2514 = vmatpush.bf16.msrb.mxu3 %v5770_v42 }
 0x84a   : > { %4050 = vmatmul.msk.bf16.vlgmr.msrb.gmra.mxu1 %vm1614_vm2, %v2374_v41  ;;  %v4427_v41 = vld [vmem:[%s6335_s16 + $0x1] ss:$0 sm:$0xff] }
 0x84b   : > { %2546 = vmatpush.bf16.msra.mxu1 %v5770_v42 }
 0x855   : > { %4048 = vmatmul.msk.bf16.vlgmr.msra.gmra.mxu3 %vm1614_vm2, %v2372_v9 }
 0x856   : > { %2741 = vmatpush.bf16.msra.mxu3 %v2732_v12 }
 0x8c7   : > { %v2424_v55 = vpop.f32.mrf.mxu1 }
 0x8c8   : > { %v2180_v56 = vpop.f32.mrf.mxu3  ;;  %v5924_v57 = vmul.f32 0.35355338, %v2424_v55 }
 0x8c9   : > { %v2181_v58 = vadd.f32 %v4424_v54, %v2180_v56 }
 0x8ca   : > { %v2450_v59 = vsel %vm5756_vm3, %v5924_v57, -1e+32 }
 0x8cb   : > { %v2184_v60 = vmax.f32 %v2181_v58, 0.0  ;;  %v2458_v61 = vsel %vm1614_vm2, %v2450_v59, -inf }
 0x8cc   : > { %2459 = vmax.xlane.f32.xlu1 %v2458_v61 }
 0x8cd   : > { %v2185_v2 = vpack.c.bf16 %v2184_v60, %v2184_v60 }
 0x8cf   : > { %4029 = vmatmul.msk.bf16.vlgmr.msra.gmra.mxu0 %vm2222_vm11, %v2185_v2  ;;  %v2426_v63 = vpop.f32.mrf.mxu1 }
 0x8d0   : > { %v2182_v0 = vpop.f32.mrf.mxu3  ;;  %2530 = vmatpush.bf16.msra.mxu0 %v5770_v42 }
 0x8d1   : > { %v4428_v0 = vld [vmem:[%s6335_s16 + $0x3] ss:$0 sm:$0xff] }
 0x8d8   : > { %v2392_v5 = vpop.f32.mrf.mxu3 }
 0x8d9   : > { %v5932_v6 = vmul.f32 0.35355338, %v2392_v5 }
 0x8db   : > { %v2448_v7 = vsel %vm5756_vm3, %v5932_v6, -1e+32 }
 0x8dc   : > { %v2452_v8 = vsel %vm1614_vm2, %v2448_v7, -inf }
 0x8dd   : > { %2453 = vmax.xlane.f32.xlu2 %v2452_v8 }
 0x8df   : > { %4049 = vmatmul.msk.bf16.vlgmr.msrb.gmra.mxu0 %vm1614_vm2, %v2373_v50 }
 0x8e0   : > { %v2394_v9 = vpop.f32.mrf.mxu3 }
 0x8e5   : > { %2486 = vadd.xlane.f32.xlu2 %v2485_v10 }
 0x93f   : > { %v2460_v17 = vpop.xlane.xlu1 %2459 }
 0x940   : > { %v2466_v18 = vsub.f32 %v2450_v59, %v2460_v17 }
 0x942   : > { %v2472_v21 = vmul.f32 1.442695, %v2466_v18 }
 0x94c   : > { %v5941_v45 = vpop.f32.mrf.mxu0 }
 0x950   : > { %v2454_v13 = vpop.xlane.xlu2 %2453 }
 0x951   : > { %v2464_v14 = vsub.f32 %v2448_v7, %v2454_v13 }
 0x953   : > { %v2468_v15 = vmul.f32 1.442695, %v2464_v14 }
 0x954   : > { %v2237_v16 = vpop.f32.mrf.mxu0 }
 0x955   : > { %4502 = vpow2.f32 %v2468_v15 }
 0x958   : > { %v2487_v19 = vpop.xlane.xlu2 %2486 }
 0x959   : > { %4504 = vrcp.f32 %v2487_v19 }
 0x95a   : > { %4506 = vpow2.f32 %v2472_v21 }
 0x95b   : > { %v4503_v20 = vpop.eup %4502 }
 0x95c   : > { %v2408_v22 = vpop.f32.mrf.mxu0  ;;  %v2476_v25 = vsel %vm1614_vm2, %v4503_v20, 0.0 }
 0x95d   : > { %v5944_v26 = vmul.f32 0.35355338, %v2408_v22  ;;  %2477 = vadd.xlane.f32.xlu1 %v2476_v25 }
 0x95f   : > { %v4505_v27 = vpop.eup %4504  ;;  %v2449_v53 = vsel %vm5756_vm3, %v5944_v26, -1e+32 }
 0x960   : > { %v2495_v30 = vmul.f32 %v4505_v27, %v4501_v23  ;;  %v2455_v31 = vsel %vm1614_vm2, %v2449_v53, -inf  ;;  %v4507_v37 = vpop.eup %4506 }
 0x961   : > { %2456 = vmax.xlane.f32.xlu0 %v2455_v31  ;;  %v2482_v38 = vsel %vm1614_vm2, %v4507_v37, 0.0 }
 0x962   : > { %v2499_v35 = vsel %vm5756_vm3, %v2495_v30, 0.0 }
 0x963   : > { %v2503_v36 = vpack.c.bf16 %v2499_v35, %v2499_v35 }
 0x964   : > { %v2410_v33 = vpop.f32.mrf.mxu0 }
 0x965   : > { %4055 = vmatmul.msk.bf16.vlgmr.msra.gmra.mxu2 %vm1614_vm2, %v2503_v36 }
 0x969   : > { %2483 = vadd.xlane.f32.xlu0 %v2482_v38 }
 0x976   : > { %2645 = vperm.xlu1 %4411, %v4426_v39  }
 0x97d   : > { %2641 = vperm.xlu0 %4412, %v4427_v41  }
 0x9d0   : > { %v2478_v43 = vpop.xlane.xlu1 %2477 }
 0x9d1   : > { %4508 = vrcp.f32 %v2478_v43 }
 0x9d4   : > { %v2457_v44 = vpop.xlane.xlu0 %2456 }
 0x9d5   : > { %v2465_v46 = vsub.f32 %v2449_v53, %v2457_v44 }
 0x9d7   : > { %v4509_v47 = vpop.eup %4508  ;;  %v2470_v49 = vmul.f32 1.442695, %v2465_v46 }
 0x9d8   : > { %v2492_v50 = vmul.f32 %v4509_v47, %v4503_v20 }
 0x9d9   : > { %4510 = vpow2.f32 %v2470_v49 }
 0x9da   : > { %v2496_v52 = vsel %vm5756_vm3, %v2492_v50, 0.0 }
 0x9db   : > { %v2500_v54 = vpack.c.bf16 %v2496_v52, %v2496_v52 }
 0x9dc   : > { %v2484_v55 = vpop.xlane.xlu0 %2483 }
 0x9dd   : > { %4512 = vrcp.f32 %v2484_v55  ;;  %4052 = vmatmul.msk.bf16.vlgmr.msrb.gmra.mxu3 %vm1614_vm2, %v2500_v54 }
 0x9df   : > { %v4511_v56 = vpop.eup %4510 }
 0x9e0   : > { %v2479_v58 = vsel %vm1614_vm2, %v4511_v56, 0.0 }
 0x9e1   : > { %2480 = vadd.xlane.f32.xlu2 %v2479_v58 }
 0x9e3   : > { %v4513_v59 = vpop.eup %4512 }
 0x9e4   : > { %v2494_v60 = vmul.f32 %v4513_v59, %v4507_v37 }
 0x9e6   : > { %v2498_v61 = vsel %vm5756_vm3, %v2494_v60, 0.0 }
 0x9e7   : > { %v2502_v2 = vpack.c.bf16 %v2498_v61, %v2498_v61 }
 0x9e8   : > { %v2564_v62 = vpop.f32.mrf.mxu2 }
 0x9e9   : > { %4054 = vmatmul.msk.bf16.vlgmr.msra.gmra.mxu1 %vm1614_vm2, %v2502_v2  ;;  %v2571_v3 = vmul.f32 %v2564_v62, %v5816_v51 }
 0x9eb   : > { %v2575_v5 = vmax.f32 %v2571_v3, 0.0 }
 0x9ed   : > { %4514 = vrsqrt.f32 %v2575_v5  ;;  %vm2619_vm12 = vcmp.eq.f32.partialorder %v2575_v5, inf  ;;  %v2622_v15 = vand.u32 2147483648, %v2575_v5  ;;  %vm2621_vm13 = vcmp.eq.f32.partialorder %v2575_v5, 0.0 }
 0x9f0   : > { %v2566_v63 = vpop.f32.mrf.mxu2 }
 0x9f3   : > { %v4515_v7 = vpop.eup %4514 }
 0x9f4   : > { %v2613_v8 = vmul.f32 %v4515_v7, %v2575_v5 }
 0x9f6   : > { %v2614_v23 = vmul.f32 %v4515_v7, %v2613_v8 }
 0x9f8   : > { %v2615_v9 = vmul.f32 0.5, %v2614_v23 }
 0x9f9   : > { %2649 = vperm.xlu2 %4410, %v4428_v0  }
 0x9fa   : > { %v2616_v10 = vsub.f32 1.5, %v2615_v9  ;;  %v2646_v9 = vpop.permute.xlu1 %2645 }
 0x9fc   : > { %v2617_v11 = vmul.f32 %v4515_v7, %v2616_v10 }
 0x9fe   : > { %v2618_v13 = vmul.f32 %v2617_v11, %v2575_v5 }
 0xa00   : > { %v2620_v14 = vsel %vm2619_vm12, %v2575_v5, %v2618_v13 }
 0xa01   : > { %2637 = vperm.xlu2 %4410, %v4429_v4   ;;  %v2623_v18 = vsel %vm2621_vm13, %v2622_v15, %v2620_v14 }
 0xa54   : > { %v2481_v12 = vpop.xlane.xlu2 %2480 }
 0xa55   : > { %4516 = vrcp.f32 %v2481_v12 }
 0xa5b   : > { %v4517_v16 = vpop.eup %4516 }
 0xa5c   : > { %v2493_v17 = vmul.f32 %v4517_v16, %v4511_v56  ;;  %v2650_v19 = vpop.permute.xlu2 %2649 }
 0xa5d   : > { %v2655_v20 = vmul.f32 %v2650_v19, %v2623_v18 }
 0xa5e   : > { %v2497_v21 = vsel %vm5756_vm3, %v2493_v17, 0.0 }
 0xa5f   : > { %v2501_v22 = vpack.c.bf16 %v2497_v21, %v2497_v21  ;;  %v2662_v25 = vmul.f32 1.442695, %v2655_v20 }
 0xa60   : > { %v2516_v27 = vpop.f32.mrf.mxu3 }
 0xa61   : > { %4518 = vpow2.f32 %v2662_v25  ;;  %v2568_v53 = vmul.f32 %v2516_v27, %v5816_v51  ;;  %4053 = vmatmul.msk.bf16.vlgmr.msra.gmra.mxu0 %vm1614_vm2, %v2501_v22 }
 0xa63   : > { %v2572_v30 = vmax.f32 %v2568_v53, 0.0 }
 0xa64   : > { %v2638_v63 = vpop.permute.xlu2 %2637 }
 0xa65   : > { %4520 = vrsqrt.f32 %v2572_v30  ;;  %vm2583_vm14 = vcmp.eq.f32.partialorder %v2572_v30, inf  ;;  %v2586_v2 = vand.u32 2147483648, %v2572_v30  ;;  %vm2585_vm7 = vcmp.eq.f32.partialorder %v2572_v30, 0.0 }
 0xa66   : > { %v2548_v31 = vpop.f32.mrf.mxu1 }
 0xa67   : > { %v4519_v35 = vpop.eup %4518  ;;  %v2570_v36 = vmul.f32 %v2548_v31, %v5816_v51 }
 0xa68   : > { %v2667_v33 = vmax.f32 %v4519_v35, 1e-05  ;;  %v2518_v37 = vpop.f32.mrf.mxu3 }
 0xa69   : > { %v2574_v38 = vmax.f32 %v2570_v36, 0.0 }
 0xa6a   : > { %v2671_v39 = vmin.f32 %v2667_v33, 100000.0 }
 0xa6b   : > { %v4521_v41 = vpop.eup %4520  ;;  %4522 = vrsqrt.f32 %v2574_v38  ;;  %vm2607_vm8 = vcmp.eq.f32.partialorder %v2574_v38, inf  ;;  %v2610_v8 = vand.u32 2147483648, %v2574_v38  ;;  %vm2609_vm9 = vcmp.eq.f32.partialorder %v2574_v38, 0.0 }
 0xa6c   : > { %v2577_v43 = vmul.f32 %v4521_v41, %v2572_v30  ;;  %v2675_v44 = vmul.f32 %v2671_v39, %v5899_v24 }
 0xa6e   : > { %v2578_v46 = vmul.f32 %v4521_v41, %v2577_v43  ;;  %v2550_v47 = vpop.f32.mrf.mxu1  ;;  %v2679_v49 = vsel %vm5756_vm3, %v2675_v44, -1e+32 }
 0xa6f   : > { %v2689_v50 = vsel %vm1614_vm2, %v2679_v49, -inf }
 0xa70   : > { %v2579_v52 = vmul.f32 0.5, %v2578_v46  ;;  %2690 = vmax.xlane.f32.xlu0 %v2689_v50 }
 0xa71   : > { %v4523_v54 = vpop.eup %4522 }
 0xa72   : > { %v2580_v55 = vsub.f32 1.5, %v2579_v52  ;;  %v2601_v56 = vmul.f32 %v4523_v54, %v2574_v38 }
 0xa74   : > { %v2581_v58 = vmul.f32 %v4521_v41, %v2580_v55  ;;  %v2602_v59 = vmul.f32 %v4523_v54, %v2601_v56 }
 0xa76   : > { %v2582_v60 = vmul.f32 %v2581_v58, %v2572_v30  ;;  %v2603_v61 = vmul.f32 0.5, %v2602_v59 }
 0xa78   : > { %v2584_v62 = vsel %vm2583_vm14, %v2572_v30, %v2582_v60  ;;  %v2604_v24 = vsub.f32 1.5, %v2603_v61 }
 0xa79   : > { %v2587_v0 = vsel %vm2585_vm7, %v2586_v2, %v2584_v62 }
 0xa7a   : > { %v2652_v4 = vmul.f32 %v2638_v63, %v2587_v0  ;;  %v2605_v3 = vmul.f32 %v4523_v54, %v2604_v24  ;;  %v4425_v63 = vld [vmem:[%s6336_s7] ss:$0 sm:$0xff]  ;;  %s6339_s7 = sld [smem:[#allocation53_spill]] }
 0xa7c   : > { %v2656_v5 = vmul.f32 1.442695, %v2652_v4  ;;  %v2606_v7 = vmul.f32 %v2605_v3, %v2574_v38 }
 0xa7e   : > { %4524 = vpow2.f32 %v2656_v5  ;;  %v2608_v23 = vsel %vm2607_vm8, %v2574_v38, %v2606_v7  ;;  %v2236_v5 = vadd.f32 %v4425_v63, %v5941_v45 }
 0xa7f   : > { %v2611_v10 = vsel %vm2609_vm9, %v2610_v8, %v2608_v23 }
 0xa80   : > { %v2654_v11 = vmul.f32 %v2646_v9, %v2611_v10  ;;  %v5998_v8 = vadd.f32 %v2236_v5, %v5909_v40 }
 0xa82   : > { %v2660_v12 = vmul.f32 1.442695, %v2654_v11  ;;  %v2240_v23 = vsel %vm1519_vm0, %v5998_v8, 0.0 }
 0xa84   : > { %v4525_v13 = vpop.eup %4524  ;;  %4526 = vpow2.f32 %v2660_v12 }
 0xa85   : > { %v2664_v14 = vmax.f32 %v4525_v13, 1e-05 }
 0xa87   : > { %v2668_v15 = vmin.f32 %v2664_v14, 100000.0 }
 0xa89   : > { %v2672_v16 = vmul.f32 %v2668_v15, %v5932_v6  ;;  %v2642_v6 = vpop.permute.xlu0 %2641 }
 0xa8a   : > { %v4527_v17 = vpop.eup %4526 }
 0xa8b   : > { %v2676_v18 = vsel %vm5756_vm3, %v2672_v16, -1e+32  ;;  %v2666_v19 = vmax.f32 %v4527_v17, 1e-05 }
 0xa8c   : > { %v2680_v20 = vsel %vm1614_vm2, %v2676_v18, -inf }
 0xa8d   : > { %2681 = vmax.xlane.f32.xlu0 %v2680_v20  ;;  %v2670_v21 = vmin.f32 %v2666_v19, 100000.0 }
 0xa8f   : > { %v2674_v22 = vmul.f32 %v2670_v21, %v5924_v57 }
 0xa91   : > { %v2678_v25 = vsel %vm5756_vm3, %v2674_v22, -1e+32 }
 0xa92   : > { %v2686_v27 = vsel %vm1614_vm2, %v2678_v25, -inf }
 0xa93   : > { %2687 = vmax.xlane.f32.xlu1 %v2686_v27 }
 0xaac   : > { %2352 = vrot.lane.b32.xlu1 %v5894_v48, %s5209_s1 }
 0xade   : > { %v2532_v53 = vpop.f32.mrf.mxu0 }
 0xadf   : > { %v2569_v30 = vmul.f32 %v2532_v53, %v5816_v51 }
 0xae1   : > { %v2573_v31 = vmax.f32 %v2569_v30, 0.0 }
 0xae3   : > { %4528 = vrsqrt.f32 %v2573_v31  ;;  %v2691_v35 = vpop.xlane.xlu0 %2690  ;;  %vm2595_vm10 = vcmp.eq.f32.partialorder %v2573_v31, inf  ;;  %v2598_v52 = vand.u32 2147483648, %v2573_v31  ;;  %vm2597_vm12 = vcmp.eq.f32.partialorder %v2573_v31, 0.0 }
 0xae4   : > { %v2695_v36 = vsub.f32 %v2679_v49, %v2691_v35 }
 0xae6   : > { %v2702_v33 = vmul.f32 1.442695, %v2695_v36  ;;  %v2534_v37 = vpop.f32.mrf.mxu0 }
 0xae8   : > { %4530 = vpow2.f32 %v2702_v33 }
 0xae9   : > { %v4529_v57 = vpop.eup %4528 }
 0xaea   : > { %v2589_v38 = vmul.f32 %v4529_v57, %v2573_v31 }
 0xaec   : > { %v2590_v39 = vmul.f32 %v4529_v57, %v2589_v38 }
 0xaee   : > { %v5986_v41 = vpop.eup %4530  ;;  %v2591_v43 = vmul.f32 0.5, %v2590_v39 }
 0xaef   : > { %v2713_v44 = vsel %vm1614_vm2, %v5986_v41, 0.0 }
 0xaf0   : > { %2714 = vadd.xlane.f32.xlu0 %v2713_v44  ;;  %v2592_v46 = vsub.f32 1.5, %v2591_v43 }
 0xaf2   : > { %v2593_v47 = vmul.f32 %v4529_v57, %v2592_v46 }
 0xaf4   : > { %v2594_v50 = vmul.f32 %v2593_v47, %v2573_v31 }
 0xaf6   : > { %v2596_v49 = vsel %vm2595_vm10, %v2573_v31, %v2594_v50  ;;  %vm6072_vm10 = vcmp.lt.s32.totalorder %v5752_v29, %v5750_v28 }
 0xaf7   : > { %v2599_v54 = vsel %vm2597_vm12, %v2598_v52, %v2596_v49 }
 0xaf8   : > { %v2653_v55 = vmul.f32 %v2642_v6, %v2599_v54 }
 0xafa   : > { %v2658_v56 = vmul.f32 1.442695, %v2653_v55 }
 0xafc   : > { %4532 = vpow2.f32 %v2658_v56 }
 0xb00   : > { %v2682_v58 = vpop.xlane.xlu0 %2681 }
 0xb01   : > { %v2692_v59 = vsub.f32 %v2676_v18, %v2682_v58 }
 0xb02   : > { %v4533_v60 = vpop.eup %4532 }
 0xb03   : > { %v2696_v61 = vmul.f32 1.442695, %v2692_v59  ;;  %v2665_v2 = vmax.f32 %v4533_v60, 1e-05 }
 0xb05   : > { %4534 = vpow2.f32 %v2696_v61  ;;  %v2669_v62 = vmin.f32 %v2665_v2, 100000.0  ;;  %v4155_v2 = vld [vmem:[#allocation14 + $0x8] sm:$0xff] }
 0xb06   : > { %2854 = vmatpush.bf16.msrb.mxu3 %v4155_v2 }
 0xb07   : > { %v2673_v24 = vmul.f32 %v2669_v62, %v5944_v26  ;;  %v2688_v26 = vpop.xlane.xlu1 %2687  ;;  %v4154_v62 = vld [vmem:[#allocation14] sm:$0xff] }
 0xb08   : > { %v2694_v10 = vsub.f32 %v2678_v25, %v2688_v26 }
 0xb09   : > { %v2677_v0 = vsel %vm5756_vm3, %v2673_v24, -1e+32 }
 0xb0a   : > { %v2683_v4 = vsel %vm1614_vm2, %v2677_v0, -inf  ;;  %v2700_v11 = vmul.f32 1.442695, %v2694_v10  ;;  %2855 = vmatpush.bf16.msrb.mxu3 %v4154_v62 }
 0xb0b   : > { %v4535_v3 = vpop.eup %4534  ;;  %2684 = vmax.xlane.f32.xlu2 %v2683_v4 }
 0xb0c   : > { %v2704_v7 = vsel %vm1614_vm2, %v4535_v3, 0.0  ;;  %4536 = vpow2.f32 %v2700_v11 }
 0xb0d   : > { %2705 = vadd.xlane.f32.xlu1 %v2704_v7 }
 0xb12   : > { %v4537_v40 = vpop.eup %4536 }
 0xb13   : > { %v2710_v12 = vsel %vm1614_vm2, %v4537_v40, 0.0 }
 0xb15   : > { %2241 = vadd.xlane.f32.xlu1 %v2240_v23 }
 0xb1e   : > { %v2353_v9 = vpop.permute.xlu1 %2352 }
 0xb1f   : > { %2355 = vst.msk [vmem:[#allocation3 + $0x4] sm:$0xf] %vm1570_vm1, %v2353_v9 }
 0xb23   : > { %2368 = vrot.lane.b32.xlu2 %v5894_v48, %s5208_s23 }
 0xb26   : > { %v2377_v32 = vld [vmem:[#allocation3 + $0x4] sm:$0xf] }
 0xb27   : > { %v2751_v45 = vsel %vm1746_vm5, %v2377_v32, 0 }
 0xb28   : > { %2760 = vmatpush.bf16.msrb.mxu0 %v2751_v45 }
 0xb4c   : > { %2711 = vadd.xlane.f32.xlu2 %v2710_v12 }
 0xb63   : > { %v2715_v16 = vpop.xlane.xlu0 %2714 }
 0xb7e   : > { %v2685_v13 = vpop.xlane.xlu2 %2684 }
 0xb7f   : > { %v2693_v14 = vsub.f32 %v2677_v0, %v2685_v13 }
 0xb80   : > { %v2706_v15 = vpop.xlane.xlu1 %2705 }
 0xb81   : > { %v2698_v17 = vmul.f32 1.442695, %v2693_v14  ;;  %4538 = vrcp.f32 %v2706_v15 }
 0xb83   : > { %4540 = vpow2.f32 %v2698_v17  ;;  %v4156_v17 = vld [vmem:[#allocation20] sm:$0xff] }
 0xb84   : > { %4542 = vrcp.f32 %v2715_v16  ;;  %v4157_v16 = vld [vmem:[#allocation20 + $0x8] sm:$0xff] }
 0xb85   : > { %2924 = vmatpush.bf16.msra.mxu0 %v4157_v16 }
 0xb86   : > { %v2369_v18 = vpop.permute.xlu2 %2368 }
 0xb87   : > { %v4539_v19 = vpop.eup %4538  ;;  %2371 = vst.msk [vmem:[#allocation3 + $0xc] sm:$0xf] %vm1570_vm1, %v2369_v18  ;;  %v4159_v18 = vld [vmem:[#allocation23 + $0x8] sm:$0xff] }
 0xb88   : > { %v2720_v20 = vmul.f32 %v4539_v19, %v4535_v3  ;;  %v4430_v3 = vld [vmem:[#allocation16] ss:$0 sm:$0xff]  ;;  %v2242_v32 = vpop.xlane.xlu1 %2241 }
 0xb89   : > { %v4541_v21 = vpop.eup %4540  ;;  %v2243_v11 = vmul.f32 %v2242_v32, %v5886_v1  ;;  %2925 = vmatpush.bf16.msra.mxu0 %v4156_v17 }
 0xb8a   : > { %v4543_v22 = vpop.eup %4542  ;;  %v2724_v25 = vpack.c.bf16 %v2720_v20, %v2720_v20  ;;  %v2707_v27 = vsel %vm1614_vm2, %v4541_v21, 0.0 }
 0xb8b   : > { %2708 = vadd.xlane.f32.xlu0 %v2707_v27  ;;  %v2723_v6 = vmul.f32 %v4543_v22, %v5986_v41  ;;  %v2244_v13 = vsub.f32 %v5998_v8, %v2243_v11 }
 0xb8c   : > { %4056 = vmatmul.msk.bf16.vlgmr.msra.gmra.mxu3 %vm1614_vm2, %v2724_v25 }
 0xb8d   : > { %v2727_v31 = vpack.c.bf16 %v2723_v6, %v2723_v6  ;;  %v2245_v15 = vmul.f32 %v2244_v13, %v2244_v13 }
 0xb8e   : > { %v2379_v53 = vld [vmem:[#allocation3 + $0xc] sm:$0xf] }
 0xb8f   : > { %v2789_v30 = vsel %vm1746_vm5, %v2379_v53, 0 }
 0xb90   : > { %2798 = vmatpush.bf16.msrb.mxu2 %v2789_v30 }
 0xb93   : > { %4059 = vmatmul.msk.bf16.vlgmr.msrb.gmra.mxu2 %vm1614_vm2, %v2727_v31 }
 0xb9f   : > { %2360 = vrot.lane.b32.xlu0 %v5894_v48, %s6328_s4 }
 0xbbf   : > { %v2712_v57 = vpop.xlane.xlu2 %2711 }
 0xbfe   : > { %v2709_v35 = vpop.xlane.xlu0 %2708 }
 0xbff   : > { %4544 = vrcp.f32 %v2709_v35 }
 0xc00   : > { %4546 = vrcp.f32 %v2712_v57  ;;  %v4431_v57 = vld [vmem:[#allocation17] ss:$0 sm:$0xff] }
 0xc05   : > { %v4545_v36 = vpop.eup %4544 }
 0xc06   : > { %v2721_v33 = vmul.f32 %v4545_v36, %v4541_v21  ;;  %v4547_v43 = vpop.eup %4546  ;;  %v4158_v21 = vld [vmem:[#allocation23] sm:$0xff] }
 0xc07   : > { %v2722_v48 = vmul.f32 %v4547_v43, %v4537_v40 }
 0xc08   : > { %v2725_v37 = vpack.c.bf16 %v2721_v33, %v2721_v33 }
 0xc09   : > { %v2726_v52 = vpack.c.bf16 %v2722_v48, %v2722_v48 }
 0xc0a   : > { %4057 = vmatmul.msk.bf16.vlgmr.msrb.gmra.mxu0 %vm1614_vm2, %v2725_v37 }
 0xc0f   : > { %v2743_v38 = vpop.f32.mrf.mxu3 }
 0xc10   : > { %v2804_v39 = vpack.c.bf16 %v2743_v38, %v2743_v38 }
 0xc11   : > { %v2361_v41 = vpop.permute.xlu0 %2360 }
 0xc12   : > { %2805 = vst.msk [vmem:[#allocation4] sm:$0xf] %vm1570_vm1, %v2804_v39 }
 0xc13   : > { %2363 = vst.msk [vmem:[#allocation3 + $0x8] sm:$0xf] %vm1570_vm1, %v2361_v41  ;;  %v4432_v41 = vld [vmem:[#allocation19] ss:$0 sm:$0xff] }
 0xc16   : > { %v2800_v44 = vpop.f32.mrf.mxu2 }
 0xc17   : > { %v2745_v46 = vpop.f32.mrf.mxu3  ;;  %v2818_v61 = vpack.c.bf16 %v2800_v44, %v2800_v44 }
 0xc1a   : > { %v2378_v47 = vld [vmem:[#allocation3 + $0x8] sm:$0xf] }
 0xc1b   : > { %v2770_v50 = vsel %vm1746_vm5, %v2378_v47, 0 }
 0xc1c   : > { %2779 = vmatpush.bf16.msrb.mxu1 %v2770_v50 }
 0xc1e   : > { %v2802_v49 = vpop.f32.mrf.mxu2 }
 0xc1f   : > { %4058 = vmatmul.msk.bf16.vlgmr.msrb.gmra.mxu1 %vm1614_vm2, %v2726_v52  ;;  %v4433_v52 = vld [vmem:[%s6339_s7] ss:$0 sm:$0xff]  ;;  %s6349_s7 = sld [smem:[#allocation67_spill]] }
 0xc20   : > { %2961 = vmatpush.bf16.msra.mxu1 %v4159_v18 }
 0xc24   : > { %2962 = vmatpush.bf16.msra.mxu1 %v4158_v21 }
 0xc87   : > { %v2762_v54 = vpop.f32.mrf.mxu0 }
 0xc88   : > { %v2806_v60 = vpack.c.bf16 %v2762_v54, %v2762_v54 }
 0xc8f   : > { %v2764_v55 = vpop.f32.mrf.mxu0 }
 0xc9c   : > { %v2781_v56 = vpop.f32.mrf.mxu1 }
 0xc9d   : > { %v2812_v58 = vpack.c.bf16 %v2781_v56, %v2781_v56 }
 0xc9f   : > { %2814 = vrot.lane.b32.xlu0 %v2812_v58, %s6254_s18  ;;  %s6340_s18 = sld [smem:[#allocation54_spill]] }
 0xca4   : > { %v2783_v59 = vpop.f32.mrf.mxu1 }
 0xca5   : > { %v4434_v56 = vld [vmem:[%s6340_s18] ss:$0 sm:$0xff]  ;;  %s6341_s18 = sld [smem:[#allocation63_spill]] }
 0xca7   : > { %2808 = vrot.lane.b32.xlu0 %v2806_v60, %s6337_s15 }
 0xcaf   : > { %2820 = vrot.lane.b32.xlu0 %v2818_v61, %s6338_s11  ;;  %v4435_v61 = vld [vmem:[#allocation22] ss:$0 sm:$0xff] }
 0xd11   : > { %v2815_v24 = vpop.permute.xlu0 %2814 }
 0xd19   : > { %v2809_v63 = vpop.permute.xlu0 %2808 }
 0xd1a   : > { %2811 = vst.msk [vmem:[#allocation4] sm:$0xf] %vm2054_vm15, %v2809_v63  ;;  %v4436_v63 = vld [vmem:[#allocation25] ss:$0 sm:$0xff] }
 0xd1b   : > { %2817 = vst.msk [vmem:[#allocation4] sm:$0xf] %vm2061_vm4, %v2815_v24 }
 0xd21   : > { %v2821_v0 = vpop.permute.xlu0 %2820 }
 0xd22   : > { %2823 = vst.msk [vmem:[#allocation4] sm:$0xf] %vm2068_vm6, %v2821_v0 }
 0xd29   : > { %v2824_v4 = vld [vmem:[#allocation4] sm:$0xf] }
 0xd2a   : > { %4068 = vmatmul.msk.bf16.vlgmr.msrb.gmra.mxu3 %vm1519_vm0, %v2824_v4 }
 0xdad   : > { %v2857_v5 = vpop.f32.mrf.mxu3 }
 0xdae   : > { %v2858_v7 = vadd.f32 %v4430_v3, %v2857_v5 }
 0xdb0   : > { %v2861_v23 = vadd.f32 %v2858_v7, %v5868_v34  ;;  %v2246_v34 = vsel %vm1519_vm0, %v2245_v15, 0.0 }
 0xdb2   : > { %v2862_v26 = vsel %vm1519_vm0, %v2861_v23, 0.0 }
 0xdb3   : > { %2863 = vadd.xlane.f32.xlu0 %v2862_v26 }
 0xdb5   : > { %v2859_v9 = vpop.f32.mrf.mxu3 }
 0xe26   : > { %v2864_v45 = vpop.xlane.xlu0 %2863 }
 0xe27   : > { %v2865_v10 = vmul.f32 %v2864_v45, %v5886_v1 }
 0xe29   : > { %v2866_v40 = vsub.f32 %v2861_v23, %v2865_v10 }
 0xe2b   : > { %v2867_v12 = vmul.f32 %v2866_v40, %v2866_v40 }
 0xe2d   : > { %v2868_v14 = vsel %vm1519_vm0, %v2867_v12, 0.0 }
 0xe2e   : > { %2869 = vadd.xlane.f32.xlu2 %v2868_v14 }
 0xe36   : > { %2247 = vadd.xlane.f32.xlu2 %v2246_v34 }
 0xea1   : > { %v2870_v19 = vpop.xlane.xlu2 %2869 }
 0xea2   : > { %v2871_v20 = vmul.f32 %v2870_v19, %v5886_v1 }
 0xea4   : > { %v2872_v22 = vadd.f32 1e-05, %v2871_v20 }
 0xea6   : > { %4548 = vrsqrt.f32 %v2872_v22  ;;  %vm2879_vm13 = vweird.f32 %v2872_v22 }
 0xea9   : > { %v2248_v8 = vpop.xlane.xlu2 %2247 }
 0xeaa   : > { %v2249_v25 = vmul.f32 %v2248_v8, %v5886_v1  ;;  %v4437_v8 = vld [vmem:[%s6341_s18 + $0x1] ss:$0 sm:$0xff] }
 0xeac   : > { %v4549_v27 = vpop.eup %4548  ;;  %v2250_v6 = vadd.f32 1e-05, %v2249_v25 }
 0xead   : > { %v2874_v53 = vmul.f32 %v4549_v27, %v2872_v22  ;;  %vm2880_vm3 = vweird.f32 %v4549_v27 }
 0xeae   : > { %4550 = vrsqrt.f32 %v2250_v6  ;;  %vm2881_vm14 = vmor %vm2879_vm13, %vm2880_vm3  ;;  %vm2257_vm8 = vweird.f32 %v2250_v6 }
 0xeaf   : > { %v2875_v30 = vmul.f32 %v4549_v27, %v2874_v53 }
 0xeb1   : > { %v2876_v31 = vmul.f32 0.5, %v2875_v30  ;;  %v4438_v30 = vld [vmem:[%s6341_s18] ss:$0 sm:$0xff] }
 0xeb3   : > { %v2877_v35 = vsub.f32 1.5, %v2876_v31 }
 0xeb4   : > { %v4551_v36 = vpop.eup %4550 }
 0xeb5   : > { %v2878_v33 = vmul.f32 %v4549_v27, %v2877_v35  ;;  %v2252_v37 = vmul.f32 %v4551_v36, %v2250_v6  ;;  %vm2258_vm7 = vweird.f32 %v4551_v36 }
 0xeb6   : > { %vm2259_vm9 = vmor %vm2257_vm8, %vm2258_vm7 }
 0xeb7   : > { %v2882_v38 = vsel %vm2881_vm14, %v4549_v27, %v2878_v33  ;;  %v2253_v39 = vmul.f32 %v4551_v36, %v2252_v37 }
 0xeb8   : > { %v2883_v43 = vmul.f32 %v2882_v38, %v2866_v40 }
 0xeb9   : > { %v2254_v44 = vmul.f32 0.5, %v2253_v39 }
 0xeba   : > { %v2888_v46 = vmul.f32 %v4431_v57, %v2883_v43 }
 0xebb   : > { %v2255_v48 = vsub.f32 1.5, %v2254_v44 }
 0xebc   : > { %v6036_v47 = vadd.f32 %v4432_v41, %v2888_v46  ;;  %v4439_v41 = vld [vmem:[%s6341_s18 + $0x3] ss:$0 sm:$0xff] }
 0xebd   : > { %v2256_v50 = vmul.f32 %v4551_v36, %v2255_v48 }
 0xebe   : > { %v2894_v49 = vpack.c.bf16 %v6036_v47, %v6036_v47 }
 0xebf   : > { %v2260_v54 = vsel %vm2259_vm9, %v4551_v36, %v2256_v50 }
 0xec0   : > { %v2261_v55 = vmul.f32 %v2260_v54, %v2244_v13  ;;  %4077 = vmatmul.msk.bf16.vlgmr.msra.gmra.mxu0 %vm1519_vm0, %v2894_v49 }
 0xec2   : > { %v2266_v58 = vmul.f32 %v4433_v52, %v2261_v55 }
 0xec4   : > { %v2271_v59 = vadd.f32 %v4434_v56, %v2266_v58 }
 0xec6   : > { %v2931_v60 = vpack.c.bf16 %v2271_v59, %v2271_v59 }
 0xec8   : > { %4086 = vmatmul.msk.bf16.vlgmr.msra.gmra.mxu1 %vm1519_vm0, %v2931_v60 }
 0xf3d   : > { %v2927_v2 = vpop.f32.mrf.mxu0 }
 0xf3e   : > { %v2928_v62 = vadd.f32 %v4435_v61, %v2927_v2 }
 0xf40   : > { %v2968_v24 = vpack.c.bf16 %v2928_v62, %v2928_v62 }
 0xf42   : > { %2969 = vst.msk [vmem:[#allocation2] sm:$0xf] %vm1570_vm1, %v2968_v24  ;;  %2982 = vrot.lane.b32.xlu2 %v2968_v24, %s6328_s4  ;;  %2973 = vrot.lane.b32.xlu1 %v2968_v24, %s5209_s1 }
 0xf45   : > { %v2929_v0 = vpop.f32.mrf.mxu0  ;;  %v2964_v4 = vpop.f32.mrf.mxu1 }
 0xf46   : > { %v2965_v3 = vadd.f32 %v4436_v63, %v2964_v4 }
 0xf48   : > { %v6047_v5 = vpack.c.bf16 %v2965_v3, %v2965_v3  ;;  %v4440_v3 = vld [vmem:[%s6341_s18 + $0x2] ss:$0 sm:$0xff] }
 0xf49   : > { %v2998_v7 = vld [vmem:[#allocation2] sm:$0xf] }
 0xf4a   : > { %2971 = vst.msk [vmem:[#allocation3] sm:$0xf] %vm1570_vm1, %v6047_v5  ;;  %2990 = vrot.lane.b32.xlu1 %v2968_v24, %s5208_s23  ;;  %v3007_v23 = vsel %vm1614_vm2, %v2998_v7, 0 }
 0xf4b   : > { %3016 = vmatpush.bf16.xpose.msra.mxu2 %v3007_v23 }
 0xf4d   : > { %v2966_v26 = vpop.f32.mrf.mxu1 }
 0xf51   : > { %v3002_v9 = vld [vmem:[#allocation3] sm:$0xf] }
 0xf52   : > { %4087 = vmatmul.msk.bf16.vlgmr.msra.gmra.mxu2 %vm1614_vm2, %v2998_v7  ;;  %v3368_v32 = vsel %vm1746_vm5, %v3002_v9, 0 }
 0xf53   : > { %3143 = vmatpush.bf16.msrb.mxu2 %v5770_v42 }
 0xf57   : > { %3377 = vmatpush.bf16.msra.mxu2 %v3368_v32 }
 0xf9c   : > { %v2983_v45 = vpop.permute.xlu2 %2982 }
 0xf9d   : > { %2985 = vst.msk [vmem:[#allocation2 + $0x8] sm:$0xf] %vm1570_vm1, %v2983_v45 }
 0xfa4   : > { %v3000_v10 = vld [vmem:[#allocation2 + $0x8] sm:$0xf] }
 0xfa5   : > { %v3039_v11 = vsel %vm1614_vm2, %v3000_v10, 0 }
 0xfa6   : > { %3048 = vmatpush.bf16.xpose.msrb.mxu0 %v3039_v11 }
 0xfad   : > { %4089 = vmatmul.msk.bf16.vlgmr.msrb.gmra.mxu0 %vm1614_vm2, %v3000_v10 }
 0xfae   : > { %3175 = vmatpush.bf16.msra.mxu0 %v5770_v42 }
 0xfb4   : > { %v2974_v40 = vpop.permute.xlu1 %2973 }
 0xfb5   : > { %2976 = vst.msk [vmem:[#allocation2 + $0x4] sm:$0xf] %vm1570_vm1, %v2974_v40 }
 0xfbc   : > { %v2991_v12 = vpop.permute.xlu1 %2990  ;;  %v2999_v13 = vld [vmem:[#allocation2 + $0x4] sm:$0xf] }
 0xfbd   : > { %2993 = vst.msk [vmem:[#allocation2 + $0xc] sm:$0xf] %vm1570_vm1, %v2991_v12  ;;  %v3023_v14 = vsel %vm1614_vm2, %v2999_v13, 0 }
 0xfbe   : > { %3032 = vmatpush.bf16.xpose.msra.mxu3 %v3023_v14 }
 0xfc4   : > { %v3001_v15 = vld [vmem:[#allocation2 + $0xc] sm:$0xf] }
 0xfc5   : > { %4088 = vmatmul.msk.bf16.vlgmr.msra.gmra.mxu3 %vm1614_vm2, %v2999_v13  ;;  %v3055_v34 = vsel %vm1614_vm2, %v3001_v15, 0 }
 0xfc6   : > { %3159 = vmatpush.bf16.msrb.mxu3 %v5770_v42  ;;  %3064 = vmatpush.bf16.xpose.msrb.mxu1 %v3055_v34 }
 0xfcd   : > { %4090 = vmatmul.msk.bf16.vlgmr.msrb.gmra.mxu1 %vm1614_vm2, %v3001_v15 }
 0xfce   : > { %3191 = vmatpush.bf16.msra.mxu1 %v5770_v42 }
 0xfd5   : > { %v3018_v16 = vpop.f32.mrf.mxu2 }
 0xfd6   : > { %v6090_v35 = vmul.f32 0.35355338, %v3018_v16 }
 0xfd8   : > { %v3077_v57 = vsel %vm6072_vm10, %v6090_v35, -1e+32 }
 0xfd9   : > { %v3081_v39 = vsel %vm1614_vm2, %v3077_v57, -inf }
 0xfdd   : > { %v3020_v17 = vpop.f32.mrf.mxu2 }
0x102a   : > { %v3050_v18 = vpop.f32.mrf.mxu0 }
0x102b   : > { %v6068_v19 = vmul.f32 0.35355338, %v3050_v18 }
0x102d   : > { %v3079_v21 = vsel %vm6072_vm10, %v6068_v19, -1e+32 }
0x102e   : > { %v3087_v42 = vsel %vm1614_vm2, %v3079_v21, -inf }
0x102f   : > { %3088 = vmax.xlane.f32.xlu2 %v3087_v42 }
0x1032   : > { %v3052_v22 = vpop.f32.mrf.mxu0 }
0x1047   : > { %3270 = vperm.xlu2 %4410, %v4437_v8  }
0x1048   : > { %v3034_v25 = vpop.f32.mrf.mxu3 }
0x1049   : > { %v6081_v27 = vmul.f32 0.35355338, %v3034_v25 }
0x104a   : > { %v3066_v6 = vpop.f32.mrf.mxu1 }
0x104b   : > { %v6083_v53 = vmul.f32 0.35355338, %v3066_v6  ;;  %v3078_v29 = vsel %vm6072_vm10, %v6081_v27, -1e+32 }
0x104c   : > { %v3084_v31 = vsel %vm1614_vm2, %v3078_v29, -inf }
0x104d   : > { %3085 = vmax.xlane.f32.xlu0 %v3084_v31  ;;  %v3080_v36 = vsel %vm6072_vm10, %v6083_v53, -1e+32 }
0x104e   : > { %v3090_v33 = vsel %vm1614_vm2, %v3080_v36, -inf }
0x104f   : > { %3091 = vmax.xlane.f32.xlu1 %v3090_v33  ;;  %3266 = vperm.xlu2 %4410, %v4438_v30  }
0x1050   : > { %v3036_v37 = vpop.f32.mrf.mxu3 }
0x1052   : > { %v3068_v38 = vpop.f32.mrf.mxu1 }
0x1055   : > { %3082 = vmax.xlane.f32.xlu0 %v3081_v39 }
0x1068   : > { %3278 = vperm.xlu1 %4411, %v4439_v41  }
0x10a2   : > { %v3089_v43 = vpop.xlane.xlu2 %3088 }
0x10a3   : > { %v3095_v48 = vsub.f32 %v3079_v21, %v3089_v43 }
0x10a5   : > { %v3101_v52 = vmul.f32 1.442695, %v3095_v48 }
0x10c0   : > { %v3086_v44 = vpop.xlane.xlu0 %3085 }
0x10c1   : > { %v3094_v46 = vsub.f32 %v3078_v29, %v3086_v44 }
0x10c2   : > { %v3092_v49 = vpop.xlane.xlu1 %3091 }
0x10c3   : > { %v3099_v50 = vmul.f32 1.442695, %v3094_v46  ;;  %v3096_v55 = vsub.f32 %v3080_v36, %v3092_v49 }
0x10c5   : > { %4552 = vpow2.f32 %v3099_v50  ;;  %v3103_v58 = vmul.f32 1.442695, %v3096_v55 }
0x10c6   : > { %4554 = vpow2.f32 %v3101_v52 }
0x10c7   : > { %4556 = vpow2.f32 %v3103_v58 }
0x10c8   : > { %v3083_v59 = vpop.xlane.xlu0 %3082 }
0x10c9   : > { %v3093_v61 = vsub.f32 %v3077_v57, %v3083_v59 }
0x10cb   : > { %v4553_v54 = vpop.eup %4552  ;;  %v3097_v62 = vmul.f32 1.442695, %v3093_v61 }
0x10cc   : > { %v3108_v56 = vsel %vm1614_vm2, %v4553_v54, 0.0  ;;  %v4555_v60 = vpop.eup %4554 }
0x10cd   : > { %3109 = vadd.xlane.f32.xlu0 %v3108_v56  ;;  %v3111_v2 = vsel %vm1614_vm2, %v4555_v60, 0.0  ;;  %v4557_v24 = vpop.eup %4556  ;;  %4558 = vpow2.f32 %v3097_v62 }
0x10ce   : > { %v3114_v63 = vsel %vm1614_vm2, %v4557_v24, 0.0 }
0x10d3   : > { %v4559_v0 = vpop.eup %4558 }
0x10d4   : > { %v3105_v4 = vsel %vm1614_vm2, %v4559_v0, 0.0 }
0x10d5   : > { %3112 = vadd.xlane.f32.xlu0 %v3111_v2 }
0x10dd   : > { %3115 = vadd.xlane.f32.xlu0 %v3114_v63 }
0x10e5   : > { %3106 = vadd.xlane.f32.xlu0 %v3105_v4  ;;  %v3271_v4 = vpop.permute.xlu2 %3270 }
0x10f9   : > { %3274 = vperm.xlu0 %4412, %v4440_v3  }
0x1140   : > { %v3110_v7 = vpop.xlane.xlu0 %3109 }
0x1141   : > { %4560 = vrcp.f32 %v3110_v7 }
0x1147   : > { %v4561_v23 = vpop.eup %4560 }
0x1148   : > { %v3122_v26 = vmul.f32 %v4561_v23, %v4553_v54  ;;  %v3113_v9 = vpop.xlane.xlu0 %3112 }
0x1149   : > { %4562 = vrcp.f32 %v3113_v9 }
0x114a   : > { %v3126_v32 = vsel %vm6072_vm10, %v3122_v26, 0.0 }
0x114b   : > { %v3130_v45 = vpack.c.bf16 %v3126_v32, %v3126_v32 }
0x114d   : > { %4092 = vmatmul.msk.bf16.vlgmr.msrb.gmra.mxu3 %vm1614_vm2, %v3130_v45 }
0x114f   : > { %v4563_v10 = vpop.eup %4562 }
0x1150   : > { %v3123_v11 = vmul.f32 %v4563_v10, %v4555_v60  ;;  %v3116_v40 = vpop.xlane.xlu0 %3115 }
0x1151   : > { %4564 = vrcp.f32 %v3116_v40 }
0x1152   : > { %v3127_v12 = vsel %vm6072_vm10, %v3123_v11, 0.0 }
0x1153   : > { %v3131_v13 = vpack.c.bf16 %v3127_v12, %v3127_v12 }
0x1155   : > { %4093 = vmatmul.msk.bf16.vlgmr.msra.gmra.mxu0 %vm1614_vm2, %v3131_v13 }
0x1157   : > { %v4565_v14 = vpop.eup %4564 }
0x1158   : > { %v3124_v15 = vmul.f32 %v4565_v14, %v4557_v24  ;;  %v3107_v34 = vpop.xlane.xlu0 %3106 }
0x1159   : > { %4566 = vrcp.f32 %v3107_v34 }
0x115a   : > { %v3128_v16 = vsel %vm6072_vm10, %v3124_v15, 0.0 }
0x115b   : > { %v3132_v17 = vpack.c.bf16 %v3128_v16, %v3128_v16 }
0x115d   : > { %4094 = vmatmul.msk.bf16.vlgmr.msra.gmra.mxu1 %vm1614_vm2, %v3132_v17 }
0x115f   : > { %v4567_v18 = vpop.eup %4566 }
0x1160   : > { %v3121_v21 = vmul.f32 %v4567_v18, %v4559_v0 }
0x1162   : > { %v3125_v42 = vsel %vm6072_vm10, %v3121_v21, 0.0  ;;  %v3279_v21 = vpop.permute.xlu1 %3278 }
0x1163   : > { %v3129_v22 = vpack.c.bf16 %v3125_v42, %v3125_v42 }
0x1165   : > { %4091 = vmatmul.msk.bf16.vlgmr.msrb.gmra.mxu2 %vm1614_vm2, %v3129_v22 }
0x116b   : > { %v3275_v45 = vpop.permute.xlu0 %3274 }
0x11d0   : > { %v3161_v8 = vpop.f32.mrf.mxu3 }
0x11d1   : > { %v3198_v25 = vmul.f32 %v3161_v8, %v5816_v51 }
0x11d2   : > { %v3177_v6 = vpop.f32.mrf.mxu0 }
0x11d3   : > { %v3202_v29 = vmax.f32 %v3198_v25, 0.0  ;;  %v3199_v30 = vmul.f32 %v3177_v6, %v5816_v51 }
0x11d5   : > { %4568 = vrsqrt.f32 %v3202_v29  ;;  %v3203_v31 = vmax.f32 %v3199_v30, 0.0  ;;  %vm3224_vm12 = vcmp.eq.f32.partialorder %v3202_v29, inf  ;;  %v3227_v2 = vand.u32 2147483648, %v3202_v29 }
0x11d6   : > { %vm3226_vm3 = vcmp.eq.f32.partialorder %v3202_v29, 0.0 }
0x11d7   : > { %4570 = vrsqrt.f32 %v3203_v31  ;;  %vm3236_vm13 = vcmp.eq.f32.partialorder %v3203_v31, inf  ;;  %v3239_v23 = vand.u32 2147483648, %v3203_v31  ;;  %vm3238_vm14 = vcmp.eq.f32.partialorder %v3203_v31, 0.0 }
0x11d8   : > { %v3163_v36 = vpop.f32.mrf.mxu3 }
0x11da   : > { %v3179_v33 = vpop.f32.mrf.mxu0  ;;  %v3193_v37 = vpop.f32.mrf.mxu1 }
0x11db   : > { %v4569_v57 = vpop.eup %4568  ;;  %v3200_v38 = vmul.f32 %v3193_v37, %v5816_v51 }
0x11dc   : > { %v3218_v39 = vmul.f32 %v4569_v57, %v3202_v29 }
0x11dd   : > { %v4571_v41 = vpop.eup %4570  ;;  %v3204_v43 = vmax.f32 %v3200_v38, 0.0 }
0x11de   : > { %v3219_v44 = vmul.f32 %v4569_v57, %v3218_v39  ;;  %v3230_v46 = vmul.f32 %v4571_v41, %v3203_v31 }
0x11df   : > { %4572 = vrsqrt.f32 %v3204_v43  ;;  %vm3248_vm7 = vcmp.eq.f32.partialorder %v3204_v43, inf  ;;  %v3251_v16 = vand.u32 2147483648, %v3204_v43  ;;  %vm3250_vm8 = vcmp.eq.f32.partialorder %v3204_v43, 0.0 }
0x11e0   : > { %v3220_v48 = vmul.f32 0.5, %v3219_v44  ;;  %v3231_v50 = vmul.f32 %v4571_v41, %v3230_v46 }
0x11e2   : > { %v3195_v52 = vpop.f32.mrf.mxu1  ;;  %v3221_v49 = vsub.f32 1.5, %v3220_v48  ;;  %v3232_v54 = vmul.f32 0.5, %v3231_v50 }
0x11e4   : > { %v3222_v55 = vmul.f32 %v4569_v57, %v3221_v49  ;;  %v3233_v56 = vsub.f32 1.5, %v3232_v54 }
0x11e5   : > { %v4573_v58 = vpop.eup %4572 }
0x11e6   : > { %v3223_v59 = vmul.f32 %v3222_v55, %v3202_v29  ;;  %v3234_v60 = vmul.f32 %v4571_v41, %v3233_v56  ;;  %v3242_v61 = vmul.f32 %v4573_v58, %v3204_v43  ;;  %v3267_v56 = vpop.permute.xlu2 %3266 }
0x11e8   : > { %v3145_v62 = vpop.f32.mrf.mxu2  ;;  %v3225_v24 = vsel %vm3224_vm12, %v3202_v29, %v3223_v59  ;;  %v3235_v63 = vmul.f32 %v3234_v60, %v3203_v31  ;;  %v3243_v0 = vmul.f32 %v4573_v58, %v3242_v61 }
0x11e9   : > { %v3197_v3 = vmul.f32 %v3145_v62, %v5816_v51  ;;  %v3228_v7 = vsel %vm3226_vm3, %v3227_v2, %v3225_v24 }
0x11ea   : > { %v3282_v26 = vmul.f32 %v3271_v4, %v3228_v7  ;;  %v3237_v9 = vsel %vm3236_vm13, %v3203_v31, %v3235_v63  ;;  %v3244_v32 = vmul.f32 0.5, %v3243_v0 }
0x11eb   : > { %v3201_v10 = vmax.f32 %v3197_v3, 0.0  ;;  %v3240_v11 = vsel %vm3238_vm14, %v3239_v23, %v3237_v9 }
0x11ec   : > { %v3287_v40 = vmul.f32 1.442695, %v3282_v26  ;;  %v3283_v12 = vmul.f32 %v3275_v45, %v3240_v11  ;;  %v3245_v13 = vsub.f32 1.5, %v3244_v32 }
0x11ed   : > { %4574 = vrsqrt.f32 %v3201_v10  ;;  %vm3212_vm9 = vcmp.eq.f32.partialorder %v3201_v10, inf  ;;  %v3215_v54 = vand.u32 2147483648, %v3201_v10  ;;  %vm3214_vm12 = vcmp.eq.f32.partialorder %v3201_v10, 0.0 }
0x11ee   : > { %4576 = vpow2.f32 %v3287_v40  ;;  %v3289_v14 = vmul.f32 1.442695, %v3283_v12  ;;  %v3246_v15 = vmul.f32 %v4573_v58, %v3245_v13 }
0x11f0   : > { %v3147_v34 = vpop.f32.mrf.mxu2  ;;  %4578 = vpow2.f32 %v3289_v14  ;;  %v3247_v51 = vmul.f32 %v3246_v15, %v3204_v43 }
0x11f2   : > { %v3249_v17 = vsel %vm3248_vm7, %v3204_v43, %v3247_v51 }
0x11f3   : > { %v4575_v18 = vpop.eup %4574  ;;  %v3252_v42 = vsel %vm3250_vm8, %v3251_v16, %v3249_v17 }
0x11f4   : > { %v4577_v22 = vpop.eup %4576  ;;  %v3284_v8 = vmul.f32 %v3279_v21, %v3252_v42  ;;  %v3206_v25 = vmul.f32 %v4575_v18, %v3201_v10 }
0x11f5   : > { %v3294_v6 = vmax.f32 %v4577_v22, 1e-05 }
0x11f6   : > { %v4579_v29 = vpop.eup %4578  ;;  %v3291_v30 = vmul.f32 1.442695, %v3284_v8  ;;  %v3207_v31 = vmul.f32 %v4575_v18, %v3206_v25 }
0x11f7   : > { %v3298_v36 = vmin.f32 %v3294_v6, 100000.0  ;;  %v3295_v33 = vmax.f32 %v4579_v29, 1e-05 }
0x11f8   : > { %4580 = vpow2.f32 %v3291_v30  ;;  %v3208_v37 = vmul.f32 0.5, %v3207_v31 }
0x11f9   : > { %v3302_v57 = vmul.f32 %v3298_v36, %v6081_v27  ;;  %v3299_v38 = vmin.f32 %v3295_v33, 100000.0 }
0x11fa   : > { %v3209_v39 = vsub.f32 1.5, %v3208_v37 }
0x11fb   : > { %v3306_v41 = vsel %vm6072_vm10, %v3302_v57, -1e+32  ;;  %v3303_v43 = vmul.f32 %v3299_v38, %v6068_v19 }
0x11fc   : > { %v3312_v44 = vsel %vm1614_vm2, %v3306_v41, -inf  ;;  %v3210_v46 = vmul.f32 %v4575_v18, %v3209_v39 }
0x11fd   : > { %3313 = vmax.xlane.f32.xlu0 %v3312_v44  ;;  %v3307_v48 = vsel %vm6072_vm10, %v3303_v43, -1e+32 }
0x11fe   : > { %v4581_v50 = vpop.eup %4580  ;;  %v3315_v52 = vsel %vm1614_vm2, %v3307_v48, -inf  ;;  %v3211_v49 = vmul.f32 %v3210_v46, %v3201_v10 }
0x11ff   : > { %3316 = vmax.xlane.f32.xlu1 %v3315_v52  ;;  %v3296_v27 = vmax.f32 %v4581_v50, 1e-05 }
0x1200   : > { %v3213_v55 = vsel %vm3212_vm9, %v3201_v10, %v3211_v49 }
0x1201   : > { %v3300_v58 = vmin.f32 %v3296_v27, 100000.0  ;;  %v3216_v19 = vsel %vm3214_vm12, %v3215_v54, %v3213_v55 }
0x1202   : > { %v3281_v59 = vmul.f32 %v3267_v56, %v3216_v19 }
0x1203   : > { %v3304_v60 = vmul.f32 %v3300_v58, %v6083_v53 }
0x1204   : > { %v3285_v61 = vmul.f32 1.442695, %v3281_v59 }
0x1205   : > { %v3308_v2 = vsel %vm6072_vm10, %v3304_v60, -1e+32 }
0x1206   : > { %v3318_v62 = vsel %vm1614_vm2, %v3308_v2, -inf  ;;  %4582 = vpow2.f32 %v3285_v61 }
0x1207   : > { %3319 = vmax.xlane.f32.xlu2 %v3318_v62 }
0x120c   : > { %v4583_v24 = vpop.eup %4582 }
0x120d   : > { %v3293_v63 = vmax.f32 %v4583_v24, 1e-05 }
0x120f   : > { %v3297_v0 = vmin.f32 %v3293_v63, 100000.0 }
0x1211   : > { %v3301_v4 = vmul.f32 %v3297_v0, %v6090_v35 }
0x1213   : > { %v3305_v3 = vsel %vm6072_vm10, %v3301_v4, -1e+32  ;;  %vm3353_vm10 = vcmp.eq.s32.totalorder %v5750_v28, 0 }
0x1214   : > { %v3309_v7 = vsel %vm1614_vm2, %v3305_v3, -inf }
0x1215   : > { %3310 = vmax.xlane.f32.xlu0 %v3309_v7 }
0x121f   : > { %2978 = vrot.lane.b32.xlu2 %v6047_v5, %s5209_s1  ;;  %s6345_s1 = smov 16  }
0x1270   : > { %v3314_v53 = vpop.xlane.xlu0 %3313 }
0x1271   : > { %v3322_v23 = vsub.f32 %v3306_v41, %v3314_v53 }
0x1272   : > { %v3317_v26 = vpop.xlane.xlu1 %3316 }
0x1273   : > { %v3327_v9 = vmul.f32 1.442695, %v3322_v23  ;;  %v3323_v32 = vsub.f32 %v3307_v48, %v3317_v26 }
0x1275   : > { %4584 = vpow2.f32 %v3327_v9  ;;  %v3329_v45 = vmul.f32 1.442695, %v3323_v32 }
0x1277   : > { %4586 = vpow2.f32 %v3329_v45  ;;  %v4441_v45 = vld [vmem:[#allocation26] ss:$0 sm:$0xff] }
0x127a   : > { %v3320_v10 = vpop.xlane.xlu2 %3319 }
0x127b   : > { %v4585_v11 = vpop.eup %4584  ;;  %v3324_v35 = vsub.f32 %v3308_v2, %v3320_v10 }
0x127c   : > { %v3336_v20 = vsel %vm1614_vm2, %v4585_v11, 0.0 }
0x127d   : > { %v4587_v40 = vpop.eup %4586  ;;  %v3331_v12 = vmul.f32 1.442695, %v3324_v35  ;;  %3337 = vadd.xlane.f32.xlu1 %v3336_v20 }
0x127e   : > { %v3339_v13 = vsel %vm1614_vm2, %v4587_v40, 0.0 }
0x127f   : > { %4588 = vpow2.f32 %v3331_v12  ;;  %3340 = vadd.xlane.f32.xlu0 %v3339_v13 }
0x1282   : > { %v2979_v14 = vpop.permute.xlu2 %2978 }
0x1283   : > { %2981 = vst.msk [vmem:[#allocation3 + $0x4] sm:$0xf] %vm1570_vm1, %v2979_v14 }
0x1285   : > { %v4589_v15 = vpop.eup %4588 }
0x1286   : > { %v3342_v34 = vsel %vm1614_vm2, %v4589_v15, 0.0 }
0x1287   : > { %3343 = vadd.xlane.f32.xlu0 %v3342_v34 }
0x1288   : > { %v3311_v51 = vpop.xlane.xlu0 %3310 }
0x1289   : > { %v3321_v16 = vsub.f32 %v3305_v3, %v3311_v51  ;;  %v4163_v51 = vld [vmem:[#allocation28 + $0x8] sm:$0xff] }
0x128a   : > { %v3003_v17 = vld [vmem:[#allocation3 + $0x4] sm:$0xf] }
0x128b   : > { %v3325_v18 = vmul.f32 1.442695, %v3321_v16  ;;  %v3387_v21 = vsel %vm1746_vm5, %v3003_v17, 0  ;;  %v4162_v16 = vld [vmem:[#allocation28] sm:$0xff] }
0x128c   : > { %3396 = vmatpush.bf16.msra.mxu3 %v3387_v21 }
0x128d   : > { %4590 = vpow2.f32 %v3325_v18 }
0x1290   : > { %3560 = vmatpush.bf16.msrb.mxu3 %v4163_v51 }
0x1293   : > { %v4591_v42 = vpop.eup %4590 }
0x1294   : > { %v3333_v22 = vsel %vm1614_vm2, %v4591_v42, 0.0  ;;  %3561 = vmatpush.bf16.msrb.mxu3 %v4162_v16 }
0x1295   : > { %3334 = vadd.xlane.f32.xlu2 %v3333_v22 }
0x1296   : > { %2986 = vrot.lane.b32.xlu1 %v6047_v5, %s6328_s4  ;;  %s6346_s4 = sld [smem:[#allocation68_spill]] }
0x129b   : > { %2994 = vrot.lane.b32.xlu0 %v6047_v5, %s5208_s23  ;;  %s6344_s23 = sld [smem:[#allocation62_spill]] }
0x129c   : > { %v4167_v17 = vld [vmem:[%s6346_s4 + $0x18] sm:$0xff]  ;;  %v4166_v21 = vld [vmem:[%s6346_s4 + $0x10] sm:$0xff] }
0x12a1   : > { %v4161_v7 = vld [vmem:[%s6344_s23 + $0x8] sm:$0xff]  ;;  %v4160_v53 = vld [vmem:[%s6344_s23] sm:$0xff] }
0x12a2   : > { %3490 = vmatpush.bf16.msrb.mxu2 %v4161_v7 }
0x12a6   : > { %3491 = vmatpush.bf16.msrb.mxu2 %v4160_v53 }
0x12f0   : > { %v3338_v8 = vpop.xlane.xlu1 %3337 }
0x12f1   : > { %4592 = vrcp.f32 %v3338_v8 }
0x12f2   : > { %v3341_v31 = vpop.xlane.xlu0 %3340 }
0x12f3   : > { %4594 = vrcp.f32 %v3341_v31 }
0x12f7   : > { %v4593_v25 = vpop.eup %4592 }
0x12f8   : > { %v3350_v6 = vmul.f32 %v4593_v25, %v4585_v11 }
0x12f9   : > { %v4595_v57 = vpop.eup %4594 }
0x12fa   : > { %v3357_v29 = vsel %vm3353_vm10, 0.0, %v3350_v6  ;;  %v3344_v36 = vpop.xlane.xlu0 %3343  ;;  %v3351_v5 = vmul.f32 %v4595_v57, %v4587_v40 }
0x12fb   : > { %v3361_v30 = vpack.c.bf16 %v3357_v29, %v3357_v29  ;;  %4596 = vrcp.f32 %v3344_v36 }
0x12fc   : > { %v3358_v43 = vsel %vm3353_vm10, 0.0, %v3351_v5 }
0x12fd   : > { %4096 = vmatmul.msk.bf16.vlgmr.msra.gmra.mxu3 %vm1614_vm2, %v3361_v30  ;;  %v3362_v49 = vpack.c.bf16 %v3358_v43, %v3358_v43  ;;  %v4444_v43 = vld [vmem:[%s6349_s7] ss:$0 sm:$0xff] }
0x1301   : > { %v4597_v39 = vpop.eup %4596 }
0x1302   : > { %v3352_v48 = vmul.f32 %v4597_v39, %v4589_v15  ;;  %v4165_v39 = vld [vmem:[%s6346_s4 + $0x8] sm:$0xff] }
0x1304   : > { %v3359_v54 = vsel %vm3353_vm10, 0.0, %v3352_v48 }
0x1305   : > { %v3363_v58 = vpack.c.bf16 %v3359_v54, %v3359_v54 }
0x1308   : > { %v3335_v33 = vpop.xlane.xlu2 %3334  ;;  %v2987_v37 = vpop.permute.xlu1 %2986 }
0x1309   : > { %4598 = vrcp.f32 %v3335_v33  ;;  %2989 = vst.msk [vmem:[#allocation3 + $0x8] sm:$0xf] %vm1570_vm1, %v2987_v37 }
0x130d   : > { %v2995_v38 = vpop.permute.xlu0 %2994 }
0x130e   : > { %2997 = vst.msk [vmem:[#allocation3 + $0xc] sm:$0xf] %vm1570_vm1, %v2995_v38 }
0x130f   : > { %v4599_v41 = vpop.eup %4598 }
0x1310   : > { %v3349_v44 = vmul.f32 %v4599_v41, %v4591_v42  ;;  %v3004_v46 = vld [vmem:[#allocation3 + $0x8] sm:$0xf]  ;;  %v4164_v41 = vld [vmem:[%s6346_s4] sm:$0xff] }
0x1311   : > { %v3406_v50 = vsel %vm1746_vm5, %v3004_v46, 0 }
0x1312   : > { %v3356_v52 = vsel %vm3353_vm10, 0.0, %v3349_v44  ;;  %3415 = vmatpush.bf16.msrb.mxu0 %v3406_v50 }
0x1313   : > { %v3360_v27 = vpack.c.bf16 %v3356_v52, %v3356_v52 }
0x1315   : > { %4095 = vmatmul.msk.bf16.vlgmr.msra.gmra.mxu2 %vm1614_vm2, %v3360_v27  ;;  %4097 = vmatmul.msk.bf16.vlgmr.msrb.gmra.mxu0 %vm1614_vm2, %v3362_v49  ;;  %v3005_v55 = vld [vmem:[#allocation3 + $0xc] sm:$0xf]  ;;  %v4445_v49 = vld [vmem:[%s5415_s25] ss:$0 sm:$0xff] }
0x1316   : > { %v3425_v56 = vsel %vm1746_vm5, %v3005_v55, 0  ;;  %3612 = vmatpush.bf16.msra.mxu0 %v4167_v17 }
0x1317   : > { %3434 = vmatpush.bf16.msrb.mxu1 %v3425_v56 }
0x131a   : > { %4098 = vmatmul.msk.bf16.vlgmr.msrb.gmra.mxu1 %vm1614_vm2, %v3363_v58  ;;  %3613 = vmatpush.bf16.msra.mxu0 %v4166_v21 }
0x131e   : > { %3614 = vmatpush.bf16.msra.mxu0 %v4165_v39 }
0x1322   : > { %3615 = vmatpush.bf16.msra.mxu0 %v4164_v41 }
0x1380   : > { %v3398_v19 = vpop.f32.mrf.mxu3 }
0x1381   : > { %v3442_v59 = vpack.c.bf16 %v3398_v19, %v3398_v19 }
0x1383   : > { %3444 = vrot.lane.b32.xlu1 %v3442_v59, %s6337_s15  ;;  %s6347_s15 = sld [smem:[#allocation64_spill]] }
0x1388   : > { %v3400_v60 = vpop.f32.mrf.mxu3 }
0x1389   : > { %v4442_v31 = vld [vmem:[%s6347_s15] ss:$0 sm:$0xff]  ;;  %s6352_s15 = sld [smem:[#allocation70_spill]] }
0x1392   : > { %v3417_v28 = vpop.f32.mrf.mxu0 }
0x1393   : > { %v3448_v61 = vpack.c.bf16 %v3417_v28, %v3417_v28 }
0x1395   : > { %3450 = vrot.lane.b32.xlu0 %v3448_v61, %s6345_s1  ;;  %s6351_s1 = sld [smem:[#allocation71_spill]] }
0x1397   : > { %v3436_v2 = vpop.f32.mrf.mxu1 }
0x1398   : > { %v3454_v62 = vpack.c.bf16 %v3436_v2, %v3436_v2  ;;  %v3379_v24 = vpop.f32.mrf.mxu2 }
0x1399   : > { %v3440_v63 = vpack.c.bf16 %v3379_v24, %v3379_v24 }
0x139a   : > { %3456 = vrot.lane.b32.xlu1 %v3454_v62, %s6338_s11  ;;  %v3419_v0 = vpop.f32.mrf.mxu0  ;;  %s6348_s11 = sld [smem:[#allocation65_spill]] }
0x139b   : > { %3441 = vst.msk [vmem:[#allocation4] sm:$0xf] %vm1570_vm1, %v3440_v63  ;;  %s3666_s3 = scalar_lea.hbm %s6351_s1, %s4135_s2  ;;  %s5074_s2 = scalar_lea.hbm %s6351_s1, 16 }
0x139c   : > { %s3670_s8 = sshll.u32 %s3666_s3, 4  ;;  %s3671_s8 = int_to_ptr.hbm [resolvable:$true] %s3670_s8 }
0x139d   : > { %s5068_s12 = sshra.s32 %s3671_s8, 4  ;;  %s5069_s12 = int_to_ptr.hbm [resolvable:$true] %s5068_s12 }
0x139e   : > { %p5075_p1 = scmp.lt.s32.totalorder %s5069_s12, %s6351_s1 }
0x139f   : > { %v3438_v4 = vpop.f32.mrf.mxu1 }
0x13a0   : > { %v3381_v3 = vpop.f32.mrf.mxu2  ;;  %v4443_v33 = vld [vmem:[%s6348_s11] ss:$0 sm:$0xff]  ;;  %s1472_s11 = sand.u32 1, %s5140_s10  }
0x13a1   : > { %s3962_s7 = sshll.u32 %s1472_s11, 3  ;;  %s3656_s0 = scalar_lea.sflag [#allocation7], %s1472_s11 }
0x13a2   : > { %s1474_s5 = scalar_lea.vmem [#allocation29], %s3962_s7 }
0x13a3   : > { %s3668_s6 = sshll.u32 %s1474_s5, 4  ;;  %s3669_s6 = int_to_ptr.vmem [resolvable:$true] %s3668_s6 }
0x13f5   : > { %v3445_v23 = vpop.permute.xlu1 %3444 }
0x13f6   : > { %3447 = vst.msk [vmem:[#allocation4] sm:$0xf] %vm2054_vm15, %v3445_v23  ;;  %v4446_v23 = vld [vmem:[%s6350_s9] ss:$0 sm:$0xff]  ;;  %s5070_s9 = scalar_lea.hbm %s5069_s12, 8 }
0x13f7   : > { %p5071_p9 = scmp.ne.s32.totalorder %s5069_s12, %s5070_s9  ;;  %p5076_p2 = scmp.lt.s32.totalorder %s5074_s2, %s5070_s9 }
0x13f9   : > { %p5072_p12 = pnand %p5071_p9, %p5470_p5  ;;  %p5077_p3 = por %p5076_p2, %p5075_p1 }
0x13fb   : > { %p5073_p0 = pneg %p5072_p12 }
0x13fd   : > { %p5078_p4 = pnand %p5077_p3, %p5073_p0 }
0x1407   : > { %v3451_v26 = vpop.permute.xlu0 %3450 }
0x1408   : > { %3453 = vst.msk [vmem:[#allocation4] sm:$0xf] %vm2061_vm4, %v3451_v26 }
0x140c   : > { %v3457_v9 = vpop.permute.xlu1 %3456 }
0x140d   : > { %3459 = vst.msk [vmem:[#allocation4] sm:$0xf] %vm2068_vm6, %v3457_v9  ;;  %v4447_v9 = vld [vmem:[%s6352_s15] ss:$0 sm:$0xff] }
0x1414   : > { %v3460_v32 = vld [vmem:[#allocation4] sm:$0xf] }
0x1415   : > { %4107 = vmatmul.msk.bf16.vlgmr.msrb.gmra.mxu2 %vm1519_vm0, %v3460_v32 }
0x1498   : > { %v3493_v10 = vpop.f32.mrf.mxu2 }
0x1499   : > { %v3494_v11 = vadd.f32 %v4441_v45, %v3493_v10 }
0x149b   : > { %v3497_v35 = vadd.f32 %v3494_v11, %v6036_v47 }
0x149d   : > { %v3498_v20 = vsel %vm1519_vm0, %v3497_v35, 0.0 }
0x149e   : > { %3499 = vadd.xlane.f32.xlu0 %v3498_v20 }
0x14a0   : > { %v3495_v40 = vpop.f32.mrf.mxu2 }
0x1511   : > { %v3500_v12 = vpop.xlane.xlu0 %3499 }
0x1512   : > { %v3501_v13 = vmul.f32 %v3500_v12, %v5886_v1 }
0x1514   : > { %v3502_v14 = vsub.f32 %v3497_v35, %v3501_v13 }
0x1516   : > { %v3503_v15 = vmul.f32 %v3502_v14, %v3502_v14 }
0x1518   : > { %v3504_v34 = vsel %vm1519_vm0, %v3503_v15, 0.0 }
0x1519   : > { %3505 = vadd.xlane.f32.xlu1 %v3504_v34 }
0x158c   : > { %v3506_v47 = vpop.xlane.xlu1 %3505 }
0x158d   : > { %v3507_v18 = vmul.f32 %v3506_v47, %v5886_v1 }
0x158f   : > { %v3508_v42 = vadd.f32 1e-05, %v3507_v18 }
0x1591   : > { %4600 = vrsqrt.f32 %v3508_v42  ;;  %vm3515_vm2 = vweird.f32 %v3508_v42 }
0x1597   : > { %v4601_v22 = vpop.eup %4600 }
0x1598   : > { %v3510_v8 = vmul.f32 %v4601_v22, %v3508_v42  ;;  %vm3516_vm1 = vweird.f32 %v4601_v22 }
0x1599   : > { %vm3517_vm5 = vmor %vm3515_vm2, %vm3516_vm1 }
0x159a   : > { %v3511_v25 = vmul.f32 %v4601_v22, %v3510_v8 }
0x159c   : > { %v3512_v6 = vmul.f32 0.5, %v3511_v25 }
0x159e   : > { %v3513_v29 = vsub.f32 1.5, %v3512_v6 }
0x15a0   : > { %v3514_v30 = vmul.f32 %v4601_v22, %v3513_v29 }
0x15a2   : > { %v3518_v36 = vsel %vm3517_vm5, %v4601_v22, %v3514_v30 }
0x15a3   : > { %v3519_v37 = vmul.f32 %v3518_v36, %v3502_v14 }
0x15a5   : > { %v3524_v57 = vmul.f32 %v4442_v31, %v3519_v37 }
0x15a7   : > { %v3529_v5 = vadd.f32 %v4443_v33, %v3524_v57 }
0x15a9   : > { %v3530_v38 = vpack.c.bf16 %v3529_v5, %v3529_v5 }
0x15ab   : > { %4116 = vmatmul.msk.bf16.vlgmr.msrb.gmra.mxu3 %vm1519_vm0, %v3530_v38 }
0x162e   : > { %v3563_v44 = vpop.f32.mrf.mxu3 }
0x162f   : > { %v3564_v46 = vadd.f32 %v4444_v43, %v3563_v44 }
0x1631   : > { %v3567_v48 = vmax.f32 %v3564_v46, 0.0 }
0x1633   : > { %v3568_v50 = vpack.c.bf16 %v3567_v48, %v3567_v48 }
0x1635   : > { %4133 = vmatmul.msk.bf16.vlgmr.msra.gmra.mxu0 %vm2222_vm11, %v3568_v50 }
0x1636   : > { %v3565_v52 = vpop.f32.mrf.mxu3 }
0x16b2   : > { %v3617_v27 = vpop.f32.mrf.mxu0 }
0x16b3   : > { %v3618_v54 = vadd.f32 %v4445_v49, %v3617_v27 }
0x16b5   : > { %v3621_v55 = vadd.f32 %v3618_v54, %v3529_v5 }
0x16b7   : > { %v3622_v56 = vsel %vm1519_vm0, %v3621_v55, 0.0 }
0x16b8   : > { %3623 = vadd.xlane.f32.xlu2 %v3622_v56 }
0x16ba   : > { %v3619_v58 = vpop.f32.mrf.mxu0 }
0x172b   : > { %v3624_v19 = vpop.xlane.xlu2 %3623 }
0x172c   : > { %v3625_v59 = vmul.f32 %v3624_v19, %v5886_v1 }
0x172e   : > { %v3626_v60 = vsub.f32 %v3621_v55, %v3625_v59 }
0x1730   : > { %v3627_v28 = vmul.f32 %v3626_v60, %v3626_v60 }
0x1732   : > { %v3628_v61 = vsel %vm1519_vm0, %v3627_v28, 0.0 }
0x1733   : > { %3629 = vadd.xlane.f32.xlu2 %v3628_v61 }
0x17a6   : > { %v3630_v2 = vpop.xlane.xlu2 %3629 }
0x17a7   : > { %v3631_v62 = vmul.f32 %v3630_v2, %v5886_v1 }
0x17a9   : > { %v3632_v24 = vadd.f32 1e-05, %v3631_v62 }
0x17ab   : > { %4602 = vrsqrt.f32 %v3632_v24  ;;  %vm3639_vm4 = vweird.f32 %v3632_v24 }
0x17b1   : > { %v4603_v63 = vpop.eup %4602 }
0x17b2   : > { %v3634_v0 = vmul.f32 %v4603_v63, %v3632_v24  ;;  %vm3640_vm15 = vweird.f32 %v4603_v63 }
0x17b3   : > { %vm3641_vm6 = vmor %vm3639_vm4, %vm3640_vm15 }
0x17b4   : > { %v3635_v4 = vmul.f32 %v4603_v63, %v3634_v0 }
0x17b6   : > { %v3636_v3 = vmul.f32 0.5, %v3635_v4 }
0x17b8   : > { %v3637_v7 = vsub.f32 1.5, %v3636_v3 }
0x17ba   : > { %v3638_v53 = vmul.f32 %v4603_v63, %v3637_v7 }
0x17bc   : > { %v3642_v26 = vsel %vm3641_vm6, %v4603_v63, %v3638_v53 }
0x17bd   : > { %v3643_v1 = vmul.f32 %v3642_v26, %v3626_v60 }
0x17bf   : > { %v3648_v32 = vmul.f32 %v4446_v23, %v3643_v1 }
0x17c1   : > { %v3653_v45 = vadd.f32 %v4447_v9, %v3648_v32 }
0x17c3   : > { %3654 = vst.msk [vmem:[%s1474_s5] sm:$0xff] %vm1519_vm0, %v3653_v45 }
0x17c4   : > { %5081 = shalt.err (!%p5078_p4)
}
0x17c5   : > { %4228 = dma.vmem_to_hbm [thread:$0]  (%p5470_p5), %s3669_s6, 128, %s3671_s8, %s3656_s0  }
0x17c6 PF: > { %s6354_s3 = sld [smem:[#allocation74_spill]] }
0x17c7   : > { %s6355_s5 = sld [smem:[#allocation72_spill]] }
0x17cc   : > { %p4310_p7 = scmp.ge.s32.totalorder %s6354_s3, 2 }
0x17cd   : > { %s3682_s11 = sand.u32 1, %s6355_s5  }
0x17ce   : > { %p4277_p8 = pnand %p4310_p7, %p5474_p6  ;;  %s3683_s7 = scalar_lea.sflag [#allocation7], %s3682_s11 }
0x17d0   : > { %p4278_p11 = pneg %p4277_p8 }
0x17d2   : > { %5131 = dma.done.wait (%p4278_p11), %s3683_s7, 128  }
0x17d3   : > { %5133 = vsyncadd (%p4278_p11), %s3683_s7, 4294967168  ;;  %s6357_s15 = sld [smem:[#allocation75_spill]]  ;;  %s6360_s7 = smov %s5140_s10 }
0x17d4   : > { %s6358_s9 = sld [smem:[#allocation73_spill]] }
0x17d5   : > { %s6359_s11 = sld [smem:[#allocation76_spill]] }
0x17d9   : > { %p101_p13 = scmp.ge.s32.totalorder %s6357_s15, 4  }
0x17da   : > { %s6361_s10 = smov %s6358_s9 }
0x17db   :  { %103 = sbr.rel (!%p101_p13) target bundleno = 91 (0x5b), region = 330 }
0x17e0   :  { %3689 = vsyncpa [#allocation6], 1 }
0x17e1   :  { %3691 = vsyncpa [#allocation6 + $0x1], 1 }
0x17e2   :  { %3692 = vsyncpa [#allocation9], 1 }
0x17e3   :  { %3693 = vsyncpa [#allocation12], 1 }
0x17e4   :  { %3694 = vsyncpa [#allocation15], 1 }
0x17e5   :  { %3695 = vsyncpa [#allocation18], 1 }
0x17e6   :  { %3696 = vsyncpa [#allocation21], 1 }
0x17e7   :  { %3697 = vsyncpa [#allocation24], 1 }
0x17e8   :  { %3698 = vsyncpa [#allocation27], 1 }
0x17e9   :  { %3699 = vsyncpa [#allocation7], 1 }
0x17ea   :  { %3701 = vsyncpa [#allocation7 + $0x1], 1 }

</bundles_post_ra>
